<compile_context>
chip_gen: v6e
topology: v6e:2x2x1
jax: 0.10.0
libtpu: 0.0.40
codegen_flags: <defaults>
</compile_context>

<pallas_src>
import functools

import jax
import jax.numpy as jnp
from jax.experimental import pallas as pl
from jax.experimental.pallas import tpu as pltpu


def cal_linear_num(layer_num, num_timesteps_input):
    return num_timesteps_input + 4 * (2 ** layer_num - 1)


def _round_up(v, m):
    return ((v + m - 1) // m) * m


def _pick_bn_tile(bn):
    """Largest divisor of bn (<=128) that still leaves >=2 grid steps (v7x cores)."""
    best = 1
    for t in range(1, bn + 1):
        if bn % t == 0 and t <= 128 and (bn // t) >= 2:
            best = t
    return best


# ---------------------------------------------------------------------------
# Fused Pallas kernel: whole TCN + final Linear for BN_TILE samples per step.
# ---------------------------------------------------------------------------
def _tcn_fused_kernel(pos_ref, x_ref, *refs, block_cfg, T0, off, K, padmax):
    """pos_ref: (RT,1) int32 within-stripe time position.
    x_ref:   (RT, Cin) zero-striped input (RT = BN_TILE * S).
    refs:    per-block weights (w1,b1,w2,b2[,w_ds,b_ds]), then (w_blk, b_lin),
             then o_ref (BN_TILE*out_ch, C_last) and im_ref VMEM scratch."""
    *w_refs, o_ref, im_ref = refs
    rt = x_ref.shape[0]
    pos = pos_ref[...]                       # (RT, 1) int32
    cdt = im_ref.dtype                       # matmul operand dtype

    def shifted_im2col(h, d):
        """Write h K times into scratch (symmetric zero pad) -> (RT, K*C) patches."""
        pad = (K - 1) * d
        c = h.shape[1]
        hc = h.astype(cdt)
        if padmax > 0:
            im_ref[0:padmax, 0:K * c] = jnp.zeros((padmax, K * c), cdt)
        for j in range(K):
            s = pad - j * d                  # shift-down amount of tap j
            im_ref[s:s + rt, j * c:(j + 1) * c] = hc
        return im_ref[0:rt, 0:K * c]

    def shift_down(h, s):
        """y[r] = h[r - s] with zero fill (time shift of the residual path)."""
        c = h.shape[1]
        if padmax > 0:
            im_ref[0:padmax, 0:c] = jnp.zeros((padmax, c), cdt)
        im_ref[s:s + rt, 0:c] = h.astype(cdt)
        return im_ref[0:rt, 0:c].astype(jnp.float32)

    def mask_valid(v, t_len):
        m = jnp.logical_and(pos >= off, pos < off + t_len)   # (RT,1) bool
        return jnp.where(m, v, 0.0)

    def conv(h, w_ref, b_ref, d, t_in, relu):
        patches = shifted_im2col(h, d)                        # (RT, K*Cin)
        acc = jnp.dot(patches, w_ref[...],
                      preferred_element_type=jnp.float32)     # single MXU dot
        acc = acc + b_ref[...]
        if relu:
            acc = jnp.maximum(acc, 0.0)
        t_out = t_in + (K - 1) * d
        return mask_valid(acc, t_out), t_out

    it = iter(w_refs)
    x = x_ref[...].astype(jnp.float32)
    t_cur = T0
    for d, has_ds in block_cfg:
        w1, b1, w2, b2 = next(it), next(it), next(it), next(it)
        if has_ds:                           # fused 1x1 downsample residual
            wds, bds = next(it), next(it)
            res = jnp.dot(x.astype(wds.dtype), wds[...],
                          preferred_element_type=jnp.float32) + bds[...]
            res = mask_valid(res, t_cur)
        else:
            res = x
        h, t1 = conv(x, w1, b1, d, t_cur, relu=True)
        h, t2 = conv(h, w2, b2, d, t1, relu=True)
        res_shift = shift_down(res, (K - 1) * d)              # zero-pad in time
        x = jnp.maximum(h + res_shift, 0.0)
        t_cur = t2

    # Final nn.Linear over the grown time axis, folded into ONE block-diagonal
    # matmul over all BN_TILE stripes (no transpose, no per-sample loop).
    w_blk, b_lin = next(it), next(it)
    out = jnp.dot(w_blk[...], x.astype(w_blk.dtype),
                  preferred_element_type=jnp.float32)         # (BN_TILE*out_ch, C_last)
    out = out + b_lin[...]
    o_ref[...] = out.astype(o_ref.dtype)


# ---------------------------------------------------------------------------
# Parameters + forward
# ---------------------------------------------------------------------------
def init_params(key, in_channels, out_channels, channel_size,
                num_timesteps_input, kernel_size=3):
    layer_num = len(channel_size)
    linear_num = cal_linear_num(layer_num, num_timesteps_input)

    k_iter = key

    def nxt():
        nonlocal k_iter
        k_iter, sub = jax.random.split(k_iter)
        return sub

    blocks = []
    c_in = in_channels
    for c_out in channel_size:
        blk = {
            "w1": 0.1 * jax.random.normal(nxt(), (kernel_size, c_in, c_out), jnp.float32),
            "b1": 0.1 * jax.random.normal(nxt(), (1, c_out), jnp.float32),
            "w2": 0.1 * jax.random.normal(nxt(), (kernel_size, c_out, c_out), jnp.float32),
            "b2": 0.1 * jax.random.normal(nxt(), (1, c_out), jnp.float32),
        }
        if c_in != c_out:  # 1x1 downsample on the residual path
            blk["w_ds"] = 0.1 * jax.random.normal(nxt(), (1, c_in, c_out), jnp.float32)
            blk["b_ds"] = 0.1 * jax.random.normal(nxt(), (1, c_out), jnp.float32)
        blocks.append(blk)
        c_in = c_out

    return {
        "blocks": blocks,
        "w_lin": 0.1 * jax.random.normal(nxt(), (out_channels, linear_num), jnp.float32),
        "b_lin": 0.1 * jax.random.normal(nxt(), (1, out_channels), jnp.float32),
        # TODO(synk): self.linear2 = nn.Linear(4, 3) is defined in __init__ but
        # never used in forward(); it is intentionally omitted.
    }


def tcn_forward(params, X, kernel_size=3, matmul_dtype=jnp.float32):
    """X: (B, N, C_in, T)  ->  (B, N, C_last, out_channels)  (matches PyTorch).

    matmul_dtype=jnp.bfloat16 halves matmul-operand traffic on v6e/v7x
    (accumulation stays f32); default f32 keeps bit-tight parity with the
    reference."""
    B, N, Cin, T = X.shape
    BN = B * N
    K = kernel_size
    blocks = params["blocks"]
    L = len(blocks)

    chans = [blk["w1"].shape[2] for blk in blocks]
    c_last = chans[-1]
    out_ch, lin_num = params["w_lin"].shape
    Tf = T + 2 * (K - 1) * (2 ** L - 1)          # grown time axis
    assert lin_num == Tf, (lin_num, Tf)

    padmax = (K - 1) * (2 ** (L - 1))            # largest symmetric pad
    off = padmax                                 # valid-data offset inside a stripe
    S = _round_up(off + Tf, 8)                   # stripe height (sublane friendly)

    bn_tile = _pick_bn_tile(BN)
    G = BN // bn_tile
    rt = bn_tile * S
    cmax = max([Cin] + chans)

    # ---- tiny host-side layout prep (one pass over the small raw input) ----
    x = jnp.transpose(X, (0, 1, 3, 2)).astype(matmul_dtype).reshape(BN, T, Cin)
    x = jnp.pad(x, ((0, 0), (off, S - off - T), (0, 0)))   # zero "stripes"
    x = x.reshape(G, rt, Cin)

    pos = jnp.tile(jnp.arange(S, dtype=jnp.int32), bn_tile).reshape(rt, 1)

    w_args, w_specs, block_cfg = [], [], []

    def add(arr, cast):
        arr = arr.astype(matmul_dtype if cast else jnp.float32)
        w_args.append(arr)
        w_specs.append(pl.BlockSpec(arr.shape, lambda g: (0, 0)))

    for i, blk in enumerate(blocks):
        d = 2 ** i
        _, c_in_b, c_out_b = blk["w1"].shape
        has_ds = "w_ds" in blk
        block_cfg.append((d, has_ds))
        add(blk["w1"].reshape(K * c_in_b, c_out_b), True)     # im2col weight
        add(blk["b1"], False)
        add(blk["w2"].reshape(K * c_out_b, c_out_b), True)
        add(blk["b2"], False)
        if has_ds:
            add(blk["w_ds"].reshape(c_in_b, c_out_b), True)
            add(blk["b_ds"], False)

    # Final Linear as one block-diagonal matmul over the bn_tile stripes.
    w_pad = jnp.zeros((out_ch, S), jnp.float32).at[:, off:off + Tf].set(
        params["w_lin"].astype(jnp.float32))
    w_blk = jnp.kron(jnp.eye(bn_tile, dtype=jnp.float32), w_pad)   # (bn_tile*out_ch, rt)
    add(w_blk, True)
    add(jnp.tile(params["b_lin"][0], bn_tile).reshape(bn_tile * out_ch, 1), False)

    kernel = functools.partial(
        _tcn_fused_kernel, block_cfg=tuple(block_cfg), T0=T, off=off, K=K,
        padmax=padmax)

    out = pl.pallas_call(
        kernel,
        out_shape=jax.ShapeDtypeStruct((G, bn_tile * out_ch, c_last), jnp.float32),
        grid=(G,),
        in_specs=[
            pl.BlockSpec((rt, 1), lambda g: (0, 0)),                # pos
            pl.BlockSpec((None, rt, Cin), lambda g: (g, 0, 0)),     # striped input
            *w_specs,
        ],
        out_specs=pl.BlockSpec((None, bn_tile * out_ch, c_last),
                               lambda g: (g, 0, 0)),
        scratch_shapes=[pltpu.VMEM((padmax + rt, K * cmax), matmul_dtype)],
        compiler_params=pltpu.CompilerParams(
            dimension_semantics=("parallel",),        # keeps both v7x cores busy
            vmem_limit_bytes=32 * 1024 * 1024),
    )(pos, x, *w_args)

    out = out.reshape(B, N, out_ch, c_last)          # (b, n, out_ch, c_last)
    return jnp.swapaxes(out, 2, 3)                   # (B, N, c_last, out_ch)


# ---------------------------------------------------------------------------
# Pure-JAX reference (same math, no Pallas) for numerical checking
# ---------------------------------------------------------------------------
def _ref_forward(params, X, kernel_size=3):
    x = jnp.transpose(X, (0, 1, 3, 2)).astype(jnp.float32)

    def conv(x_pad, w, b, d, relu, residual=None):
        K = w.shape[0]
        T_out = x_pad.shape[2] - (K - 1) * d
        acc = sum(jnp.einsum("bntc,cd->bntd",
                             x_pad[:, :, j * d:j * d + T_out, :], w[j])
                  for j in range(K)) + b[0]
        if relu:
            acc = jnp.maximum(acc, 0.0)
        if residual is not None:
            acc = jnp.maximum(acc + residual, 0.0)
        return acc

    for i, blk in enumerate(params["blocks"]):
        d = 2 ** i
        pad = (kernel_size - 1) * d
        res = conv(x, blk["w_ds"], blk["b_ds"], 1, False) if "w_ds" in blk else x
        res = jnp.pad(res, ((0, 0), (0, 0), (pad, pad), (0, 0)))
        h = conv(jnp.pad(x, ((0, 0), (0, 0), (pad, pad), (0, 0))),
                 blk["w1"], blk["b1"], d, True)
        x = conv(jnp.pad(h, ((0, 0), (0, 0), (pad, pad), (0, 0))),
                 blk["w2"], blk["b2"], d, True, residual=res)
    x_ct = jnp.swapaxes(x, 2, 3)
    return jnp.einsum("bnct,ot->bnco", x_ct, params["w_lin"]) + params["b_lin"][0]


if __name__ == "__main__":
    key = jax.random.PRNGKey(0)
    B, N, C_in, T = 2, 5, 4, 12            # small shapes consistent with the module
    channel_size = [8, 8]                  # layer_num = 2
    out_channels = 3

    k_x, k_p = jax.random.split(key)
    X = jax.random.normal(k_x, (B, N, C_in, T), jnp.float32)
    params = init_params(k_p, C_in, out_channels, channel_size, T, kernel_size=3)

    out = jax.block_until_ready(tcn_forward(params, X))
    expected_shape = (B, N, channel_size[-1], out_channels)
    assert out.shape == expected_shape, (out.shape, expected_shape)

    ref = jax.block_until_ready(_ref_forward(params, X))
    assert jnp.allclose(out, ref, atol=1e-4, rtol=1e-4), "mismatch vs JAX reference"

    print("KERNEL_OK")
</pallas_src>

<mosaic_0001>
module attributes {stable_mosaic.version = 11 : i64} {
  func.func @_tcn_fused_kernel(%arg0: i32, %arg1: memref<160x1xi32, #tpu.memory_space<vmem>>, %arg2: memref<1x160x4xf32, #tpu.memory_space<vmem>>, %arg3: memref<12x8xf32, #tpu.memory_space<vmem>>, %arg4: memref<1x8xf32, #tpu.memory_space<vmem>>, %arg5: memref<24x8xf32, #tpu.memory_space<vmem>>, %arg6: memref<1x8xf32, #tpu.memory_space<vmem>>, %arg7: memref<4x8xf32, #tpu.memory_space<vmem>>, %arg8: memref<1x8xf32, #tpu.memory_space<vmem>>, %arg9: memref<24x8xf32, #tpu.memory_space<vmem>>, %arg10: memref<1x8xf32, #tpu.memory_space<vmem>>, %arg11: memref<24x8xf32, #tpu.memory_space<vmem>>, %arg12: memref<1x8xf32, #tpu.memory_space<vmem>>, %arg13: memref<15x160xf32, #tpu.memory_space<vmem>>, %arg14: memref<15x1xf32, #tpu.memory_space<vmem>>, %arg15: memref<1x15x8xf32, #tpu.memory_space<vmem>>, %arg16: memref<164x24xf32, #tpu.memory_space<vmem>>) attributes {dimension_semantics = [#tpu.dimension_semantics<parallel>], iteration_bounds = array<i64: 2>, scalar_prefetch = 0 : i64, scratch_operands = 1 : i64, tpu.core_type = #tpu.core_type<tc>, window_params = [{pipeline_mode = #tpu.pipeline_mode<synchronous>, transform_indices = @transform_0, window_bounds = array<i64: 160, 1>}, {transform_indices = @transform_1, window_bounds = array<i64: 1, 160, 4>}, {pipeline_mode = #tpu.pipeline_mode<synchronous>, transform_indices = @transform_2, window_bounds = array<i64: 12, 8>}, {pipeline_mode = #tpu.pipeline_mode<synchronous>, transform_indices = @transform_3, window_bounds = array<i64: 1, 8>}, {pipeline_mode = #tpu.pipeline_mode<synchronous>, transform_indices = @transform_4, window_bounds = array<i64: 24, 8>}, {pipeline_mode = #tpu.pipeline_mode<synchronous>, transform_indices = @transform_5, window_bounds = array<i64: 1, 8>}, {pipeline_mode = #tpu.pipeline_mode<synchronous>, transform_indices = @transform_6, window_bounds = array<i64: 4, 8>}, {pipeline_mode = #tpu.pipeline_mode<synchronous>, transform_indices = @transform_7, window_bounds = array<i64: 1, 8>}, {pipeline_mode = #tpu.pipeline_mode<synchronous>, transform_indices = @transform_8, window_bounds = array<i64: 24, 8>}, {pipeline_mode = #tpu.pipeline_mode<synchronous>, transform_indices = @transform_9, window_bounds = array<i64: 1, 8>}, {pipeline_mode = #tpu.pipeline_mode<synchronous>, transform_indices = @transform_10, window_bounds = array<i64: 24, 8>}, {pipeline_mode = #tpu.pipeline_mode<synchronous>, transform_indices = @transform_11, window_bounds = array<i64: 1, 8>}, {pipeline_mode = #tpu.pipeline_mode<synchronous>, transform_indices = @transform_12, window_bounds = array<i64: 15, 160>}, {pipeline_mode = #tpu.pipeline_mode<synchronous>, transform_indices = @transform_13, window_bounds = array<i64: 15, 1>}, {transform_indices = @transform_14, window_bounds = array<i64: 1, 15, 8>}]} {
    %c0 = arith.constant 0 : index
    %c0_0 = arith.constant 0 : index
    %0 = vector.load %arg1[%c0, %c0_0] : memref<160x1xi32, #tpu.memory_space<vmem>>, vector<160x1xi32>
    %c0_1 = arith.constant 0 : index
    %c0_2 = arith.constant 0 : index
    %c0_3 = arith.constant 0 : index
    %1 = vector.load %arg2[%c0_1, %c0_2, %c0_3] : memref<1x160x4xf32, #tpu.memory_space<vmem>>, vector<1x160x4xf32>
    %2 = vector.shape_cast %1 : vector<1x160x4xf32> to vector<160x4xf32>
    %c0_4 = arith.constant 0 : index
    %c0_5 = arith.constant 0 : index
    %3 = vector.load %arg7[%c0_4, %c0_5] : memref<4x8xf32, #tpu.memory_space<vmem>>, vector<4x8xf32>
    %cst = arith.constant dense<0.000000e+00> : vector<160x8xf32>
    %4 = tpu.matmul %2, %3, %cst {dimension_numbers = #tpu.dot_dimension_numbers<[1], [0], [0], [1], [0, 0, 1, 1], [], []>} : vector<160x4xf32>, vector<4x8xf32>, vector<160x8xf32> -> vector<160x8xf32>
    %c0_6 = arith.constant 0 : index
    %c0_7 = arith.constant 0 : index
    %5 = vector.load %arg8[%c0_6, %c0_7] : memref<1x8xf32, #tpu.memory_space<vmem>>, vector<1x8xf32>
    %6 = vector.broadcast %5 : vector<1x8xf32> to vector<160x8xf32>
    %7 = arith.addf %4, %6 : vector<160x8xf32>
    %c4_i32 = arith.constant 4 : i32
    %8 = vector.broadcast %c4_i32 : i32 to vector<160x1xi32>
    %9 = arith.cmpi sge, %0, %8 : vector<160x1xi32>
    %c16_i32 = arith.constant 16 : i32
    %10 = vector.broadcast %c16_i32 : i32 to vector<160x1xi32>
    %11 = arith.cmpi slt, %0, %10 : vector<160x1xi32>
    %12 = arith.andi %9, %11 : vector<160x1xi1>
    %cst_8 = arith.constant 0.000000e+00 : f32
    %13 = vector.shape_cast %12 : vector<160x1xi1> to vector<160x1xi1>
    %14 = vector.broadcast %13 : vector<160x1xi1> to vector<160x8xi1>
    %15 = vector.broadcast %cst_8 : f32 to vector<160x8xf32>
    %16 = arith.select %14, %7, %15 : vector<160x8xi1>, vector<160x8xf32>
    %cst_9 = arith.constant 0.000000e+00 : f32
    %17 = vector.broadcast %cst_9 : f32 to vector<4x12xf32>
    %c0_10 = arith.constant 0 : index
    %c0_11 = arith.constant 0 : index
    %18 = vector.load %arg16[%c0_10, %c0_11] : memref<164x24xf32, #tpu.memory_space<vmem>>, vector<4x12xf32>
    tpu.vector_store %arg16[%c0_10, %c0_11], %17 {strides = array<i32>} : memref<164x24xf32, #tpu.memory_space<vmem>>, vector<4x12xf32>,
    %c2 = arith.constant 2 : index
    %c0_12 = arith.constant 0 : index
    %19 = vector.load %arg16[%c2, %c0_12] : memref<164x24xf32, #tpu.memory_space<vmem>>, vector<160x4xf32>
    tpu.vector_store %arg16[%c2, %c0_12], %2 {strides = array<i32>} : memref<164x24xf32, #tpu.memory_space<vmem>>, vector<160x4xf32>,
    %c1 = arith.constant 1 : index
    %c4 = arith.constant 4 : index
    %20 = vector.load %arg16[%c1, %c4] : memref<164x24xf32, #tpu.memory_space<vmem>>, vector<160x4xf32>
    tpu.vector_store %arg16[%c1, %c4], %2 {strides = array<i32>} : memref<164x24xf32, #tpu.memory_space<vmem>>, vector<160x4xf32>,
    %c0_13 = arith.constant 0 : index
    %c8 = arith.constant 8 : index
    %21 = vector.load %arg16[%c0_13, %c8] : memref<164x24xf32, #tpu.memory_space<vmem>>, vector<160x4xf32>
    tpu.vector_store %arg16[%c0_13, %c8], %2 {strides = array<i32>} : memref<164x24xf32, #tpu.memory_space<vmem>>, vector<160x4xf32>,
    %c0_14 = arith.constant 0 : index
    %c0_15 = arith.constant 0 : index
    %22 = vector.load %arg16[%c0_14, %c0_15] : memref<164x24xf32, #tpu.memory_space<vmem>>, vector<160x12xf32>
    %c0_16 = arith.constant 0 : index
    %c0_17 = arith.constant 0 : index
    %23 = vector.load %arg3[%c0_16, %c0_17] : memref<12x8xf32, #tpu.memory_space<vmem>>, vector<12x8xf32>
    %cst_18 = arith.constant dense<0.000000e+00> : vector<160x8xf32>
    %24 = tpu.matmul %22, %23, %cst_18 {dimension_numbers = #tpu.dot_dimension_numbers<[1], [0], [0], [1], [0, 0, 1, 1], [], []>} : vector<160x12xf32>, vector<12x8xf32>, vector<160x8xf32> -> vector<160x8xf32>
    %c0_19 = arith.constant 0 : index
    %c0_20 = arith.constant 0 : index
    %25 = vector.load %arg4[%c0_19, %c0_20] : memref<1x8xf32, #tpu.memory_space<vmem>>, vector<1x8xf32>
    %26 = vector.broadcast %25 : vector<1x8xf32> to vector<160x8xf32>
    %27 = arith.addf %24, %26 : vector<160x8xf32>
    %cst_21 = arith.constant 0.000000e+00 : f32
    %28 = vector.broadcast %cst_21 : f32 to vector<160x8xf32>
    %29 = arith.maximumf %27, %28 : vector<160x8xf32>
    %c4_i32_22 = arith.constant 4 : i32
    %30 = vector.broadcast %c4_i32_22 : i32 to vector<160x1xi32>
    %31 = arith.cmpi sge, %0, %30 : vector<160x1xi32>
    %c18_i32 = arith.constant 18 : i32
    %32 = vector.broadcast %c18_i32 : i32 to vector<160x1xi32>
    %33 = arith.cmpi slt, %0, %32 : vector<160x1xi32>
    %34 = arith.andi %31, %33 : vector<160x1xi1>
    %cst_23 = arith.constant 0.000000e+00 : f32
    %35 = vector.shape_cast %34 : vector<160x1xi1> to vector<160x1xi1>
    %36 = vector.broadcast %35 : vector<160x1xi1> to vector<160x8xi1>
    %37 = vector.broadcast %cst_23 : f32 to vector<160x8xf32>
    %38 = arith.select %36, %29, %37 : vector<160x8xi1>, vector<160x8xf32>
    %cst_24 = arith.constant 0.000000e+00 : f32
    %39 = vector.broadcast %cst_24 : f32 to vector<4x24xf32>
    %c0_25 = arith.constant 0 : index
    %c0_26 = arith.constant 0 : index
    %40 = vector.load %arg16[%c0_25, %c0_26] : memref<164x24xf32, #tpu.memory_space<vmem>>, vector<4x24xf32>
    tpu.vector_store %arg16[%c0_25, %c0_26], %39 {strides = array<i32>} : memref<164x24xf32, #tpu.memory_space<vmem>>, vector<4x24xf32>,
    %c2_27 = arith.constant 2 : index
    %c0_28 = arith.constant 0 : index
    %41 = vector.load %arg16[%c2_27, %c0_28] : memref<164x24xf32, #tpu.memory_space<vmem>>, vector<160x8xf32>
    tpu.vector_store %arg16[%c2_27, %c0_28], %38 {strides = array<i32>} : memref<164x24xf32, #tpu.memory_space<vmem>>, vector<160x8xf32>,
    %c1_29 = arith.constant 1 : index
    %c8_30 = arith.constant 8 : index
    %42 = vector.load %arg16[%c1_29, %c8_30] : memref<164x24xf32, #tpu.memory_space<vmem>>, vector<160x8xf32>
    tpu.vector_store %arg16[%c1_29, %c8_30], %38 {strides = array<i32>} : memref<164x24xf32, #tpu.memory_space<vmem>>, vector<160x8xf32>,
    %c0_31 = arith.constant 0 : index
    %c16 = arith.constant 16 : index
    %43 = vector.load %arg16[%c0_31, %c16] : memref<164x24xf32, #tpu.memory_space<vmem>>, vector<160x8xf32>
    tpu.vector_store %arg16[%c0_31, %c16], %38 {strides = array<i32>} : memref<164x24xf32, #tpu.memory_space<vmem>>, vector<160x8xf32>,
    %c0_32 = arith.constant 0 : index
    %c0_33 = arith.constant 0 : index
    %44 = vector.load %arg16[%c0_32, %c0_33] : memref<164x24xf32, #tpu.memory_space<vmem>>, vector<160x24xf32>
    %c0_34 = arith.constant 0 : index
    %c0_35 = arith.constant 0 : index
    %45 = vector.load %arg5[%c0_34, %c0_35] : memref<24x8xf32, #tpu.memory_space<vmem>>, vector<24x8xf32>
    %cst_36 = arith.constant dense<0.000000e+00> : vector<160x8xf32>
    %46 = tpu.matmul %44, %45, %cst_36 {dimension_numbers = #tpu.dot_dimension_numbers<[1], [0], [0], [1], [0, 0, 1, 1], [], []>} : vector<160x24xf32>, vector<24x8xf32>, vector<160x8xf32> -> vector<160x8xf32>
    %c0_37 = arith.constant 0 : index
    %c0_38 = arith.constant 0 : index
    %47 = vector.load %arg6[%c0_37, %c0_38] : memref<1x8xf32, #tpu.memory_space<vmem>>, vector<1x8xf32>
    %48 = vector.broadcast %47 : vector<1x8xf32> to vector<160x8xf32>
    %49 = arith.addf %46, %48 : vector<160x8xf32>
    %cst_39 = arith.constant 0.000000e+00 : f32
    %50 = vector.broadcast %cst_39 : f32 to vector<160x8xf32>
    %51 = arith.maximumf %49, %50 : vector<160x8xf32>
    %c4_i32_40 = arith.constant 4 : i32
    %52 = vector.broadcast %c4_i32_40 : i32 to vector<160x1xi32>
    %53 = arith.cmpi sge, %0, %52 : vector<160x1xi32>
    %c20_i32 = arith.constant 20 : i32
    %54 = vector.broadcast %c20_i32 : i32 to vector<160x1xi32>
    %55 = arith.cmpi slt, %0, %54 : vector<160x1xi32>
    %56 = arith.andi %53, %55 : vector<160x1xi1>
    %cst_41 = arith.constant 0.000000e+00 : f32
    %57 = vector.shape_cast %56 : vector<160x1xi1> to vector<160x1xi1>
    %58 = vector.broadcast %57 : vector<160x1xi1> to vector<160x8xi1>
    %59 = vector.broadcast %cst_41 : f32 to vector<160x8xf32>
    %60 = arith.select %58, %51, %59 : vector<160x8xi1>, vector<160x8xf32>
    %cst_42 = arith.constant 0.000000e+00 : f32
    %61 = vector.broadcast %cst_42 : f32 to vector<4x8xf32>
    %c0_43 = arith.constant 0 : index
    %c0_44 = arith.constant 0 : index
    %62 = vector.load %arg16[%c0_43, %c0_44] : memref<164x24xf32, #tpu.memory_space<vmem>>, vector<4x8xf32>
    tpu.vector_store %arg16[%c0_43, %c0_44], %61 {strides = array<i32>} : memref<164x24xf32, #tpu.memory_space<vmem>>, vector<4x8xf32>,
    %c2_45 = arith.constant 2 : index
    %c0_46 = arith.constant 0 : index
    %63 = vector.load %arg16[%c2_45, %c0_46] : memref<164x24xf32, #tpu.memory_space<vmem>>, vector<160x8xf32>
    tpu.vector_store %arg16[%c2_45, %c0_46], %16 {strides = array<i32>} : memref<164x24xf32, #tpu.memory_space<vmem>>, vector<160x8xf32>,
    %c0_47 = arith.constant 0 : index
    %c0_48 = arith.constant 0 : index
    %64 = vector.load %arg16[%c0_47, %c0_48] : memref<164x24xf32, #tpu.memory_space<vmem>>, vector<160x8xf32>
    %65 = arith.addf %60, %64 : vector<160x8xf32>
    %cst_49 = arith.constant 0.000000e+00 : f32
    %66 = vector.broadcast %cst_49 : f32 to vector<160x8xf32>
    %67 = arith.maximumf %65, %66 : vector<160x8xf32>
    %cst_50 = arith.constant 0.000000e+00 : f32
    %68 = vector.broadcast %cst_50 : f32 to vector<4x24xf32>
    %c0_51 = arith.constant 0 : index
    %c0_52 = arith.constant 0 : index
    %69 = vector.load %arg16[%c0_51, %c0_52] : memref<164x24xf32, #tpu.memory_space<vmem>>, vector<4x24xf32>
    tpu.vector_store %arg16[%c0_51, %c0_52], %68 {strides = array<i32>} : memref<164x24xf32, #tpu.memory_space<vmem>>, vector<4x24xf32>,
    %c4_53 = arith.constant 4 : index
    %c0_54 = arith.constant 0 : index
    %70 = vector.load %arg16[%c4_53, %c0_54] : memref<164x24xf32, #tpu.memory_space<vmem>>, vector<160x8xf32>
    tpu.vector_store %arg16[%c4_53, %c0_54], %67 {strides = array<i32>} : memref<164x24xf32, #tpu.memory_space<vmem>>, vector<160x8xf32>,
    %c2_55 = arith.constant 2 : index
    %c8_56 = arith.constant 8 : index
    %71 = vector.load %arg16[%c2_55, %c8_56] : memref<164x24xf32, #tpu.memory_space<vmem>>, vector<160x8xf32>
    tpu.vector_store %arg16[%c2_55, %c8_56], %67 {strides = array<i32>} : memref<164x24xf32, #tpu.memory_space<vmem>>, vector<160x8xf32>,
    %c0_57 = arith.constant 0 : index
    %c16_58 = arith.constant 16 : index
    %72 = vector.load %arg16[%c0_57, %c16_58] : memref<164x24xf32, #tpu.memory_space<vmem>>, vector<160x8xf32>
    tpu.vector_store %arg16[%c0_57, %c16_58], %67 {strides = array<i32>} : memref<164x24xf32, #tpu.memory_space<vmem>>, vector<160x8xf32>,
    %c0_59 = arith.constant 0 : index
    %c0_60 = arith.constant 0 : index
    %73 = vector.load %arg16[%c0_59, %c0_60] : memref<164x24xf32, #tpu.memory_space<vmem>>, vector<160x24xf32>
    %c0_61 = arith.constant 0 : index
    %c0_62 = arith.constant 0 : index
    %74 = vector.load %arg9[%c0_61, %c0_62] : memref<24x8xf32, #tpu.memory_space<vmem>>, vector<24x8xf32>
    %cst_63 = arith.constant dense<0.000000e+00> : vector<160x8xf32>
    %75 = tpu.matmul %73, %74, %cst_63 {dimension_numbers = #tpu.dot_dimension_numbers<[1], [0], [0], [1], [0, 0, 1, 1], [], []>} : vector<160x24xf32>, vector<24x8xf32>, vector<160x8xf32> -> vector<160x8xf32>
    %c0_64 = arith.constant 0 : index
    %c0_65 = arith.constant 0 : index
    %76 = vector.load %arg10[%c0_64, %c0_65] : memref<1x8xf32, #tpu.memory_space<vmem>>, vector<1x8xf32>
    %77 = vector.broadcast %76 : vector<1x8xf32> to vector<160x8xf32>
    %78 = arith.addf %75, %77 : vector<160x8xf32>
    %cst_66 = arith.constant 0.000000e+00 : f32
    %79 = vector.broadcast %cst_66 : f32 to vector<160x8xf32>
    %80 = arith.maximumf %78, %79 : vector<160x8xf32>
    %c4_i32_67 = arith.constant 4 : i32
    %81 = vector.broadcast %c4_i32_67 : i32 to vector<160x1xi32>
    %82 = arith.cmpi sge, %0, %81 : vector<160x1xi32>
    %c24_i32 = arith.constant 24 : i32
    %83 = vector.broadcast %c24_i32 : i32 to vector<160x1xi32>
    %84 = arith.cmpi slt, %0, %83 : vector<160x1xi32>
    %85 = arith.andi %82, %84 : vector<160x1xi1>
    %cst_68 = arith.constant 0.000000e+00 : f32
    %86 = vector.shape_cast %85 : vector<160x1xi1> to vector<160x1xi1>
    %87 = vector.broadcast %86 : vector<160x1xi1> to vector<160x8xi1>
    %88 = vector.broadcast %cst_68 : f32 to vector<160x8xf32>
    %89 = arith.select %87, %80, %88 : vector<160x8xi1>, vector<160x8xf32>
    %cst_69 = arith.constant 0.000000e+00 : f32
    %90 = vector.broadcast %cst_69 : f32 to vector<4x24xf32>
    %c0_70 = arith.constant 0 : index
    %c0_71 = arith.constant 0 : index
    %91 = vector.load %arg16[%c0_70, %c0_71] : memref<164x24xf32, #tpu.memory_space<vmem>>, vector<4x24xf32>
    tpu.vector_store %arg16[%c0_70, %c0_71], %90 {strides = array<i32>} : memref<164x24xf32, #tpu.memory_space<vmem>>, vector<4x24xf32>,
    %c4_72 = arith.constant 4 : index
    %c0_73 = arith.constant 0 : index
    %92 = vector.load %arg16[%c4_72, %c0_73] : memref<164x24xf32, #tpu.memory_space<vmem>>, vector<160x8xf32>
    tpu.vector_store %arg16[%c4_72, %c0_73], %89 {strides = array<i32>} : memref<164x24xf32, #tpu.memory_space<vmem>>, vector<160x8xf32>,
    %c2_74 = arith.constant 2 : index
    %c8_75 = arith.constant 8 : index
    %93 = vector.load %arg16[%c2_74, %c8_75] : memref<164x24xf32, #tpu.memory_space<vmem>>, vector<160x8xf32>
    tpu.vector_store %arg16[%c2_74, %c8_75], %89 {strides = array<i32>} : memref<164x24xf32, #tpu.memory_space<vmem>>, vector<160x8xf32>,
    %c0_76 = arith.constant 0 : index
    %c16_77 = arith.constant 16 : index
    %94 = vector.load %arg16[%c0_76, %c16_77] : memref<164x24xf32, #tpu.memory_space<vmem>>, vector<160x8xf32>
    tpu.vector_store %arg16[%c0_76, %c16_77], %89 {strides = array<i32>} : memref<164x24xf32, #tpu.memory_space<vmem>>, vector<160x8xf32>,
    %c0_78 = arith.constant 0 : index
    %c0_79 = arith.constant 0 : index
    %95 = vector.load %arg16[%c0_78, %c0_79] : memref<164x24xf32, #tpu.memory_space<vmem>>, vector<160x24xf32>
    %c0_80 = arith.constant 0 : index
    %c0_81 = arith.constant 0 : index
    %96 = vector.load %arg11[%c0_80, %c0_81] : memref<24x8xf32, #tpu.memory_space<vmem>>, vector<24x8xf32>
    %cst_82 = arith.constant dense<0.000000e+00> : vector<160x8xf32>
    %97 = tpu.matmul %95, %96, %cst_82 {dimension_numbers = #tpu.dot_dimension_numbers<[1], [0], [0], [1], [0, 0, 1, 1], [], []>} : vector<160x24xf32>, vector<24x8xf32>, vector<160x8xf32> -> vector<160x8xf32>
    %c0_83 = arith.constant 0 : index
    %c0_84 = arith.constant 0 : index
    %98 = vector.load %arg12[%c0_83, %c0_84] : memref<1x8xf32, #tpu.memory_space<vmem>>, vector<1x8xf32>
    %99 = vector.broadcast %98 : vector<1x8xf32> to vector<160x8xf32>
    %100 = arith.addf %97, %99 : vector<160x8xf32>
    %cst_85 = arith.constant 0.000000e+00 : f32
    %101 = vector.broadcast %cst_85 : f32 to vector<160x8xf32>
    %102 = arith.maximumf %100, %101 : vector<160x8xf32>
    %c4_i32_86 = arith.constant 4 : i32
    %103 = vector.broadcast %c4_i32_86 : i32 to vector<160x1xi32>
    %104 = arith.cmpi sge, %0, %103 : vector<160x1xi32>
    %c28_i32 = arith.constant 28 : i32
    %105 = vector.broadcast %c28_i32 : i32 to vector<160x1xi32>
    %106 = arith.cmpi slt, %0, %105 : vector<160x1xi32>
    %107 = arith.andi %104, %106 : vector<160x1xi1>
    %cst_87 = arith.constant 0.000000e+00 : f32
    %108 = vector.shape_cast %107 : vector<160x1xi1> to vector<160x1xi1>
    %109 = vector.broadcast %108 : vector<160x1xi1> to vector<160x8xi1>
    %110 = vector.broadcast %cst_87 : f32 to vector<160x8xf32>
    %111 = arith.select %109, %102, %110 : vector<160x8xi1>, vector<160x8xf32>
    %cst_88 = arith.constant 0.000000e+00 : f32
    %112 = vector.broadcast %cst_88 : f32 to vector<4x8xf32>
    %c0_89 = arith.constant 0 : index
    %c0_90 = arith.constant 0 : index
    %113 = vector.load %arg16[%c0_89, %c0_90] : memref<164x24xf32, #tpu.memory_space<vmem>>, vector<4x8xf32>
    tpu.vector_store %arg16[%c0_89, %c0_90], %112 {strides = array<i32>} : memref<164x24xf32, #tpu.memory_space<vmem>>, vector<4x8xf32>,
    %c4_91 = arith.constant 4 : index
    %c0_92 = arith.constant 0 : index
    %114 = vector.load %arg16[%c4_91, %c0_92] : memref<164x24xf32, #tpu.memory_space<vmem>>, vector<160x8xf32>
    tpu.vector_store %arg16[%c4_91, %c0_92], %67 {strides = array<i32>} : memref<164x24xf32, #tpu.memory_space<vmem>>, vector<160x8xf32>,
    %c0_93 = arith.constant 0 : index
    %c0_94 = arith.constant 0 : index
    %115 = vector.load %arg16[%c0_93, %c0_94] : memref<164x24xf32, #tpu.memory_space<vmem>>, vector<160x8xf32>
    %116 = arith.addf %111, %115 : vector<160x8xf32>
    %cst_95 = arith.constant 0.000000e+00 : f32
    %117 = vector.broadcast %cst_95 : f32 to vector<160x8xf32>
    %118 = arith.maximumf %116, %117 : vector<160x8xf32>
    %c0_96 = arith.constant 0 : index
    %c0_97 = arith.constant 0 : index
    %119 = vector.load %arg13[%c0_96, %c0_97] : memref<15x160xf32, #tpu.memory_space<vmem>>, vector<15x160xf32>
    %cst_98 = arith.constant dense<0.000000e+00> : vector<15x8xf32>
    %120 = tpu.matmul %119, %118, %cst_98 {dimension_numbers = #tpu.dot_dimension_numbers<[1], [0], [0], [1], [0, 0, 1, 1], [], []>} : vector<15x160xf32>, vector<160x8xf32>, vector<15x8xf32> -> vector<15x8xf32>
    %c0_99 = arith.constant 0 : index
    %c0_100 = arith.constant 0 : index
    %121 = vector.load %arg14[%c0_99, %c0_100] : memref<15x1xf32, #tpu.memory_space<vmem>>, vector<15x1xf32>
    %122 = vector.broadcast %121 : vector<15x1xf32> to vector<15x8xf32>
    %123 = arith.addf %120, %122 : vector<15x8xf32>
    %c0_101 = arith.constant 0 : index
    %c0_102 = arith.constant 0 : index
    %c0_103 = arith.constant 0 : index
    %124 = vector.load %arg15[%c0_101, %c0_102, %c0_103] : memref<1x15x8xf32, #tpu.memory_space<vmem>>, vector<1x15x8xf32>
    %125 = vector.shape_cast %124 : vector<1x15x8xf32> to vector<15x8xf32>
    %126 = vector.shape_cast %123 : vector<15x8xf32> to vector<1x15x8xf32>
    tpu.vector_store %arg15[%c0_101, %c0_102, %c0_103], %126 {strides = array<i32>} : memref<1x15x8xf32, #tpu.memory_space<vmem>>, vector<1x15x8xf32>,
    return
  }
  func.func @transform_0(%arg0: i32) -> (i32, i32) {
    %c0_i32 = arith.constant 0 : i32
    %c0_i32_0 = arith.constant 0 : i32
    %c0_i32_1 = arith.constant 0 : i32
    return %c0_i32, %c0_i32_0 : i32, i32
  }
  func.func @transform_1(%arg0: i32) -> (i32, i32, i32) {
    %c0_i32 = arith.constant 0 : i32
    %c0_i32_0 = arith.constant 0 : i32
    %c0_i32_1 = arith.constant 0 : i32
    return %arg0, %c0_i32, %c0_i32_0 : i32, i32, i32
  }
  func.func @transform_2(%arg0: i32) -> (i32, i32) {
    %c0_i32 = arith.constant 0 : i32
    %c0_i32_0 = arith.constant 0 : i32
    %c0_i32_1 = arith.constant 0 : i32
    return %c0_i32, %c0_i32_0 : i32, i32
  }
  func.func @transform_3(%arg0: i32) -> (i32, i32) {
    %c0_i32 = arith.constant 0 : i32
    %c0_i32_0 = arith.constant 0 : i32
    %c0_i32_1 = arith.constant 0 : i32
    return %c0_i32, %c0_i32_0 : i32, i32
  }
  func.func @transform_4(%arg0: i32) -> (i32, i32) {
    %c0_i32 = arith.constant 0 : i32
    %c0_i32_0 = arith.constant 0 : i32
    %c0_i32_1 = arith.constant 0 : i32
    return %c0_i32, %c0_i32_0 : i32, i32
  }
  func.func @transform_5(%arg0: i32) -> (i32, i32) {
    %c0_i32 = arith.constant 0 : i32
    %c0_i32_0 = arith.constant 0 : i32
    %c0_i32_1 = arith.constant 0 : i32
    return %c0_i32, %c0_i32_0 : i32, i32
  }
  func.func @transform_6(%arg0: i32) -> (i32, i32) {
    %c0_i32 = arith.constant 0 : i32
    %c0_i32_0 = arith.constant 0 : i32
    %c0_i32_1 = arith.constant 0 : i32
    return %c0_i32, %c0_i32_0 : i32, i32
  }
  func.func @transform_7(%arg0: i32) -> (i32, i32) {
    %c0_i32 = arith.constant 0 : i32
    %c0_i32_0 = arith.constant 0 : i32
    %c0_i32_1 = arith.constant 0 : i32
    return %c0_i32, %c0_i32_0 : i32, i32
  }
  func.func @transform_8(%arg0: i32) -> (i32, i32) {
    %c0_i32 = arith.constant 0 : i32
    %c0_i32_0 = arith.constant 0 : i32
    %c0_i32_1 = arith.constant 0 : i32
    return %c0_i32, %c0_i32_0 : i32, i32
  }
  func.func @transform_9(%arg0: i32) -> (i32, i32) {
    %c0_i32 = arith.constant 0 : i32
    %c0_i32_0 = arith.constant 0 : i32
    %c0_i32_1 = arith.constant 0 : i32
    return %c0_i32, %c0_i32_0 : i32, i32
  }
  func.func @transform_10(%arg0: i32) -> (i32, i32) {
    %c0_i32 = arith.constant 0 : i32
    %c0_i32_0 = arith.constant 0 : i32
    %c0_i32_1 = arith.constant 0 : i32
    return %c0_i32, %c0_i32_0 : i32, i32
  }
  func.func @transform_11(%arg0: i32) -> (i32, i32) {
    %c0_i32 = arith.constant 0 : i32
    %c0_i32_0 = arith.constant 0 : i32
    %c0_i32_1 = arith.constant 0 : i32
    return %c0_i32, %c0_i32_0 : i32, i32
  }
  func.func @transform_12(%arg0: i32) -> (i32, i32) {
    %c0_i32 = arith.constant 0 : i32
    %c0_i32_0 = arith.constant 0 : i32
    %c0_i32_1 = arith.constant 0 : i32
    return %c0_i32, %c0_i32_0 : i32, i32
  }
  func.func @transform_13(%arg0: i32) -> (i32, i32) {
    %c0_i32 = arith.constant 0 : i32
    %c0_i32_0 = arith.constant 0 : i32
    %c0_i32_1 = arith.constant 0 : i32
    return %c0_i32, %c0_i32_0 : i32, i32
  }
  func.func @transform_14(%arg0: i32) -> (i32, i32, i32) {
    %c0_i32 = arith.constant 0 : i32
    %c0_i32_0 = arith.constant 0 : i32
    %c0_i32_1 = arith.constant 0 : i32
    return %arg0, %c0_i32, %c0_i32_0 : i32, i32, i32
  }
}

</mosaic_0001>

<bundles_post_ra>
// kernel: tpu_custom_call.1
= control target key start
LH: loop header
LB: loop body
LE: loop exit
PB: predicated region body
PF: predicated region fallthrough
CT: control target
= control target key end

     0   :  { %s4319_s29 = smov 0   ;;  %s6089_s0 = inlined_call_operand.vmem [shape: s32[160,1], index: 0, kind: input, shape index: {}]   ;;  %s6090_s1 = inlined_call_operand.vmem [shape: f32[2,160,4], index: 1, kind: input, shape index: {}]   ;;  %s6091_s2 = inlined_call_operand.vmem [shape: f32[12,8], index: 2, kind: input, shape index: {}]   ;;  %s6092_s3 = inlined_call_operand.vmem [shape: f32[1,8], index: 3, kind: input, shape index: {}]   ;;  %s6093_s4 = inlined_call_operand.vmem [shape: f32[24,8], index: 4, kind: input, shape index: {}]   ;;  %s6094_s5 = inlined_call_operand.vmem [shape: f32[1,8], index: 5, kind: input, shape index: {}]   ;;  %s6095_s6 = inlined_call_operand.vmem [shape: f32[4,8], index: 6, kind: input, shape index: {}]   ;;  %s6096_s7 = inlined_call_operand.vmem [shape: f32[1,8], index: 7, kind: input, shape index: {}]   ;;  %s6097_s8 = inlined_call_operand.vmem [shape: f32[24,8], index: 8, kind: input, shape index: {}]   ;;  %s6098_s9 = inlined_call_operand.vmem [shape: f32[1,8], index: 9, kind: input, shape index: {}]   ;;  %s6099_s10 = inlined_call_operand.vmem [shape: f32[24,8], index: 10, kind: input, shape index: {}]   ;;  %s6100_s11 = inlined_call_operand.vmem [shape: f32[1,8], index: 11, kind: input, shape index: {}]   ;;  %s6101_s12 = inlined_call_operand.vmem [shape: f32[15,160], index: 12, kind: input, shape index: {}]   ;;  %s6102_s13 = inlined_call_operand.vmem [shape: f32[15,1], index: 13, kind: input, shape index: {}]   ;;  %s6103_s14 = inlined_call_operand.vmem [shape: f32[2,15,8], index: 14, kind: output, shape index: {}]  }
   0x1 LB: > { %s3780_s30 = sadd.s32 4294967295, %s4237_s29   ;;  %p3784_p0 = scmp.ge.s32.totalorder %s4237_s29, 1  ;;  %s4237_s29 = sphi %s4319_s29, %s24_s29  }
   0x2   : > { %p412_p1 = scmp.lt.s32.totalorder %s4237_s29, 3 }
   0x4   : > { %p413_p2 = pnand %p3784_p0, %p412_p1 }
   0x6   : > { %416 = sbr.rel (%p413_p2) target bundleno = 1632 (0x660), region = 76 }
   0xb   : > { %p458_p3 = scmp.lt.s32.totalorder %s3780_s30, 1  ;;  %v508_v0 = vld [vmem:[%s6095_s6] sm:$0xf]  ;;  %vm577_vm0 = vcmask 1043456   ;;  %v4334_v1 = vld [vmem:[%s6091_s2 + $0x8] sm:$0xf] }
   0xc   : > { %4186 = vmatprep.subr.msk.mxu1 %vm577_vm0, %v508_v0  ;;  %vm926_vm1 = vcmask 93184   ;;  %4012 = vmatprep.subr.msk.mxu0 %vm577_vm0, %v508_v0  ;;  %v6123_v2 = vmov 0.0   ;;  %vm516_vm2 = vcmask 31744   ;;  %s4240_s23 = smov 4   ;;  %s4241_s24 = smov 8   ;;  %v1130_v23 = vld [vmem:[%s6091_s2] sm:$0xff] }
   0xd   : > { %s6319_s30 = smov (!%p458_p3, %s3780_s30), 1  ;;  %4187 = vmatpush3.msk.msra.mxu1 %vm577_vm0, %v508_v0  ;;  %927 = vst.msk [vmem:[#allocation2] sm:$0xf] %vm926_vm1, %v6123_v2  ;;  %4013 = vmatpush3.msk.msra.mxu0 %vm577_vm0, %v508_v0  ;;  %v6131_v24 = vmov 0   ;;  %v4544_v25 = vld [vmem:[%s6089_s0] sm:$0xff]  ;;  %v4553_v26 = vld [vmem:[%s6089_s0 + $0x8] sm:$0xff] }
   0xe   : > { %4044 = vmatprep.subr.msk.mxu1 %vm577_vm0, %v4334_v1  ;;  %s4188_s19 = smul.u32 160, %s6319_s30  ;;  %4202 = vset.pattern.permute.xlu0 %v6131_v24  ;;  %vm6119_vm3 = vcmp.ge.s32.totalorder %v4544_v25, 4  ;;  %vm1388_vm4 = vcmp.lt.s32.totalorder %v4544_v25, 18  ;;  %vm6122_vm5 = vcmp.ge.s32.totalorder %v4553_v26, 4  ;;  %vm1389_vm6 = vcmp.lt.s32.totalorder %v4553_v26, 18  ;;  %v4562_v27 = vld [vmem:[%s6089_s0 + $0x18] sm:$0xff] }
   0xf   : > { %4203 = vset.pattern.permute.xlu1 %v6131_v24  ;;  %v4571_v28 = vld [vmem:[%s6089_s0 + $0x10] sm:$0xff]  ;;  %vm1408_vm7 = vmand %vm6119_vm3, %vm1388_vm4  ;;  %vm6121_vm9 = vcmp.ge.s32.totalorder %v4562_v27, 4  ;;  %vm1391_vm10 = vcmp.lt.s32.totalorder %v4562_v27, 18  ;;  %v4584_v29 = vld [vmem:[%s6089_s0 + $0x28] sm:$0xff] }
  0x10   : > { %s4348_s22 = scalar_lea.vmem %s6090_s1, %s4188_s19  ;;  %vm1409_vm8 = vmand %vm6122_vm5, %vm1389_vm6  ;;  %vm6120_vm11 = vcmp.ge.s32.totalorder %v4571_v28, 4  ;;  %vm1390_vm12 = vcmp.lt.s32.totalorder %v4571_v28, 18  ;;  %v4593_v30 = vld [vmem:[%s6089_s0 + $0x20] sm:$0xff]  ;;  %v1428_v31 = vsel %vm1408_vm7, 1, %v6131_v24  ;;  %vm6104_vm15 = vcmp.ge.s32.totalorder %v4584_v29, 4  ;;  %v4608_v33 = vld [vmem:[%s6089_s0 + $0x38] sm:$0xff] }
  0x11   : > { %v488_v3 = vld [vmem:[%s4348_s22] sm:$0xff]  ;;  %v489_v4 = vld [vmem:[%s4348_s22 + $0x8] sm:$0xff]  ;;  %v490_v5 = vld [vmem:[%s4348_s22 + $0x10] sm:$0xff]  ;;  %v1429_v32 = vsel %vm1409_vm8, 1, %v6131_v24  ;;  %vm6105_vm1 = vcmp.ge.s32.totalorder %v4593_v30, 4  ;;  %vm6106_vm7 = vcmp.ge.s32.totalorder %v4608_v33, 4 }
  0x12   : > { %948 = vrot.lane.b32.xlu0 %v488_v3, %s4240_s23  ;;  %1029 = vrot.lane.b32.xlu1 %v488_v3, %s4241_s24  ;;  %v491_v6 = vld [vmem:[%s4348_s22 + $0x18] sm:$0xff]  ;;  %v4357_v7 = vld [vmem:[%s4348_s22 + $0x20] sm:$0xff]  ;;  %929 = vst.msk [vmem:[#allocation2 + $0xa] sm:$0xff] %vm516_vm2, %v489_v4  ;;  %930 = vst.msk [vmem:[#allocation2 + $0x12] sm:$0xff] %vm516_vm2, %v490_v5  ;;  %vm1395_vm8 = vcmp.lt.s32.totalorder %v4608_v33, 18 }
  0x13   : > { %928 = vst.msk [vmem:[#allocation2 + $0x2] sm:$0xff] %vm516_vm2, %v488_v3  ;;  %v4363_v8 = vld [vmem:[%s4348_s22 + $0x28] sm:$0xff]  ;;  %v4366_v9 = vld [vmem:[%s4348_s22 + $0x30] sm:$0xff]  ;;  %v4369_v10 = vld [vmem:[%s4348_s22 + $0x38] sm:$0xff]  ;;  %4014 = vmatprep.mubr.msk.f32.mxu0 %vm516_vm2, %v488_v3 }
  0x14   : > { %931 = vst.msk [vmem:[#allocation2 + $0x1a] sm:$0xff] %vm516_vm2, %v491_v6  ;;  %932 = vst.msk [vmem:[#allocation2 + $0x22] sm:$0xff] %vm516_vm2, %v4357_v7  ;;  %v4376_v11 = vld [vmem:[%s4348_s22 + $0x40] sm:$0xff]  ;;  %v4379_v12 = vld [vmem:[%s4348_s22 + $0x48] sm:$0xff]  ;;  %4015 = vmatmul.mubr.msk.f32.vlgmr.msra.gmra.mxu0 %vm516_vm2, %v489_v4 }
  0x15   : > { %v4382_v13 = vld [vmem:[%s4348_s22 + $0x50] sm:$0xff]  ;;  %933 = vst.msk [vmem:[#allocation2 + $0x2a] sm:$0xff] %vm516_vm2, %v4363_v8  ;;  %934 = vst.msk [vmem:[#allocation2 + $0x32] sm:$0xff] %vm516_vm2, %v4366_v9  ;;  %v4392_v14 = vld [vmem:[%s4348_s22 + $0x58] sm:$0xff]  ;;  %4017 = vmatprep.mubr.msk.f32.mxu0 %vm516_vm2, %v490_v5 }
  0x16   : > { %935 = vst.msk [vmem:[#allocation2 + $0x3a] sm:$0xff] %vm516_vm2, %v4369_v10  ;;  %v4395_v15 = vld [vmem:[%s4348_s22 + $0x60] sm:$0xff]  ;;  %v4398_v16 = vld [vmem:[%s4348_s22 + $0x68] sm:$0xff]  ;;  %936 = vst.msk [vmem:[#allocation2 + $0x42] sm:$0xff] %vm516_vm2, %v4376_v11  ;;  %950 = vrot.lane.b32.xlu0 %v489_v4, %s4240_s23  ;;  %1031 = vrot.lane.b32.xlu1 %v489_v4, %s4241_s24 }
  0x17   : > { %937 = vst.msk [vmem:[#allocation2 + $0x4a] sm:$0xff] %vm516_vm2, %v4379_v12  ;;  %938 = vst.msk [vmem:[#allocation2 + $0x52] sm:$0xff] %vm516_vm2, %v4382_v13  ;;  %v4410_v17 = vld [vmem:[%s4348_s22 + $0x70] sm:$0xff]  ;;  %v4413_v18 = vld [vmem:[%s4348_s22 + $0x78] sm:$0xff]  ;;  %4032 = vmatprep.mubr.msk.f32.mxu1 %vm516_vm2, %v4395_v15 }
  0x18   : > { %939 = vst.msk [vmem:[#allocation2 + $0x5a] sm:$0xff] %vm516_vm2, %v4392_v14  ;;  %940 = vst.msk [vmem:[#allocation2 + $0x62] sm:$0xff] %vm516_vm2, %v4395_v15  ;;  %v4422_v19 = vld [vmem:[%s4348_s22 + $0x80] sm:$0xff]  ;;  %v4425_v20 = vld [vmem:[%s4348_s22 + $0x88] sm:$0xff]  ;;  %4033 = vmatmul.mubr.msk.f32.vlgmr.msra.gmra.mxu1 %vm516_vm2, %v4398_v16  ;;  %4018 = vmatmul.mubr.msk.f32.gmra.mxu0 %vm516_vm2, %v491_v6 }
  0x19   : > { %941 = vst.msk [vmem:[#allocation2 + $0x6a] sm:$0xff] %vm516_vm2, %v4398_v16  ;;  %v4428_v21 = vld [vmem:[%s4348_s22 + $0x90] sm:$0xff]  ;;  %942 = vst.msk [vmem:[#allocation2 + $0x72] sm:$0xff] %vm516_vm2, %v4410_v17  ;;  %v4437_v22 = vld [vmem:[%s4348_s22 + $0x98] sm:$0xff]  ;;  %4035 = vmatprep.mubr.msk.f32.mxu1 %vm516_vm2, %v4410_v17  ;;  %4045 = vmatpush3.msk.msra.mxu1 %vm577_vm0, %v4334_v1  ;;  %vm1393_vm0 = vcmp.lt.s32.totalorder %v4584_v29, 18  ;;  %s4243_s22 = smov 16  }
  0x1a   : > { %943 = vst.msk [vmem:[#allocation2 + $0x7a] sm:$0xff] %vm516_vm2, %v4413_v18  ;;  %944 = vst.msk [vmem:[#allocation2 + $0x82] sm:$0xff] %vm516_vm2, %v4422_v19  ;;  %952 = vrot.lane.b32.xlu0 %v490_v5, %s4240_s23  ;;  %954 = vrot.lane.b32.xlu1 %v491_v6, %s4240_s23  ;;  %v4613_v34 = vld [vmem:[%s6089_s0 + $0x30] sm:$0xff]  ;;  %v4628_v37 = vld [vmem:[%s6089_s0 + $0x48] sm:$0xff] }
  0x1b   : > { %945 = vst.msk [vmem:[#allocation2 + $0x8a] sm:$0xff] %vm516_vm2, %v4425_v20  ;;  %946 = vst.msk [vmem:[#allocation2 + $0x92] sm:$0xff] %vm516_vm2, %v4428_v21  ;;  %4046 = vmatprep.subr.mxu1 %v1130_v23  ;;  %4020 = vmatprep.mubr.msk.f32.mxu0 %vm516_vm2, %v4357_v7  ;;  %v4633_v38 = vld [vmem:[%s6089_s0 + $0x40] sm:$0xff]  ;;  %v4648_v41 = vld [vmem:[%s6089_s0 + $0x58] sm:$0xff] }
  0x1c   : > { %947 = vst.msk [vmem:[#allocation2 + $0x9a] sm:$0xff] %vm516_vm2, %v4437_v22  ;;  %4036 = vmatmul.mubr.msk.f32.gmra.mxu1 %vm516_vm2, %v4413_v18  ;;  %4021 = vmatmul.mubr.msk.f32.gmra.mxu0 %vm516_vm2, %v4363_v8  ;;  %vm1411_vm13 = vmand %vm6121_vm9, %vm1391_vm10  ;;  %vm6107_vm10 = vcmp.ge.s32.totalorder %v4613_v34, 4  ;;  %v4653_v42 = vld [vmem:[%s6089_s0 + $0x50] sm:$0xff]  ;;  %v4668_v45 = vld [vmem:[%s6089_s0 + $0x68] sm:$0xff] }
  0x1d   : > { %4038 = vmatprep.mubr.msk.f32.mxu1 %vm516_vm2, %v4422_v19  ;;  %4047 = vmatpush3.msra.mxu1 %v1130_v23  ;;  %vm1410_vm14 = vmand %vm6120_vm11, %vm1390_vm12  ;;  %v1431_v35 = vsel %vm1411_vm13, 1, %v6131_v24  ;;  %vm1394_vm12 = vcmp.lt.s32.totalorder %v4613_v34, 18  ;;  %v4673_v46 = vld [vmem:[%s6089_s0 + $0x60] sm:$0xff]  ;;  %v4688_v49 = vld [vmem:[%s6089_s0 + $0x78] sm:$0xff] }
  0x1e   : > { %1033 = vrot.lane.b32.xlu0 %v490_v5, %s4241_s24  ;;  %1035 = vrot.lane.b32.xlu1 %v491_v6, %s4241_s24  ;;  %v1430_v36 = vsel %vm1410_vm14, 1, %v6131_v24  ;;  %vm1413_vm4 = vmand %vm6104_vm15, %vm1393_vm0  ;;  %vm6108_vm0 = vcmp.ge.s32.totalorder %v4628_v37, 4  ;;  %vm6109_vm15 = vcmp.ge.s32.totalorder %v4633_v38, 4  ;;  %v4693_v50 = vld [vmem:[%s6089_s0 + $0x70] sm:$0xff]  ;;  %v4708_v53 = vld [vmem:[%s6089_s0 + $0x88] sm:$0xff] }
  0x1f   : > { %4023 = vmatprep.mubr.msk.f32.mxu0 %vm516_vm2, %v4366_v9  ;;  %v1433_v39 = vsel %vm1413_vm4, 1, %v6131_v24  ;;  %vm1415_vm13 = vmand %vm6106_vm7, %vm1395_vm8  ;;  %vm6110_vm8 = vcmp.ge.s32.totalorder %v4648_v41, 4  ;;  %vm6111_vm7 = vcmp.ge.s32.totalorder %v4653_v42, 4  ;;  %v4713_v54 = vld [vmem:[%s6089_s0 + $0x80] sm:$0xff]  ;;  %v4728_v57 = vld [vmem:[%s6089_s0 + $0x98] sm:$0xff] }
  0x20   : > { %4039 = vmatmul.mubr.msk.f32.gmra.mxu1 %vm516_vm2, %v4425_v20  ;;  %4024 = vmatmul.mubr.msk.f32.gmra.mxu0 %vm516_vm2, %v4369_v10  ;;  %vm1414_vm14 = vmand %vm6107_vm10, %vm1394_vm12  ;;  %v1435_v43 = vsel %vm1415_vm13, 1, %v6131_v24  ;;  %vm1399_vm12 = vcmp.lt.s32.totalorder %v4648_v41, 18  ;;  %vm1398_vm10 = vcmp.lt.s32.totalorder %v4653_v42, 18  ;;  %v4733_v58 = vld [vmem:[%s6089_s0 + $0x90] sm:$0xff] }
  0x21   : > { %4041 = vmatprep.mubr.msk.f32.mxu1 %vm516_vm2, %v4428_v21  ;;  %4026 = vmatprep.mubr.msk.f32.mxu0 %vm516_vm2, %v4376_v11  ;;  %v1434_v44 = vsel %vm1414_vm14, 1, %v6131_v24  ;;  %vm1418_vm13 = vmand %vm6111_vm7, %vm1398_vm10  ;;  %vm6112_vm14 = vcmp.ge.s32.totalorder %v4668_v45, 4  ;;  %vm1402_vm7 = vcmp.lt.s32.totalorder %v4693_v50, 18 }
  0x22   : > { %956 = vrot.lane.b32.xlu0 %v4357_v7, %s4240_s23  ;;  %958 = vrot.lane.b32.xlu1 %v4363_v8, %s4240_s23  ;;  %v1438_v52 = vsel %vm1418_vm13, 1, %v6131_v24  ;;  %vm763_vm13 = vcmp.ge.s32.totalorder %v4708_v53, 4 }
  0x24   : > { %4042 = vmatmul.mubr.msk.f32.gmra.mxu1 %vm516_vm2, %v4437_v22  ;;  %4027 = vmatmul.mubr.msk.f32.gmra.mxu0 %vm516_vm2, %v4379_v12 }
  0x25   : > { %4029 = vmatprep.mubr.msk.f32.mxu0 %vm516_vm2, %v4382_v13 }
  0x26   : > { %1037 = vrot.lane.b32.xlu0 %v4357_v7, %s4241_s24  ;;  %1039 = vrot.lane.b32.xlu1 %v4363_v8, %s4241_s24 }
  0x28   : > { %4030 = vmatmul.mubr.msk.f32.gmra.mxu0 %vm516_vm2, %v4392_v14  ;;  %vm1392_vm2 = vcmp.lt.s32.totalorder %v4593_v30, 18 }
  0x29   : > { %vm1412_vm6 = vmand %vm6105_vm1, %vm1392_vm2  ;;  %vm1397_vm2 = vcmp.lt.s32.totalorder %v4628_v37, 18  ;;  %vm1396_vm1 = vcmp.lt.s32.totalorder %v4633_v38, 18 }
  0x2a   : > { %960 = vrot.lane.b32.xlu0 %v4366_v9, %s4240_s23  ;;  %962 = vrot.lane.b32.xlu1 %v4369_v10, %s4240_s23  ;;  %v1432_v40 = vsel %vm1412_vm6, 1, %v6131_v24  ;;  %vm1417_vm4 = vmand %vm6108_vm0, %vm1397_vm2  ;;  %vm1401_vm2 = vcmp.lt.s32.totalorder %v4668_v45, 18  ;;  %vm6113_vm0 = vcmp.ge.s32.totalorder %v4673_v46, 4 }
  0x2b   : > { %vm1416_vm6 = vmand %vm6109_vm15, %vm1396_vm1  ;;  %v1437_v47 = vsel %vm1417_vm4, 1, %v6131_v24  ;;  %vm1400_vm15 = vcmp.lt.s32.totalorder %v4673_v46, 18 }
  0x2c   : > { %v1436_v48 = vsel %vm1416_vm6, 1, %v6131_v24  ;;  %vm1419_vm1 = vmand %vm6110_vm8, %vm1399_vm12  ;;  %vm6114_vm6 = vcmp.ge.s32.totalorder %v4688_v49, 4  ;;  %vm1403_vm12 = vcmp.lt.s32.totalorder %v4688_v49, 18  ;;  %vm6115_vm8 = vcmp.ge.s32.totalorder %v4693_v50, 4 }
  0x2d   : > { %v1439_v51 = vsel %vm1419_vm1, 1, %v6131_v24  ;;  %vm1421_vm10 = vmand %vm6112_vm14, %vm1401_vm2  ;;  %vm1405_vm2 = vcmp.lt.s32.totalorder %v4708_v53, 18  ;;  %vm762_vm14 = vcmp.ge.s32.totalorder %v4713_v54, 4  ;;  %v3628_v53 = vld [vmem:[%s6102_s13] sm:$0xff] }
  0x2e   : > { %1041 = vrot.lane.b32.xlu0 %v4366_v9, %s4241_s24  ;;  %1043 = vrot.lane.b32.xlu1 %v4369_v10, %s4241_s24  ;;  %vm1420_vm4 = vmand %vm6113_vm0, %vm1400_vm15  ;;  %v1441_v55 = vsel %vm1421_vm10, 1, %v6131_v24  ;;  %vm1404_vm0 = vcmp.lt.s32.totalorder %v4713_v54, 18  ;;  %v3629_v54 = vld [vmem:[%s6102_s13 + $0x8] sm:$0x7f] }
  0x2f   : > { %v1440_v56 = vsel %vm1420_vm4, 1, %v6131_v24  ;;  %vm1423_vm15 = vmand %vm6114_vm6, %vm1403_vm12  ;;  %vm765_vm4 = vcmp.ge.s32.totalorder %v4728_v57, 4  ;;  %vm1407_vm12 = vcmp.lt.s32.totalorder %v4728_v57, 18  ;;  %vm6118_vm6 = vcmp.ge.s32.totalorder %v4733_v58, 4 }
  0x30   : > { %vm1422_vm1 = vmand %vm6115_vm8, %vm1402_vm7  ;;  %v1443_v59 = vsel %vm1423_vm15, 1, %v6131_v24  ;;  %vm1406_vm8 = vcmp.lt.s32.totalorder %v4733_v58, 18 }
  0x31   : > { %v1442_v60 = vsel %vm1422_vm1, 1, %v6131_v24  ;;  %vm1425_vm7 = vmand %vm763_vm13, %vm1405_vm2  ;;  %vm1008_vm1 = vcmask 64544   ;;  %vm1089_vm2 = vcmask 97344  }
  0x32   : > { %964 = vrot.lane.b32.xlu0 %v4376_v11, %s4240_s23  ;;  %966 = vrot.lane.b32.xlu1 %v4379_v12, %s4240_s23  ;;  %vm1424_vm10 = vmand %vm762_vm14, %vm1404_vm0  ;;  %v1445_v61 = vsel %vm1425_vm7, 1, %v6131_v24  ;;  %vm6116_vm7 = vcmask 191488  }
  0x33   : > { %v1444_v62 = vsel %vm1424_vm10, 1, %v6131_v24  ;;  %vm1427_vm15 = vmand %vm765_vm4, %vm1407_vm12  ;;  %vm6117_vm12 = vcmask 64512  }
  0x34   : > { %vm1426_vm0 = vmand %vm6118_vm6, %vm1406_vm8  ;;  %v1447_v63 = vsel %vm1427_vm15, 1, %v6131_v24  ;;  %vm1139_vm8 = vcmask 97280  }
  0x35   : > { %v1446_v0 = vsel %vm1426_vm0, 1, %v6131_v24 }
  0x36   : > { %1045 = vrot.lane.b32.xlu0 %v4376_v11, %s4241_s24  ;;  %1047 = vrot.lane.b32.xlu1 %v4379_v12, %s4241_s24 }
  0x3a   : > { %968 = vrot.lane.b32.xlu0 %v4382_v13, %s4240_s23  ;;  %970 = vrot.lane.b32.xlu1 %v4392_v14, %s4240_s23 }
  0x3e   : > { %1049 = vrot.lane.b32.xlu0 %v4382_v13, %s4241_s24  ;;  %1051 = vrot.lane.b32.xlu1 %v4392_v14, %s4241_s24 }
  0x42   : > { %972 = vrot.lane.b32.xlu0 %v4395_v15, %s4240_s23  ;;  %974 = vrot.lane.b32.xlu1 %v4398_v16, %s4240_s23 }
  0x46   : > { %1053 = vrot.lane.b32.xlu0 %v4395_v15, %s4241_s24  ;;  %1055 = vrot.lane.b32.xlu1 %v4398_v16, %s4241_s24 }
  0x4a   : > { %976 = vrot.lane.b32.xlu0 %v4410_v17, %s4240_s23  ;;  %978 = vrot.lane.b32.xlu1 %v4413_v18, %s4240_s23 }
  0x4e   : > { %1057 = vrot.lane.b32.xlu0 %v4410_v17, %s4241_s24  ;;  %1059 = vrot.lane.b32.xlu1 %v4413_v18, %s4241_s24 }
  0x52   : > { %980 = vrot.lane.b32.xlu0 %v4422_v19, %s4240_s23  ;;  %982 = vrot.lane.b32.xlu1 %v4425_v20, %s4240_s23 }
  0x56   : > { %1061 = vrot.lane.b32.xlu0 %v4422_v19, %s4241_s24  ;;  %1063 = vrot.lane.b32.xlu1 %v4425_v20, %s4241_s24 }
  0x5a   : > { %984 = vrot.lane.b32.xlu0 %v4428_v21, %s4240_s23  ;;  %986 = vrot.lane.b32.xlu1 %v4437_v22, %s4240_s23 }
  0x5e   : > { %1065 = vrot.lane.b32.xlu0 %v4428_v21, %s4241_s24  ;;  %1067 = vrot.lane.b32.xlu1 %v4437_v22, %s4241_s24 }
  0x62   : > { %1449 = vperm.xlu0 %4202, %v1428_v31   ;;  %1452 = vperm.xlu1 %4203, %v1429_v32  }
  0x66   : > { %1458 = vperm.xlu0 %4202, %v1431_v35   ;;  %1455 = vperm.xlu1 %4203, %v1430_v36  }
  0x6a   : > { %1464 = vperm.xlu0 %4202, %v1433_v39   ;;  %1461 = vperm.xlu1 %4203, %v1432_v40  }
  0x6e   : > { %1470 = vperm.xlu0 %4202, %v1435_v43   ;;  %1467 = vperm.xlu1 %4203, %v1434_v44  }
  0x72   : > { %1476 = vperm.xlu0 %4202, %v1437_v47   ;;  %1473 = vperm.xlu1 %4203, %v1436_v48  }
  0x76   : > { %1482 = vperm.xlu0 %4202, %v1439_v51   ;;  %1479 = vperm.xlu1 %4203, %v1438_v52  }
  0x7a   : > { %1488 = vperm.xlu0 %4202, %v1441_v55   ;;  %1485 = vperm.xlu1 %4203, %v1440_v56  }
  0x7e   : > { %1494 = vperm.xlu0 %4202, %v1443_v59   ;;  %1491 = vperm.xlu1 %4203, %v1442_v60  }
  0x82   : > { %1500 = vperm.xlu0 %4202, %v1445_v61   ;;  %1497 = vperm.xlu1 %4203, %v1444_v62  }
  0x84   : > { %v949_v1 = vpop.permute.xlu0 %948  ;;  %v1030_v3 = vpop.permute.xlu1 %1029 }
  0x85   : > { %1009 = vst.msk [vmem:[#allocation2 + $0x1] sm:$0xff] %vm1008_vm1, %v949_v1 }
  0x86   : > { %1090 = vst.msk [vmem:[#allocation2] sm:$0xff] %vm1089_vm2, %v1030_v3  ;;  %1506 = vperm.xlu0 %4202, %v1447_v63   ;;  %1503 = vperm.xlu1 %4203, %v1446_v0  }
  0x88   : > { %v951_v4 = vpop.permute.xlu0 %950  ;;  %v1032_v5 = vpop.permute.xlu1 %1031 }
  0x89   : > { %1010 = vst.msk [vmem:[#allocation2 + $0x9] sm:$0xff] %vm1008_vm1, %v951_v4 }
  0x8a   : > { %1091 = vst.msk [vmem:[#allocation2 + $0x8] sm:$0xff] %vm1089_vm2, %v1032_v5 }
  0x8c   : > { %v953_v6 = vpop.permute.xlu0 %952  ;;  %v955_v7 = vpop.permute.xlu1 %954 }
  0x8d   : > { %1011 = vst.msk [vmem:[#allocation2 + $0x11] sm:$0xff] %vm1008_vm1, %v953_v6  ;;  %1012 = vst.msk [vmem:[#allocation2 + $0x19] sm:$0xff] %vm1008_vm1, %v955_v7  ;;  %v1110_v8 = vld [vmem:[#allocation2] sm:$0xff] }
  0x8e   : > { %4048 = vmatprep.mubr.msk.f32.mxu1 %vm1139_vm8, %v1110_v8  ;;  %1549 = vst.msk [vmem:[#allocation2] sm:$0xf] %vm6116_vm7, %v6123_v2 }
  0x90   : > { %v1034_v9 = vpop.permute.xlu0 %1033  ;;  %v1036_v10 = vpop.permute.xlu1 %1035 }
  0x91   : > { %1092 = vst.msk [vmem:[#allocation2 + $0x10] sm:$0xff] %vm1089_vm2, %v1034_v9  ;;  %1093 = vst.msk [vmem:[#allocation2 + $0x18] sm:$0xff] %vm1089_vm2, %v1036_v10  ;;  %v1111_v11 = vld [vmem:[#allocation2 + $0x8] sm:$0xff] }
  0x92   : > { %4049 = vmatmul.mubr.msk.f32.vlgmr.msra.gmra.mxu1 %vm1139_vm8, %v1111_v11 }
  0x94   : > { %v957_v12 = vpop.permute.xlu0 %956  ;;  %v959_v13 = vpop.permute.xlu1 %958 }
  0x95   : > { %1013 = vst.msk [vmem:[#allocation2 + $0x21] sm:$0xff] %vm1008_vm1, %v957_v12  ;;  %1014 = vst.msk [vmem:[#allocation2 + $0x29] sm:$0xff] %vm1008_vm1, %v959_v13 }
  0x98   : > { %v1038_v14 = vpop.permute.xlu0 %1037  ;;  %v1040_v15 = vpop.permute.xlu1 %1039  ;;  %v1112_v16 = vld [vmem:[#allocation2 + $0x10] sm:$0xff]  ;;  %v1113_v17 = vld [vmem:[#allocation2 + $0x18] sm:$0xff] }
  0x99   : > { %1094 = vst.msk [vmem:[#allocation2 + $0x20] sm:$0xff] %vm1089_vm2, %v1038_v14  ;;  %1095 = vst.msk [vmem:[#allocation2 + $0x28] sm:$0xff] %vm1089_vm2, %v1040_v15  ;;  %4051 = vmatprep.mubr.msk.f32.mxu1 %vm1139_vm8, %v1112_v16 }
  0x9a   : > { %4052 = vmatmul.mubr.msk.f32.gmra.mxu1 %vm1139_vm8, %v1113_v17 }
  0x9c   : > { %v961_v18 = vpop.permute.xlu0 %960  ;;  %v963_v19 = vpop.permute.xlu1 %962 }
  0x9d   : > { %1015 = vst.msk [vmem:[#allocation2 + $0x31] sm:$0xff] %vm1008_vm1, %v961_v18  ;;  %1016 = vst.msk [vmem:[#allocation2 + $0x39] sm:$0xff] %vm1008_vm1, %v963_v19 }
  0xa0   : > { %v1042_v20 = vpop.permute.xlu0 %1041  ;;  %v1044_v21 = vpop.permute.xlu1 %1043  ;;  %v1114_v22 = vld [vmem:[#allocation2 + $0x20] sm:$0xff]  ;;  %v1115_v23 = vld [vmem:[#allocation2 + $0x28] sm:$0xff] }
  0xa1   : > { %1096 = vst.msk [vmem:[#allocation2 + $0x30] sm:$0xff] %vm1089_vm2, %v1042_v20  ;;  %1097 = vst.msk [vmem:[#allocation2 + $0x38] sm:$0xff] %vm1089_vm2, %v1044_v21  ;;  %4054 = vmatprep.mubr.msk.f32.mxu1 %vm1139_vm8, %v1114_v22 }
  0xa2   : > { %4055 = vmatmul.mubr.msk.f32.gmra.mxu1 %vm1139_vm8, %v1115_v23 }
  0xa4   : > { %v965_v31 = vpop.permute.xlu0 %964  ;;  %v967_v32 = vpop.permute.xlu1 %966 }
  0xa5   : > { %1017 = vst.msk [vmem:[#allocation2 + $0x41] sm:$0xff] %vm1008_vm1, %v965_v31  ;;  %1018 = vst.msk [vmem:[#allocation2 + $0x49] sm:$0xff] %vm1008_vm1, %v967_v32  ;;  %v1775_v31 = vld [vmem:[%s6093_s4 + $0x10] sm:$0xff] }
  0xa6   : > { %4078 = vmatprep.subr.mxu0 %v1775_v31 }
  0xa7   : > { %4079 = vmatpush3.msra.mxu0 %v1775_v31 }
  0xa8   : > { %v1046_v35 = vpop.permute.xlu0 %1045  ;;  %v1048_v36 = vpop.permute.xlu1 %1047  ;;  %v1116_v39 = vld [vmem:[#allocation2 + $0x30] sm:$0xff]  ;;  %v1117_v40 = vld [vmem:[#allocation2 + $0x38] sm:$0xff] }
  0xa9   : > { %1098 = vst.msk [vmem:[#allocation2 + $0x40] sm:$0xff] %vm1089_vm2, %v1046_v35  ;;  %1099 = vst.msk [vmem:[#allocation2 + $0x48] sm:$0xff] %vm1089_vm2, %v1048_v36  ;;  %4057 = vmatprep.mubr.msk.f32.mxu1 %vm1139_vm8, %v1116_v39  ;;  %v1774_v36 = vld [vmem:[%s6093_s4 + $0x8] sm:$0xff] }
  0xaa   : > { %4058 = vmatmul.mubr.msk.f32.gmra.mxu1 %vm1139_vm8, %v1117_v40  ;;  %4080 = vmatprep.subr.mxu0 %v1774_v36 }
  0xab   : > { %4081 = vmatpush3.msra.mxu0 %v1774_v36 }
  0xac   : > { %v969_v43 = vpop.permute.xlu0 %968  ;;  %v971_v44 = vpop.permute.xlu1 %970 }
  0xad   : > { %1019 = vst.msk [vmem:[#allocation2 + $0x51] sm:$0xff] %vm1008_vm1, %v969_v43  ;;  %1020 = vst.msk [vmem:[#allocation2 + $0x59] sm:$0xff] %vm1008_vm1, %v971_v44  ;;  %v4840_v43 = vld [vmem:[%s6092_s3] ss:$0 sm:$0xff] }
  0xb0   : > { %v1050_v47 = vpop.permute.xlu0 %1049  ;;  %v1052_v48 = vpop.permute.xlu1 %1051  ;;  %v1118_v51 = vld [vmem:[#allocation2 + $0x40] sm:$0xff]  ;;  %v1119_v52 = vld [vmem:[#allocation2 + $0x48] sm:$0xff] }
  0xb1   : > { %1100 = vst.msk [vmem:[#allocation2 + $0x50] sm:$0xff] %vm1089_vm2, %v1050_v47  ;;  %1101 = vst.msk [vmem:[#allocation2 + $0x58] sm:$0xff] %vm1089_vm2, %v1052_v48  ;;  %4060 = vmatprep.mubr.msk.f32.mxu1 %vm1139_vm8, %v1118_v51 }
  0xb2   : > { %4061 = vmatmul.mubr.msk.f32.gmra.mxu1 %vm1139_vm8, %v1119_v52 }
  0xb4   : > { %v973_v55 = vpop.permute.xlu0 %972  ;;  %v975_v56 = vpop.permute.xlu1 %974 }
  0xb5   : > { %1021 = vst.msk [vmem:[#allocation2 + $0x61] sm:$0xff] %vm1008_vm1, %v973_v55  ;;  %1022 = vst.msk [vmem:[#allocation2 + $0x69] sm:$0xff] %vm1008_vm1, %v975_v56 }
  0xb8   : > { %v1054_v59 = vpop.permute.xlu0 %1053  ;;  %v1056_v60 = vpop.permute.xlu1 %1055  ;;  %v1120_v61 = vld [vmem:[#allocation2 + $0x50] sm:$0xff]  ;;  %v1121_v62 = vld [vmem:[#allocation2 + $0x58] sm:$0xff] }
  0xb9   : > { %1102 = vst.msk [vmem:[#allocation2 + $0x60] sm:$0xff] %vm1089_vm2, %v1054_v59  ;;  %1103 = vst.msk [vmem:[#allocation2 + $0x68] sm:$0xff] %vm1089_vm2, %v1056_v60  ;;  %4063 = vmatprep.mubr.msk.f32.mxu1 %vm1139_vm8, %v1120_v61  ;;  %v1773_v61 = vld [vmem:[%s6093_s4] sm:$0xff] }
  0xba   : > { %4064 = vmatmul.mubr.msk.f32.gmra.mxu1 %vm1139_vm8, %v1121_v62  ;;  %4082 = vmatprep.subr.mxu0 %v1773_v61 }
  0xbb   : > { %4083 = vmatpush3.msra.mxu0 %v1773_v61 }
  0xbc   : > { %v977_v63 = vpop.permute.xlu0 %976  ;;  %v979_v0 = vpop.permute.xlu1 %978 }
  0xbd   : > { %1023 = vst.msk [vmem:[#allocation2 + $0x71] sm:$0xff] %vm1008_vm1, %v977_v63  ;;  %1024 = vst.msk [vmem:[#allocation2 + $0x79] sm:$0xff] %vm1008_vm1, %v979_v0 }
  0xc0   : > { %v1058_v1 = vpop.permute.xlu0 %1057  ;;  %v1060_v3 = vpop.permute.xlu1 %1059  ;;  %v1122_v4 = vld [vmem:[#allocation2 + $0x60] sm:$0xff]  ;;  %v1123_v5 = vld [vmem:[#allocation2 + $0x68] sm:$0xff] }
  0xc1   : > { %1104 = vst.msk [vmem:[#allocation2 + $0x70] sm:$0xff] %vm1089_vm2, %v1058_v1  ;;  %1105 = vst.msk [vmem:[#allocation2 + $0x78] sm:$0xff] %vm1089_vm2, %v1060_v3  ;;  %4066 = vmatprep.mubr.msk.f32.mxu1 %vm1139_vm8, %v1122_v4 }
  0xc2   : > { %4067 = vmatmul.mubr.msk.f32.gmra.mxu1 %vm1139_vm8, %v1123_v5 }
  0xc4   : > { %v981_v6 = vpop.permute.xlu0 %980  ;;  %v983_v7 = vpop.permute.xlu1 %982 }
  0xc5   : > { %1025 = vst.msk [vmem:[#allocation2 + $0x81] sm:$0xff] %vm1008_vm1, %v981_v6  ;;  %1026 = vst.msk [vmem:[#allocation2 + $0x89] sm:$0xff] %vm1008_vm1, %v983_v7 }
  0xc8   : > { %v1062_v8 = vpop.permute.xlu0 %1061  ;;  %v1064_v9 = vpop.permute.xlu1 %1063  ;;  %v1124_v10 = vld [vmem:[#allocation2 + $0x70] sm:$0xff]  ;;  %v1125_v11 = vld [vmem:[#allocation2 + $0x78] sm:$0xff] }
  0xc9   : > { %1106 = vst.msk [vmem:[#allocation2 + $0x80] sm:$0xff] %vm1089_vm2, %v1062_v8  ;;  %1107 = vst.msk [vmem:[#allocation2 + $0x88] sm:$0xff] %vm1089_vm2, %v1064_v9  ;;  %4069 = vmatprep.mubr.msk.f32.mxu1 %vm1139_vm8, %v1124_v10 }
  0xca   : > { %4070 = vmatmul.mubr.msk.f32.gmra.mxu1 %vm1139_vm8, %v1125_v11 }
  0xcc   : > { %v985_v12 = vpop.permute.xlu0 %984  ;;  %v987_v13 = vpop.permute.xlu1 %986 }
  0xcd   : > { %1027 = vst.msk [vmem:[#allocation2 + $0x91] sm:$0xff] %vm1008_vm1, %v985_v12  ;;  %1028 = vst.msk [vmem:[#allocation2 + $0x99] sm:$0xff] %vm1008_vm1, %v987_v13 }
  0xd0   : > { %v1066_v14 = vpop.permute.xlu0 %1065  ;;  %v1068_v15 = vpop.permute.xlu1 %1067  ;;  %v1126_v16 = vld [vmem:[#allocation2 + $0x80] sm:$0xff]  ;;  %v1127_v17 = vld [vmem:[#allocation2 + $0x88] sm:$0xff] }
  0xd1   : > { %1108 = vst.msk [vmem:[#allocation2 + $0x90] sm:$0xff] %vm1089_vm2, %v1066_v14  ;;  %1109 = vst.msk [vmem:[#allocation2 + $0x98] sm:$0xff] %vm1089_vm2, %v1068_v15  ;;  %4072 = vmatprep.mubr.msk.f32.mxu1 %vm1139_vm8, %v1126_v16 }
  0xd2   : > { %4073 = vmatmul.mubr.msk.f32.gmra.mxu1 %vm1139_vm8, %v1127_v17 }
  0xd8   : > { %v1128_v18 = vld [vmem:[#allocation2 + $0x90] sm:$0xff]  ;;  %v1129_v19 = vld [vmem:[#allocation2 + $0x98] sm:$0xff]  ;;  %v4815_v20 = vpop.f32.mrf.mxu1 }
  0xd9   : > { %4075 = vmatprep.mubr.msk.f32.mxu1 %vm1139_vm8, %v1128_v18 }
  0xda   : > { %4076 = vmatmul.mubr.msk.f32.gmra.mxu1 %vm1139_vm8, %v1129_v19  ;;  %v4817_v21 = vpop.f32.mrf.mxu1 }
  0xdc   : > { %v4819_v22 = vpop.f32.mrf.mxu1 }
  0xdd   : > { %v1453_v47 = vpop.permute.xlu1 %1452  ;;  %v1450_v52 = vpop.permute.xlu0 %1449 }
  0xde   : > { %v4821_v23 = vpop.f32.mrf.mxu1  ;;  %vm1509_vm10 = vcmp.eq.s32.totalorder %v1453_v47, 1  ;;  %vm1508_vm15 = vcmp.eq.s32.totalorder %v1450_v52, 1 }
  0xe0   : > { %v4826_v32 = vpop.f32.mrf.mxu1 }
  0xe1   : > { %v1459_v3 = vpop.permute.xlu0 %1458  ;;  %v1456_v6 = vpop.permute.xlu1 %1455 }
  0xe2   : > { %v4828_v35 = vpop.f32.mrf.mxu1  ;;  %vm1511_vm0 = vcmp.eq.s32.totalorder %v1459_v3, 1  ;;  %vm1510_vm1 = vcmp.eq.s32.totalorder %v1456_v6, 1 }
  0xe4   : > { %v4833_v39 = vpop.f32.mrf.mxu1 }
  0xe5   : > { %v1465_v13 = vpop.permute.xlu0 %1464  ;;  %v1462_v16 = vpop.permute.xlu1 %1461 }
  0xe6   : > { %v4835_v40 = vpop.f32.mrf.mxu1  ;;  %vm1513_vm2 = vcmp.eq.s32.totalorder %v1465_v13, 1  ;;  %vm1512_vm8 = vcmp.eq.s32.totalorder %v1462_v16, 1 }
  0xe9   : > { %v1471_v47 = vpop.permute.xlu0 %1470  ;;  %v1468_v52 = vpop.permute.xlu1 %1467 }
  0xed   : > { %v1474_v3 = vpop.permute.xlu1 %1473 }
  0xf1   : > { %v1480_v13 = vpop.permute.xlu1 %1479 }
 0x152   : > { %v4050_v44 = vpop.f32.mrf.mxu1 }
 0x153   : > { %v1275_v48 = vadd.f32 %v4050_v44, %v4840_v43 }
 0x154   : > { %v1269_v51 = vpop.f32.mrf.mxu1 }
 0x155   : > { %v1369_v55 = vmax.f32 %v1275_v48, 0.0  ;;  %v1270_v56 = vadd.f32 %v4840_v43, %v1269_v51 }
 0x157   : > { %v1368_v59 = vmax.f32 %v1270_v56, 0.0  ;;  %v1529_v60 = vsel %vm1509_vm10, %v1369_v55, 0.0  ;;  %vm1515_vm10 = vcmp.eq.s32.totalorder %v1471_v47, 1  ;;  %v1486_v47 = vpop.permute.xlu1 %1485 }
 0x158   : > { %1593 = vrot.lane.b32.xlu0 %v1529_v60, %s4241_s24  ;;  %1552 = vst.msk [vmem:[#allocation2 + $0xa] sm:$0xff] %vm6117_vm12, %v1529_v60 }
 0x159   : > { %v1528_v62 = vsel %vm1508_vm15, %v1368_v59, 0.0  ;;  %vm1514_vm15 = vcmp.eq.s32.totalorder %v1468_v52, 1 }
 0x15a   : > { %v4053_v63 = vpop.f32.mrf.mxu1  ;;  %1591 = vrot.lane.b32.xlu1 %v1528_v62, %s4241_s24  ;;  %1551 = vst.msk [vmem:[#allocation2 + $0x2] sm:$0xff] %vm6117_vm12, %v1528_v62 }
 0x15b   : > { %v1285_v0 = vadd.f32 %v4053_v63, %v4840_v43  ;;  %v1477_v63 = vpop.permute.xlu0 %1476 }
 0x15c   : > { %1674 = vrot.lane.b32.xlu0 %v1529_v60, %s4243_s22  ;;  %v1279_v1 = vpop.f32.mrf.mxu1 }
 0x15d   : > { %v1371_v4 = vmax.f32 %v1285_v0, 0.0  ;;  %v1280_v5 = vadd.f32 %v4840_v43, %v1279_v1 }
 0x15e   : > { %1672 = vrot.lane.b32.xlu1 %v1528_v62, %s4243_s22 }
 0x15f   : > { %v1370_v7 = vmax.f32 %v1280_v5, 0.0  ;;  %v1531_v8 = vsel %vm1511_vm0, %v1371_v4, 0.0  ;;  %vm1517_vm0 = vcmp.eq.s32.totalorder %v1477_v63, 1  ;;  %v1492_v63 = vpop.permute.xlu1 %1491 }
 0x160   : > { %1597 = vrot.lane.b32.xlu0 %v1531_v8, %s4241_s24  ;;  %1554 = vst.msk [vmem:[#allocation2 + $0x1a] sm:$0xff] %vm6117_vm12, %v1531_v8 }
 0x161   : > { %v1530_v9 = vsel %vm1510_vm1, %v1370_v7, 0.0  ;;  %vm1516_vm1 = vcmp.eq.s32.totalorder %v1474_v3, 1 }
 0x162   : > { %v4056_v10 = vpop.f32.mrf.mxu1  ;;  %1553 = vst.msk [vmem:[#allocation2 + $0x12] sm:$0xff] %vm6117_vm12, %v1530_v9  ;;  %1595 = vrot.lane.b32.xlu1 %v1530_v9, %s4241_s24 }
 0x163   : > { %v1295_v11 = vadd.f32 %v4056_v10, %v4840_v43  ;;  %v1483_v10 = vpop.permute.xlu0 %1482 }
 0x164   : > { %1678 = vrot.lane.b32.xlu0 %v1531_v8, %s4243_s22  ;;  %v1289_v12 = vpop.f32.mrf.mxu1 }
 0x165   : > { %v1373_v14 = vmax.f32 %v1295_v11, 0.0  ;;  %v1290_v15 = vadd.f32 %v4840_v43, %v1289_v12 }
 0x166   : > { %1676 = vrot.lane.b32.xlu1 %v1530_v9, %s4243_s22 }
 0x167   : > { %v1372_v17 = vmax.f32 %v1290_v15, 0.0  ;;  %v1533_v18 = vsel %vm1513_vm2, %v1373_v14, 0.0  ;;  %vm1519_vm2 = vcmp.eq.s32.totalorder %v1483_v10, 1  ;;  %v1498_v10 = vpop.permute.xlu1 %1497 }
 0x168   : > { %1601 = vrot.lane.b32.xlu0 %v1533_v18, %s4241_s24  ;;  %1556 = vst.msk [vmem:[#allocation2 + $0x2a] sm:$0xff] %vm6117_vm12, %v1533_v18 }
 0x169   : > { %v1532_v19 = vsel %vm1512_vm8, %v1372_v17, 0.0  ;;  %vm1518_vm8 = vcmp.eq.s32.totalorder %v1480_v13, 1 }
 0x16a   : > { %v4059_v31 = vpop.f32.mrf.mxu1  ;;  %1555 = vst.msk [vmem:[#allocation2 + $0x22] sm:$0xff] %vm6117_vm12, %v1532_v19  ;;  %1599 = vrot.lane.b32.xlu1 %v1532_v19, %s4241_s24 }
 0x16b   : > { %v1305_v36 = vadd.f32 %v4059_v31, %v4840_v43  ;;  %v1489_v31 = vpop.permute.xlu0 %1488 }
 0x16c   : > { %1682 = vrot.lane.b32.xlu0 %v1533_v18, %s4243_s22  ;;  %v1299_v44 = vpop.f32.mrf.mxu1 }
 0x16d   : > { %v1375_v48 = vmax.f32 %v1305_v36, 0.0  ;;  %v1300_v51 = vadd.f32 %v4840_v43, %v1299_v44 }
 0x16e   : > { %1680 = vrot.lane.b32.xlu1 %v1532_v19, %s4243_s22 }
 0x16f   : > { %v1374_v55 = vmax.f32 %v1300_v51, 0.0  ;;  %v1535_v56 = vsel %vm1515_vm10, %v1375_v48, 0.0  ;;  %vm1521_vm10 = vcmp.eq.s32.totalorder %v1489_v31, 1 }
 0x170   : > { %1605 = vrot.lane.b32.xlu0 %v1535_v56, %s4241_s24  ;;  %1558 = vst.msk [vmem:[#allocation2 + $0x3a] sm:$0xff] %vm6117_vm12, %v1535_v56 }
 0x171   : > { %v1534_v59 = vsel %vm1514_vm15, %v1374_v55, 0.0  ;;  %vm1520_vm15 = vcmp.eq.s32.totalorder %v1486_v47, 1 }
 0x172   : > { %v4062_v60 = vpop.f32.mrf.mxu1  ;;  %1557 = vst.msk [vmem:[#allocation2 + $0x32] sm:$0xff] %vm6117_vm12, %v1534_v59  ;;  %1603 = vrot.lane.b32.xlu1 %v1534_v59, %s4241_s24 }
 0x173   : > { %v1315_v61 = vadd.f32 %v4062_v60, %v4840_v43  ;;  %v1495_v60 = vpop.permute.xlu0 %1494 }
 0x174   : > { %1686 = vrot.lane.b32.xlu0 %v1535_v56, %s4243_s22  ;;  %v1309_v62 = vpop.f32.mrf.mxu1 }
 0x175   : > { %v1377_v0 = vmax.f32 %v1315_v61, 0.0  ;;  %v1310_v1 = vadd.f32 %v4840_v43, %v1309_v62 }
 0x176   : > { %1684 = vrot.lane.b32.xlu1 %v1534_v59, %s4243_s22 }
 0x177   : > { %v1376_v4 = vmax.f32 %v1310_v1, 0.0  ;;  %v1537_v5 = vsel %vm1517_vm0, %v1377_v0, 0.0  ;;  %vm1523_vm0 = vcmp.eq.s32.totalorder %v1495_v60, 1 }
 0x178   : > { %1609 = vrot.lane.b32.xlu0 %v1537_v5, %s4241_s24  ;;  %1560 = vst.msk [vmem:[#allocation2 + $0x4a] sm:$0xff] %vm6117_vm12, %v1537_v5 }
 0x179   : > { %v1536_v6 = vsel %vm1516_vm1, %v1376_v4, 0.0  ;;  %vm1522_vm1 = vcmp.eq.s32.totalorder %v1492_v63, 1 }
 0x17a   : > { %v4065_v7 = vpop.f32.mrf.mxu1  ;;  %1559 = vst.msk [vmem:[#allocation2 + $0x42] sm:$0xff] %vm6117_vm12, %v1536_v6  ;;  %1607 = vrot.lane.b32.xlu1 %v1536_v6, %s4241_s24 }
 0x17b   : > { %v1325_v8 = vadd.f32 %v4065_v7, %v4840_v43  ;;  %v1501_v7 = vpop.permute.xlu0 %1500 }
 0x17c   : > { %1690 = vrot.lane.b32.xlu0 %v1537_v5, %s4243_s22  ;;  %v1319_v9 = vpop.f32.mrf.mxu1 }
 0x17d   : > { %v1379_v11 = vmax.f32 %v1325_v8, 0.0  ;;  %v1320_v12 = vadd.f32 %v4840_v43, %v1319_v9 }
 0x17e   : > { %1688 = vrot.lane.b32.xlu1 %v1536_v6, %s4243_s22 }
 0x17f   : > { %v1378_v14 = vmax.f32 %v1320_v12, 0.0  ;;  %v1539_v15 = vsel %vm1519_vm2, %v1379_v11, 0.0  ;;  %vm1525_vm2 = vcmp.eq.s32.totalorder %v1501_v7, 1 }
 0x180   : > { %1613 = vrot.lane.b32.xlu0 %v1539_v15, %s4241_s24  ;;  %1562 = vst.msk [vmem:[#allocation2 + $0x5a] sm:$0xff] %vm6117_vm12, %v1539_v15 }
 0x181   : > { %v1538_v16 = vsel %vm1518_vm8, %v1378_v14, 0.0  ;;  %vm1524_vm8 = vcmp.eq.s32.totalorder %v1498_v10, 1 }
 0x182   : > { %v4068_v17 = vpop.f32.mrf.mxu1  ;;  %1561 = vst.msk [vmem:[#allocation2 + $0x52] sm:$0xff] %vm6117_vm12, %v1538_v16  ;;  %1611 = vrot.lane.b32.xlu1 %v1538_v16, %s4241_s24 }
 0x183   : > { %v1335_v18 = vadd.f32 %v4068_v17, %v4840_v43 }
 0x184   : > { %1694 = vrot.lane.b32.xlu0 %v1539_v15, %s4243_s22  ;;  %v1329_v19 = vpop.f32.mrf.mxu1  ;;  %v1507_v15 = vpop.permute.xlu0 %1506 }
 0x185   : > { %v1381_v36 = vmax.f32 %v1335_v18, 0.0  ;;  %v1330_v44 = vadd.f32 %v4840_v43, %v1329_v19  ;;  %v1504_v18 = vpop.permute.xlu1 %1503 }
 0x186   : > { %1692 = vrot.lane.b32.xlu1 %v1538_v16, %s4243_s22 }
 0x187   : > { %v1380_v48 = vmax.f32 %v1330_v44, 0.0  ;;  %v1541_v51 = vsel %vm1521_vm10, %v1381_v36, 0.0  ;;  %vm1527_vm10 = vcmp.eq.s32.totalorder %v1507_v15, 1 }
 0x188   : > { %1617 = vrot.lane.b32.xlu0 %v1541_v51, %s4241_s24  ;;  %1564 = vst.msk [vmem:[#allocation2 + $0x6a] sm:$0xff] %vm6117_vm12, %v1541_v51 }
 0x189   : > { %v1540_v52 = vsel %vm1520_vm15, %v1380_v48, 0.0  ;;  %vm767_vm15 = vcmp.lt.s32.totalorder %v4553_v26, 16 }
 0x18a   : > { %v4071_v55 = vpop.f32.mrf.mxu1  ;;  %1563 = vst.msk [vmem:[#allocation2 + $0x62] sm:$0xff] %vm6117_vm12, %v1540_v52  ;;  %1615 = vrot.lane.b32.xlu1 %v1540_v52, %s4241_s24 }
 0x18b   : > { %v1345_v56 = vadd.f32 %v4071_v55, %v4840_v43 }
 0x18c   : > { %1698 = vrot.lane.b32.xlu0 %v1541_v51, %s4243_s22  ;;  %v1339_v59 = vpop.f32.mrf.mxu1 }
 0x18d   : > { %v1383_v61 = vmax.f32 %v1345_v56, 0.0  ;;  %v1340_v62 = vadd.f32 %v4840_v43, %v1339_v59 }
 0x18e   : > { %1696 = vrot.lane.b32.xlu1 %v1540_v52, %s4243_s22 }
 0x18f   : > { %v1382_v0 = vmax.f32 %v1340_v62, 0.0  ;;  %v1543_v1 = vsel %vm1523_vm0, %v1383_v61, 0.0  ;;  %vm1526_vm0 = vcmp.eq.s32.totalorder %v1504_v18, 1 }
 0x190   : > { %1621 = vrot.lane.b32.xlu0 %v1543_v1, %s4241_s24  ;;  %1566 = vst.msk [vmem:[#allocation2 + $0x7a] sm:$0xff] %vm6117_vm12, %v1543_v1 }
 0x191   : > { %v1542_v3 = vsel %vm1522_vm1, %v1382_v0, 0.0  ;;  %vm766_vm1 = vcmp.lt.s32.totalorder %v4544_v25, 16 }
 0x192   : > { %v4074_v4 = vpop.f32.mrf.mxu1  ;;  %1565 = vst.msk [vmem:[#allocation2 + $0x72] sm:$0xff] %vm6117_vm12, %v1542_v3  ;;  %1619 = vrot.lane.b32.xlu1 %v1542_v3, %s4241_s24 }
 0x193   : > { %v1355_v5 = vadd.f32 %v4074_v4, %v4840_v43 }
 0x194   : > { %1702 = vrot.lane.b32.xlu0 %v1543_v1, %s4243_s22  ;;  %v1349_v6 = vpop.f32.mrf.mxu1 }
 0x195   : > { %v1385_v8 = vmax.f32 %v1355_v5, 0.0  ;;  %v1350_v9 = vadd.f32 %v4840_v43, %v1349_v6 }
 0x196   : > { %1700 = vrot.lane.b32.xlu1 %v1542_v3, %s4243_s22 }
 0x197   : > { %v1384_v11 = vmax.f32 %v1350_v9, 0.0  ;;  %v1545_v12 = vsel %vm1525_vm2, %v1385_v8, 0.0  ;;  %vm787_vm2 = vmand %vm6122_vm5, %vm767_vm15  ;;  %vm2029_vm15 = vcmp.lt.s32.totalorder %v4544_v25, 20 }
 0x198   : > { %1625 = vrot.lane.b32.xlu0 %v1545_v12, %s4241_s24  ;;  %1568 = vst.msk [vmem:[#allocation2 + $0x8a] sm:$0xff] %vm6117_vm12, %v1545_v12 }
 0x199   : > { %v1544_v13 = vsel %vm1524_vm8, %v1384_v11, 0.0  ;;  %vm769_vm8 = vcmp.lt.s32.totalorder %v4562_v27, 16 }
 0x19a   : > { %v4077_v14 = vpop.f32.mrf.mxu1  ;;  %1567 = vst.msk [vmem:[#allocation2 + $0x82] sm:$0xff] %vm6117_vm12, %v1544_v13  ;;  %1623 = vrot.lane.b32.xlu1 %v1544_v13, %s4241_s24  ;;  %vm789_vm7 = vmand %vm6121_vm9, %vm769_vm8  ;;  %vm2030_vm8 = vcmp.lt.s32.totalorder %v4553_v26, 20 }
 0x19b   : > { %v1365_v16 = vadd.f32 %v4077_v14, %v4840_v43  ;;  %v809_v51 = vsel %vm789_vm7, 1, %v6131_v24  ;;  %vm2050_vm7 = vmand %vm6122_vm5, %vm2030_vm8  ;;  %vm2032_vm8 = vcmp.lt.s32.totalorder %v4562_v27, 20  ;;  %vm2042_vm5 = vcmp.lt.s32.totalorder %v4668_v45, 20 }
 0x19c   : > { %1706 = vrot.lane.b32.xlu0 %v1545_v12, %s4243_s22  ;;  %v1359_v17 = vpop.f32.mrf.mxu1  ;;  %v2070_v59 = vsel %vm2050_vm7, 1, %v6131_v24  ;;  %vm2052_vm7 = vmand %vm6121_vm9, %vm2032_vm8  ;;  %vm2034_vm8 = vcmp.lt.s32.totalorder %v4584_v29, 20 }
 0x19d   : > { %v1387_v19 = vmax.f32 %v1365_v16, 0.0  ;;  %v1360_v31 = vadd.f32 %v4840_v43, %v1359_v17  ;;  %v807_v43 = vsel %vm787_vm2, 1, %v6131_v24  ;;  %vm2049_vm2 = vmand %vm6119_vm3, %vm2029_vm15  ;;  %vm2031_vm15 = vcmp.lt.s32.totalorder %v4571_v28, 20 }
 0x19e   : > { %1704 = vrot.lane.b32.xlu1 %v1544_v13, %s4243_s22  ;;  %v2069_v55 = vsel %vm2049_vm2, 1, %v6131_v24  ;;  %vm2051_vm2 = vmand %vm6120_vm11, %vm2031_vm15  ;;  %vm2033_vm15 = vcmp.lt.s32.totalorder %v4593_v30, 20  ;;  %v2072_v63 = vsel %vm2052_vm7, 1, %v6131_v24  ;;  %vm6145_vm7 = vcmp.ge.s32.totalorder %v4584_v29, 4 }
 0x19f   : > { %v1386_v36 = vmax.f32 %v1360_v31, 0.0  ;;  %v1547_v44 = vsel %vm1527_vm10, %v1387_v19, 0.0  ;;  %vm786_vm10 = vmand %vm6119_vm3, %vm766_vm1  ;;  %vm770_vm1 = vcmp.lt.s32.totalorder %v4593_v30, 16  ;;  %v2071_v61 = vsel %vm2051_vm2, 1, %v6131_v24 }
 0x1a0   : > { %1629 = vrot.lane.b32.xlu0 %v1547_v44, %s4241_s24  ;;  %1570 = vst.msk [vmem:[#allocation2 + $0x9a] sm:$0xff] %vm6117_vm12, %v1547_v44  ;;  %v806_v48 = vsel %vm786_vm10, 1, %v6131_v24  ;;  %vm6139_vm10 = vcmp.ge.s32.totalorder %v4593_v30, 4  ;;  %vm6143_vm2 = vcmp.ge.s32.totalorder %v4593_v30, 4 }
 0x1a1   : > { %v1546_v47 = vsel %vm1526_vm0, %v1386_v36, 0.0  ;;  %vm768_vm0 = vcmp.lt.s32.totalorder %v4571_v28, 16  ;;  %vm790_vm6 = vmand %vm6139_vm10, %vm770_vm1  ;;  %vm772_vm1 = vcmp.lt.s32.totalorder %v4613_v34, 16 }
 0x1a2   : > { %1569 = vst.msk [vmem:[#allocation2 + $0x92] sm:$0xff] %vm6117_vm12, %v1546_v47  ;;  %1627 = vrot.lane.b32.xlu1 %v1546_v47, %s4241_s24  ;;  %vm788_vm12 = vmand %vm6120_vm11, %vm768_vm0  ;;  %vm771_vm0 = vcmp.lt.s32.totalorder %v4584_v29, 16  ;;  %v810_v56 = vsel %vm790_vm6, 1, %v6131_v24  ;;  %vm6141_vm6 = vcmp.ge.s32.totalorder %v4613_v34, 4 }
 0x1a3   : > { %v808_v52 = vsel %vm788_vm12, 1, %v6131_v24  ;;  %vm6140_vm12 = vcmp.ge.s32.totalorder %v4584_v29, 4  ;;  %vm792_vm10 = vmand %vm6141_vm6, %vm772_vm1  ;;  %vm774_vm1 = vcmp.lt.s32.totalorder %v4633_v38, 16 }
 0x1a4   : > { %1710 = vrot.lane.b32.xlu0 %v1547_v44, %s4243_s22  ;;  %vm791_vm3 = vmand %vm6140_vm12, %vm771_vm0  ;;  %vm773_vm0 = vcmp.lt.s32.totalorder %v4608_v33, 16  ;;  %v812_v62 = vsel %vm792_vm10, 1, %v6131_v24  ;;  %vm6144_vm10 = vcmp.ge.s32.totalorder %v4633_v38, 4 }
 0x1a5   : > { %v811_v60 = vsel %vm791_vm3, 1, %v6131_v24  ;;  %vm6142_vm3 = vcmp.ge.s32.totalorder %v4608_v33, 4  ;;  %vm2053_vm6 = vmand %vm6143_vm2, %vm2033_vm15  ;;  %vm2035_vm15 = vcmp.lt.s32.totalorder %v4613_v34, 20 }
 0x1a6   : > { %1708 = vrot.lane.b32.xlu1 %v1546_v47, %s4243_s22  ;;  %vm793_vm12 = vmand %vm6142_vm3, %vm773_vm0  ;;  %v2073_v1 = vsel %vm2053_vm6, 1, %v6131_v24  ;;  %vm775_vm0 = vcmp.lt.s32.totalorder %v4628_v37, 16  ;;  %vm6147_vm6 = vcmp.ge.s32.totalorder %v4613_v34, 4 }
 0x1a7   : > { %v813_v0 = vsel %vm793_vm12, 1, %v6131_v24  ;;  %vm794_vm11 = vmand %vm6144_vm10, %vm774_vm1  ;;  %vm6146_vm12 = vcmp.ge.s32.totalorder %v4628_v37, 4  ;;  %vm776_vm1 = vcmp.lt.s32.totalorder %v4653_v42, 16 }
 0x1a8   : > { %830 = vperm.xlu0 %4202, %v807_v43   ;;  %vm2054_vm3 = vmand %vm6145_vm7, %vm2034_vm8  ;;  %v814_v3 = vsel %vm794_vm11, 1, %v6131_v24  ;;  %vm2036_vm8 = vcmp.lt.s32.totalorder %v4608_v33, 20  ;;  %vm6148_vm11 = vcmp.ge.s32.totalorder %v4653_v42, 4 }
 0x1a9   : > { %vm795_vm2 = vmand %vm6146_vm12, %vm775_vm0  ;;  %v2074_v4 = vsel %vm2054_vm3, 1, %v6131_v24  ;;  %vm777_vm0 = vcmp.lt.s32.totalorder %v4648_v41, 16  ;;  %vm6149_vm3 = vcmp.ge.s32.totalorder %v4608_v33, 4 }
 0x1aa   : > { %827 = vperm.xlu1 %4203, %v806_v48   ;;  %vm2055_vm10 = vmand %vm6147_vm6, %vm2035_vm15  ;;  %v815_v5 = vsel %vm795_vm2, 1, %v6131_v24  ;;  %vm2037_vm15 = vcmp.lt.s32.totalorder %v4633_v38, 20  ;;  %vm1651_vm2 = vcmask 130112   ;;  %vm6150_vm6 = vcmp.ge.s32.totalorder %v4648_v41, 4 }
 0x1ab   : > { %vm796_vm7 = vmand %vm6148_vm11, %vm776_vm1  ;;  %v2075_v6 = vsel %vm2055_vm10, 1, %v6131_v24  ;;  %vm778_vm1 = vcmp.lt.s32.totalorder %v4673_v46, 16  ;;  %vm6151_vm10 = vcmp.ge.s32.totalorder %v4633_v38, 4 }
 0x1ac   : > { %836 = vperm.xlu0 %4202, %v809_v51   ;;  %vm2056_vm12 = vmand %vm6149_vm3, %vm2036_vm8  ;;  %v816_v7 = vsel %vm796_vm7, 1, %v6131_v24  ;;  %vm2038_vm8 = vcmp.lt.s32.totalorder %v4628_v37, 20  ;;  %vm1732_vm7 = vcmask 195712  }
 0x1ad   : > { %vm797_vm9 = vmand %vm6150_vm6, %vm777_vm0  ;;  %v2076_v8 = vsel %vm2056_vm12, 1, %v6131_v24  ;;  %vm6152_vm0 = vcmp.ge.s32.totalorder %v4673_v46, 4  ;;  %vm779_vm12 = vcmp.lt.s32.totalorder %v4668_v45, 16 }
 0x1ae   : > { %833 = vperm.xlu1 %4203, %v808_v52   ;;  %vm2057_vm11 = vmand %vm6151_vm10, %vm2037_vm15  ;;  %v817_v10 = vsel %vm797_vm9, 1, %v6131_v24  ;;  %vm6153_vm15 = vcmp.ge.s32.totalorder %v4628_v37, 4  ;;  %vm2039_vm9 = vcmp.lt.s32.totalorder %v4653_v42, 20  ;;  %v4204_v52 = vld [vmem:[%s6089_s0 + $0x60] sm:$0xff] }
 0x1af   : > { %vm798_vm3 = vmand %vm6152_vm0, %vm778_vm1  ;;  %v2077_v12 = vsel %vm2057_vm11, 1, %v6131_v24  ;;  %vm6154_vm1 = vcmp.ge.s32.totalorder %v4668_v45, 4  ;;  %vm780_vm11 = vcmp.lt.s32.totalorder %v4693_v50, 16 }
 0x1b0   : > { %2090 = vperm.xlu0 %4202, %v2069_v55   ;;  %vm2058_vm6 = vmand %vm6153_vm15, %vm2038_vm8  ;;  %v818_v14 = vsel %vm798_vm3, 1, %v6131_v24  ;;  %vm6155_vm8 = vcmp.ge.s32.totalorder %v4653_v42, 4  ;;  %vm2040_vm3 = vcmp.lt.s32.totalorder %v4648_v41, 20 }
 0x1b1   : > { %vm799_vm10 = vmand %vm6154_vm1, %vm779_vm12  ;;  %v2078_v16 = vsel %vm2058_vm6, 1, %v6131_v24  ;;  %vm6156_vm12 = vcmp.ge.s32.totalorder %v4693_v50, 4  ;;  %vm781_vm6 = vcmp.lt.s32.totalorder %v4688_v49, 16  ;;  %vm6137_vm1 = vcmask 60416  }
 0x1b2   : > { %839 = vperm.xlu1 %4203, %v810_v56   ;;  %vm2059_vm0 = vmand %vm6155_vm8, %vm2039_vm9  ;;  %v819_v18 = vsel %vm799_vm10, 1, %v6131_v24  ;;  %vm6138_vm9 = vcmask 195584   ;;  %vm6157_vm8 = vcmp.ge.s32.totalorder %v4648_v41, 4 }
 0x1b3   : > { %vm800_vm15 = vmand %vm6156_vm12, %vm780_vm11  ;;  %v2079_v31 = vsel %vm2059_vm0, 1, %v6131_v24  ;;  %vm6158_vm11 = vcmp.ge.s32.totalorder %v4688_v49, 4  ;;  %vm6159_vm12 = vcmp.ge.s32.totalorder %v4668_v45, 4 }
 0x1b4   : > { %2093 = vperm.xlu0 %4202, %v2070_v59   ;;  %vm2060_vm10 = vmand %vm6157_vm8, %vm2040_vm3  ;;  %v820_v44 = vsel %vm800_vm15, 1, %v6131_v24  ;;  %vm2041_vm3 = vcmp.lt.s32.totalorder %v4204_v52, 20  ;;  %v4205_v59 = vld [vmem:[%s6089_s0 + $0x78] sm:$0xff]  ;;  %vm6160_vm8 = vcmp.ge.s32.totalorder %v4673_v46, 4 }
 0x1b5   : > { %vm801_vm0 = vmand %vm6158_vm11, %vm781_vm6  ;;  %v2080_v51 = vsel %vm2060_vm10, 1, %v6131_v24  ;;  %vm2044_vm6 = vcmp.lt.s32.totalorder %v4205_v59, 20 }
 0x1b6   : > { %842 = vperm.xlu1 %4203, %v811_v60   ;;  %vm2062_vm15 = vmand %vm6159_vm12, %vm2042_vm5  ;;  %v821_v56 = vsel %vm801_vm0, 1, %v6131_v24  ;;  %vm6161_vm12 = vcmp.ge.s32.totalorder %v4693_v50, 4 }
 0x1b7   : > { %vm2061_vm10 = vmand %vm6160_vm8, %vm2041_vm3 }
 0x1b8   : > { %2096 = vperm.xlu0 %4202, %v2071_v61   ;;  %v2082_v61 = vsel %vm2062_vm15, 1, %v6131_v24  ;;  %vm2064_vm0 = vmand %vm6158_vm11, %vm2044_vm6 }
 0x1ba   : > { %845 = vperm.xlu1 %4203, %v812_v62   ;;  %v4206_v62 = vld [vmem:[%s6089_s0 + $0x70] sm:$0xff] }
 0x1bb   : > { %vm2043_vm5 = vcmp.lt.s32.totalorder %v4206_v62, 20 }
 0x1bc   : > { %2099 = vperm.xlu0 %4202, %v2072_v63   ;;  %vm2063_vm15 = vmand %vm6161_vm12, %vm2043_vm5  ;;  %vm6162_vm12 = vcmp.ge.s32.totalorder %v4733_v58, 4 }
 0x1be   : > { %848 = vperm.xlu1 %4203, %v813_v0   ;;  %v2081_v0 = vsel %vm2061_vm10, 1, %v6131_v24 }
 0x1c0   : > { %2102 = vperm.xlu0 %4202, %v2073_v1   ;;  %v4207_v1 = vld [vmem:[%s6089_s0 + $0x88] sm:$0xff] }
 0x1c1   : > { %vm783_vm3 = vcmp.lt.s32.totalorder %v4207_v1, 16 }
 0x1c2   : > { %851 = vperm.xlu1 %4203, %v814_v3   ;;  %vm803_vm8 = vmand %vm763_vm13, %vm783_vm3  ;;  %vm2046_vm3 = vcmp.lt.s32.totalorder %v4207_v1, 20 }
 0x1c4   : > { %2105 = vperm.xlu0 %4202, %v2074_v4  }
 0x1c6   : > { %854 = vperm.xlu1 %4203, %v815_v5  }
 0x1c8   : > { %2108 = vperm.xlu0 %4202, %v2075_v6   ;;  %v2084_v6 = vsel %vm2064_vm0, 1, %v6131_v24 }
 0x1ca   : > { %v1594_v9 = vpop.permute.xlu0 %1593  ;;  %857 = vperm.xlu1 %4203, %v816_v7   ;;  %v4208_v7 = vld [vmem:[%s6089_s0 + $0x80] sm:$0xff] }
 0x1cb   : > { %1653 = vst.msk [vmem:[#allocation2 + $0x9] sm:$0xff] %vm1651_vm2, %v1594_v9  ;;  %vm782_vm6 = vcmp.lt.s32.totalorder %v4208_v7, 16  ;;  %v2083_v9 = vsel %vm2063_vm15, 1, %v6131_v24 }
 0x1cc   : > { %2111 = vperm.xlu0 %4202, %v2076_v8   ;;  %v1592_v11 = vpop.permute.xlu1 %1591  ;;  %vm802_vm5 = vmand %vm762_vm14, %vm782_vm6  ;;  %vm2045_vm6 = vcmp.lt.s32.totalorder %v4208_v7, 20 }
 0x1cd   : > { %1652 = vst.msk [vmem:[#allocation2 + $0x1] sm:$0xff] %vm1651_vm2, %v1592_v11 }
 0x1ce   : > { %v1675_v13 = vpop.permute.xlu0 %1674  ;;  %860 = vperm.xlu1 %4203, %v817_v10   ;;  %v4209_v10 = vld [vmem:[%s6089_s0 + $0x98] sm:$0xff] }
 0x1cf   : > { %1734 = vst.msk [vmem:[#allocation2 + $0x8] sm:$0xff] %vm1732_vm7, %v1675_v13  ;;  %vm785_vm10 = vcmp.lt.s32.totalorder %v4209_v10, 16  ;;  %v4210_v13 = vld [vmem:[%s6089_s0 + $0x90] sm:$0xff] }
 0x1d0   : > { %2114 = vperm.xlu0 %4202, %v2077_v12   ;;  %v1673_v15 = vpop.permute.xlu1 %1672  ;;  %v823_v12 = vsel %vm803_vm8, 1, %v6131_v24  ;;  %vm784_vm11 = vcmp.lt.s32.totalorder %v4210_v13, 16  ;;  %vm805_vm0 = vmand %vm765_vm4, %vm785_vm10  ;;  %vm2048_vm10 = vcmp.lt.s32.totalorder %v4209_v10, 20 }
 0x1d1   : > { %1733 = vst.msk [vmem:[#allocation2] sm:$0xff] %vm1732_vm7, %v1673_v15  ;;  %v822_v15 = vsel %vm802_vm5, 1, %v6131_v24  ;;  %vm804_vm15 = vmand %vm6162_vm12, %vm784_vm11  ;;  %vm2047_vm11 = vcmp.lt.s32.totalorder %v4210_v13, 20 }
 0x1d2   : > { %v1598_v17 = vpop.permute.xlu0 %1597  ;;  %863 = vperm.xlu1 %4203, %v818_v14   ;;  %vm2066_vm8 = vmand %vm763_vm13, %vm2046_vm3 }
 0x1d3   : > { %1655 = vst.msk [vmem:[#allocation2 + $0x19] sm:$0xff] %vm1651_vm2, %v1598_v17  ;;  %vm2065_vm5 = vmand %vm762_vm14, %vm2045_vm6  ;;  %vm6164_vm6 = vcmask 64512  }
 0x1d4   : > { %2117 = vperm.xlu0 %4202, %v2078_v16   ;;  %v1596_v19 = vpop.permute.xlu1 %1595  ;;  %vm6163_vm3 = vmmov %vm6162_vm12 }
 0x1d5   : > { %1654 = vst.msk [vmem:[#allocation2 + $0x11] sm:$0xff] %vm1651_vm2, %v1596_v19  ;;  %v825_v19 = vsel %vm805_vm0, 1, %v6131_v24  ;;  %vm2068_vm0 = vmand %vm765_vm4, %vm2048_vm10 }
 0x1d6   : > { %v1679_v36 = vpop.permute.xlu0 %1678  ;;  %866 = vperm.xlu1 %4203, %v819_v18   ;;  %v1754_v48 = vld [vmem:[#allocation2 + $0x8] sm:$0xff]  ;;  %vm2067_vm12 = vmand %vm6163_vm3, %vm2047_vm11 }
 0x1d7   : > { %1736 = vst.msk [vmem:[#allocation2 + $0x18] sm:$0xff] %vm1732_vm7, %v1679_v36  ;;  %v824_v36 = vsel %vm804_vm15, 1, %v6131_v24  ;;  %vm6165_vm10 = vmmov %vm6164_vm6 }
 0x1d8   : > { %v1753_v47 = vld [vmem:[#allocation2] sm:$0xff]  ;;  %2120 = vperm.xlu0 %4202, %v2079_v31   ;;  %v1677_v43 = vpop.permute.xlu1 %1676  ;;  %vm6166_vm11 = vmmov %vm6164_vm6 }
 0x1d9   : > { %2190 = vst.msk [vmem:[#allocation2] sm:$0xf] %vm6137_vm1, %v6123_v2  ;;  %4084 = vmatprep.mubr.msk.f32.mxu0 %vm6138_vm9, %v1753_v47  ;;  %v2086_v47 = vsel %vm2066_vm8, 1, %v6131_v24  ;;  %vm6167_vm3 = vmmov %vm6164_vm6 }
 0x1da   : > { %1735 = vst.msk [vmem:[#allocation2 + $0x10] sm:$0xff] %vm1732_vm7, %v1677_v43  ;;  %v1602_v55 = vpop.permute.xlu0 %1601  ;;  %869 = vperm.xlu1 %4203, %v820_v44   ;;  %4085 = vmatmul.mubr.msk.f32.vlgmr.msra.gmra.mxu0 %vm6138_vm9, %v1754_v48  ;;  %v2085_v48 = vsel %vm2065_vm5, 1, %v6131_v24 }
 0x1db   : > { %1657 = vst.msk [vmem:[#allocation2 + $0x29] sm:$0xff] %vm1651_vm2, %v1602_v55 }
 0x1dc   : > { %2123 = vperm.xlu0 %4202, %v2080_v51   ;;  %v1600_v60 = vpop.permute.xlu1 %1599 }
 0x1dd   : > { %1656 = vst.msk [vmem:[#allocation2 + $0x21] sm:$0xff] %vm1651_vm2, %v1600_v60  ;;  %v2087_v60 = vsel %vm2067_vm12, 1, %v6131_v24 }
 0x1de   : > { %v1683_v63 = vpop.permute.xlu0 %1682  ;;  %872 = vperm.xlu1 %4203, %v821_v56   ;;  %v1756_v5 = vld [vmem:[#allocation2 + $0x18] sm:$0xff]  ;;  %v2088_v56 = vsel %vm2068_vm0, 1, %v6131_v24 }
 0x1df   : > { %1738 = vst.msk [vmem:[#allocation2 + $0x28] sm:$0xff] %vm1732_vm7, %v1683_v63 }
 0x1e0   : > { %2129 = vperm.xlu0 %4202, %v2082_v61   ;;  %v1681_v3 = vpop.permute.xlu1 %1680 }
 0x1e1   : > { %v1755_v4 = vld [vmem:[#allocation2 + $0x10] sm:$0xff]  ;;  %1737 = vst.msk [vmem:[#allocation2 + $0x20] sm:$0xff] %vm1732_vm7, %v1681_v3 }
 0x1e2   : > { %4087 = vmatprep.mubr.msk.f32.mxu0 %vm6138_vm9, %v1755_v4  ;;  %v1606_v8 = vpop.permute.xlu0 %1605  ;;  %2126 = vperm.xlu1 %4203, %v2081_v0  }
 0x1e3   : > { %4088 = vmatmul.mubr.msk.f32.gmra.mxu0 %vm6138_vm9, %v1756_v5  ;;  %1659 = vst.msk [vmem:[#allocation2 + $0x39] sm:$0xff] %vm1651_vm2, %v1606_v8 }
 0x1e4   : > { %2135 = vperm.xlu0 %4202, %v2084_v6   ;;  %v1604_v11 = vpop.permute.xlu1 %1603 }
 0x1e5   : > { %1658 = vst.msk [vmem:[#allocation2 + $0x31] sm:$0xff] %vm1651_vm2, %v1604_v11 }
 0x1e6   : > { %v1687_v14 = vpop.permute.xlu0 %1686  ;;  %2132 = vperm.xlu1 %4203, %v2083_v9   ;;  %v1758_v18 = vld [vmem:[#allocation2 + $0x28] sm:$0xff] }
 0x1e7   : > { %1740 = vst.msk [vmem:[#allocation2 + $0x38] sm:$0xff] %vm1732_vm7, %v1687_v14 }
 0x1e8   : > { %878 = vperm.xlu0 %4202, %v823_v12   ;;  %v1685_v16 = vpop.permute.xlu1 %1684  ;;  %v1757_v17 = vld [vmem:[#allocation2 + $0x20] sm:$0xff] }
 0x1e9   : > { %1739 = vst.msk [vmem:[#allocation2 + $0x30] sm:$0xff] %vm1732_vm7, %v1685_v16  ;;  %4090 = vmatprep.mubr.msk.f32.mxu0 %vm6138_vm9, %v1757_v17 }
 0x1ea   : > { %v1610_v31 = vpop.permute.xlu0 %1609  ;;  %875 = vperm.xlu1 %4203, %v822_v15   ;;  %4091 = vmatmul.mubr.msk.f32.gmra.mxu0 %vm6138_vm9, %v1758_v18 }
 0x1eb   : > { %1661 = vst.msk [vmem:[#allocation2 + $0x49] sm:$0xff] %vm1651_vm2, %v1610_v31 }
 0x1ec   : > { %884 = vperm.xlu0 %4202, %v825_v19   ;;  %v1608_v44 = vpop.permute.xlu1 %1607 }
 0x1ed   : > { %1660 = vst.msk [vmem:[#allocation2 + $0x41] sm:$0xff] %vm1651_vm2, %v1608_v44 }
 0x1ee   : > { %v1691_v43 = vpop.permute.xlu0 %1690  ;;  %881 = vperm.xlu1 %4203, %v824_v36   ;;  %v1760_v55 = vld [vmem:[#allocation2 + $0x38] sm:$0xff] }
 0x1ef   : > { %1742 = vst.msk [vmem:[#allocation2 + $0x48] sm:$0xff] %vm1732_vm7, %v1691_v43 }
 0x1f0   : > { %2141 = vperm.xlu0 %4202, %v2086_v47   ;;  %v1689_v51 = vpop.permute.xlu1 %1688  ;;  %v1759_v52 = vld [vmem:[#allocation2 + $0x30] sm:$0xff]  ;;  %v4016_v47 = vpop.f32.mrf.mxu0 }
 0x1f1   : > { %1741 = vst.msk [vmem:[#allocation2 + $0x40] sm:$0xff] %vm1732_vm7, %v1689_v51  ;;  %4093 = vmatprep.mubr.msk.f32.mxu0 %vm6138_vm9, %v1759_v52 }
 0x1f2   : > { %v1614_v59 = vpop.permute.xlu0 %1613  ;;  %2138 = vperm.xlu1 %4203, %v2085_v48   ;;  %4094 = vmatmul.mubr.msk.f32.gmra.mxu0 %vm6138_vm9, %v1760_v55  ;;  %v647_v52 = vpop.f32.mrf.mxu0 }
 0x1f3   : > { %1663 = vst.msk [vmem:[#allocation2 + $0x59] sm:$0xff] %vm1651_vm2, %v1614_v59  ;;  %v5160_v59 = vld [vmem:[%s6096_s7] ss:$0 sm:$0xff] }
 0x1f4   : > { %2147 = vperm.xlu0 %4202, %v2088_v56   ;;  %v1612_v61 = vpop.permute.xlu1 %1611  ;;  %v4019_v56 = vpop.f32.mrf.mxu0 }
 0x1f5   : > { %1662 = vst.msk [vmem:[#allocation2 + $0x51] sm:$0xff] %vm1651_vm2, %v1612_v61 }
 0x1f6   : > { %v1695_v62 = vpop.permute.xlu0 %1694  ;;  %2144 = vperm.xlu1 %4203, %v2087_v60   ;;  %v1762_v1 = vld [vmem:[#allocation2 + $0x48] sm:$0xff]  ;;  %v657_v61 = vpop.f32.mrf.mxu0 }
 0x1f7   : > { %1744 = vst.msk [vmem:[#allocation2 + $0x58] sm:$0xff] %vm1732_vm7, %v1695_v62  ;;  %v653_v62 = vadd.f32 %v4016_v47, %v5160_v59 }
 0x1f8   : > { %v1693_v63 = vpop.permute.xlu1 %1692  ;;  %v1761_v0 = vld [vmem:[#allocation2 + $0x40] sm:$0xff] }
 0x1f9   : > { %1743 = vst.msk [vmem:[#allocation2 + $0x50] sm:$0xff] %vm1732_vm7, %v1693_v63  ;;  %4096 = vmatprep.mubr.msk.f32.mxu0 %vm6138_vm9, %v1761_v0 }
 0x1fa   : > { %v1618_v3 = vpop.permute.xlu0 %1617  ;;  %4097 = vmatmul.mubr.msk.f32.gmra.mxu0 %vm6138_vm9, %v1762_v1  ;;  %v648_v1 = vadd.f32 %v5160_v59, %v647_v52 }
 0x1fb   : > { %1665 = vst.msk [vmem:[#allocation2 + $0x69] sm:$0xff] %vm1651_vm2, %v1618_v3  ;;  %v4022_v3 = vpop.f32.mrf.mxu0 }
 0x1fc   : > { %v1616_v4 = vpop.permute.xlu1 %1615 }
 0x1fd   : > { %1664 = vst.msk [vmem:[#allocation2 + $0x61] sm:$0xff] %vm1651_vm2, %v1616_v4 }
 0x1fe   : > { %v1699_v5 = vpop.permute.xlu0 %1698  ;;  %v1764_v8 = vld [vmem:[#allocation2 + $0x58] sm:$0xff] }
 0x1ff   : > { %1746 = vst.msk [vmem:[#allocation2 + $0x68] sm:$0xff] %vm1732_vm7, %v1699_v5 }
 0x200   : > { %v1697_v6 = vpop.permute.xlu1 %1696  ;;  %v1763_v7 = vld [vmem:[#allocation2 + $0x50] sm:$0xff] }
 0x201   : > { %1745 = vst.msk [vmem:[#allocation2 + $0x60] sm:$0xff] %vm1732_vm7, %v1697_v6  ;;  %4099 = vmatprep.mubr.msk.f32.mxu0 %vm6138_vm9, %v1763_v7  ;;  %v663_v6 = vadd.f32 %v4019_v56, %v5160_v59 }
 0x202   : > { %v1622_v9 = vpop.permute.xlu0 %1621  ;;  %4100 = vmatmul.mubr.msk.f32.gmra.mxu0 %vm6138_vm9, %v1764_v8 }
 0x203   : > { %1667 = vst.msk [vmem:[#allocation2 + $0x79] sm:$0xff] %vm1651_vm2, %v1622_v9  ;;  %v658_v9 = vadd.f32 %v5160_v59, %v657_v61 }
 0x204   : > { %v1620_v10 = vpop.permute.xlu1 %1619 }
 0x205   : > { %1666 = vst.msk [vmem:[#allocation2 + $0x71] sm:$0xff] %vm1651_vm2, %v1620_v10  ;;  %v667_v10 = vpop.f32.mrf.mxu0 }
 0x206   : > { %v1703_v11 = vpop.permute.xlu0 %1702  ;;  %v1766_v14 = vld [vmem:[#allocation2 + $0x68] sm:$0xff] }
 0x207   : > { %1748 = vst.msk [vmem:[#allocation2 + $0x78] sm:$0xff] %vm1732_vm7, %v1703_v11 }
 0x208   : > { %v1701_v12 = vpop.permute.xlu1 %1700  ;;  %v1765_v13 = vld [vmem:[#allocation2 + $0x60] sm:$0xff] }
 0x209   : > { %1747 = vst.msk [vmem:[#allocation2 + $0x70] sm:$0xff] %vm1732_vm7, %v1701_v12  ;;  %4102 = vmatprep.mubr.msk.f32.mxu0 %vm6138_vm9, %v1765_v13 }
 0x20a   : > { %v1626_v15 = vpop.permute.xlu0 %1625  ;;  %4103 = vmatmul.mubr.msk.f32.gmra.mxu0 %vm6138_vm9, %v1766_v14 }
 0x20b   : > { %1669 = vst.msk [vmem:[#allocation2 + $0x89] sm:$0xff] %vm1651_vm2, %v1626_v15  ;;  %v668_v15 = vadd.f32 %v5160_v59, %v667_v10 }
 0x20c   : > { %v1624_v16 = vpop.permute.xlu1 %1623 }
 0x20d   : > { %1668 = vst.msk [vmem:[#allocation2 + $0x81] sm:$0xff] %vm1651_vm2, %v1624_v16  ;;  %v4025_v16 = vpop.f32.mrf.mxu0 }
 0x20e   : > { %v1707_v17 = vpop.permute.xlu0 %1706  ;;  %v1768_v31 = vld [vmem:[#allocation2 + $0x78] sm:$0xff]  ;;  %v683_v56 = vadd.f32 %v4025_v16, %v5160_v59 }
 0x20f   : > { %1750 = vst.msk [vmem:[#allocation2 + $0x88] sm:$0xff] %vm1732_vm7, %v1707_v17 }
 0x210   : > { %v1705_v18 = vpop.permute.xlu1 %1704  ;;  %v1767_v19 = vld [vmem:[#allocation2 + $0x70] sm:$0xff] }
 0x211   : > { %1749 = vst.msk [vmem:[#allocation2 + $0x80] sm:$0xff] %vm1732_vm7, %v1705_v18  ;;  %4105 = vmatprep.mubr.msk.f32.mxu0 %vm6138_vm9, %v1767_v19  ;;  %v673_v18 = vadd.f32 %v4022_v3, %v5160_v59 }
 0x212   : > { %v1630_v36 = vpop.permute.xlu0 %1629  ;;  %4106 = vmatmul.mubr.msk.f32.gmra.mxu0 %vm6138_vm9, %v1768_v31 }
 0x213   : > { %1671 = vst.msk [vmem:[#allocation2 + $0x99] sm:$0xff] %vm1651_vm2, %v1630_v36 }
 0x214   : > { %v1628_v44 = vpop.permute.xlu1 %1627 }
 0x215   : > { %1670 = vst.msk [vmem:[#allocation2 + $0x91] sm:$0xff] %vm1651_vm2, %v1628_v44  ;;  %v677_v44 = vpop.f32.mrf.mxu0 }
 0x216   : > { %v1711_v43 = vpop.permute.xlu0 %1710  ;;  %v1770_v55 = vld [vmem:[#allocation2 + $0x88] sm:$0xff] }
 0x217   : > { %1752 = vst.msk [vmem:[#allocation2 + $0x98] sm:$0xff] %vm1732_vm7, %v1711_v43  ;;  %v4028_v52 = vpop.f32.mrf.mxu0 }
 0x218   : > { %v1709_v48 = vpop.permute.xlu1 %1708  ;;  %v1769_v51 = vld [vmem:[#allocation2 + $0x80] sm:$0xff] }
 0x219   : > { %1751 = vst.msk [vmem:[#allocation2 + $0x90] sm:$0xff] %vm1732_vm7, %v1709_v48  ;;  %4108 = vmatprep.mubr.msk.f32.mxu0 %vm6138_vm9, %v1769_v51  ;;  %v678_v51 = vadd.f32 %v5160_v59, %v677_v44 }
 0x21a   : > { %4109 = vmatmul.mubr.msk.f32.gmra.mxu0 %vm6138_vm9, %v1770_v55 }
 0x21e   : > { %v1772_v63 = vld [vmem:[#allocation2 + $0x98] sm:$0xff] }
 0x220   : > { %v1771_v60 = vld [vmem:[#allocation2 + $0x90] sm:$0xff] }
 0x221   : > { %4111 = vmatprep.mubr.msk.f32.mxu0 %vm6138_vm9, %v1771_v60 }
 0x222   : > { %4112 = vmatmul.mubr.msk.f32.gmra.mxu0 %vm6138_vm9, %v1772_v63 }
 0x223   : > { %v831_v0 = vpop.permute.xlu0 %830 }
 0x224   : > { %vm887_vm15 = vcmp.eq.s32.totalorder %v831_v0, 1 }
 0x225   : > { %v907_v4 = vsel %vm887_vm15, %v653_v62, 0.0  ;;  %v828_v5 = vpop.permute.xlu1 %827  ;;  %vm6168_vm15 = vmmov %vm6167_vm3  ;;  %v687_v62 = vpop.f32.mrf.mxu0 }
 0x226   : > { %2192 = vst.msk [vmem:[#allocation2 + $0xa] sm:$0xff] %vm6164_vm6, %v907_v4  ;;  %vm886_vm8 = vcmp.eq.s32.totalorder %v828_v5, 1  ;;  %vm6169_vm6 = vcmask 191488   ;;  %v688_v3 = vadd.f32 %v5160_v59, %v687_v62 }
 0x227   : > { %v906_v7 = vsel %vm886_vm8, %v648_v1, 0.0  ;;  %v837_v8 = vpop.permute.xlu0 %836  ;;  %v4031_v4 = vpop.f32.mrf.mxu0 }
 0x228   : > { %2191 = vst.msk [vmem:[#allocation2 + $0x2] sm:$0xff] %vm6165_vm10, %v906_v7  ;;  %vm889_vm5 = vcmp.eq.s32.totalorder %v837_v8, 1  ;;  %vm6170_vm10 = vmmov %vm6167_vm3  ;;  %v703_v16 = vadd.f32 %v4031_v4, %v5160_v59 }
 0x229   : > { %v909_v11 = vsel %vm889_vm5, %v663_v6, 0.0  ;;  %v834_v12 = vpop.permute.xlu1 %833  ;;  %v693_v6 = vadd.f32 %v4028_v52, %v5160_v59 }
 0x22a   : > { %2194 = vst.msk [vmem:[#allocation2 + $0x1a] sm:$0xff] %vm6166_vm11, %v909_v11  ;;  %vm888_vm0 = vcmp.eq.s32.totalorder %v834_v12, 1  ;;  %vm6171_vm11 = vmmov %vm6167_vm3 }
 0x22b   : > { %v908_v13 = vsel %vm888_vm0, %v658_v9, 0.0  ;;  %v5171_v14 = vpop.permute.xlu0 %2090  ;;  %v697_v9 = vpop.f32.mrf.mxu0 }
 0x22c   : > { %2193 = vst.msk [vmem:[#allocation2 + $0x12] sm:$0xff] %vm6167_vm3, %v908_v13  ;;  %v698_v13 = vadd.f32 %v5160_v59, %v697_v9 }
 0x22d   : > { %v840_v17 = vpop.permute.xlu1 %839 }
 0x22e   : > { %vm890_vm12 = vcmp.eq.s32.totalorder %v840_v17, 1 }
 0x22f   : > { %v910_v19 = vsel %vm890_vm12, %v668_v15, 0.0  ;;  %v5176_v31 = vpop.permute.xlu0 %2093  ;;  %v5178_v36 = vld [vmem:[#allocation2] sm:$0xff] }
 0x230   : > { %2195 = vst.msk [vmem:[#allocation2 + $0x22] sm:$0xff] %vm6168_vm15, %v910_v19  ;;  %vm6172_vm15 = vmmov %vm6167_vm3 }
 0x231   : > { %2271 = vst.msk [vmem:[#allocation2] sm:$0xf] %vm6169_vm6, %v6123_v2  ;;  %v843_v47 = vpop.permute.xlu1 %842 }
 0x232   : > { %vm891_vm8 = vcmp.eq.s32.totalorder %v843_v47, 1 }
 0x233   : > { %v911_v43 = vsel %vm891_vm8, %v673_v18, 0.0  ;;  %v5183_v48 = vpop.permute.xlu0 %2096  ;;  %vm6173_vm8 = vmmov %vm6167_vm3 }
 0x234   : > { %2196 = vst.msk [vmem:[#allocation2 + $0x2a] sm:$0xff] %vm6170_vm10, %v911_v43  ;;  %v708_v43 = vadd.f32 %v5160_v59, %v4817_v21  ;;  %v718_v21 = vadd.f32 %v5160_v59, %v4821_v23 }
 0x235   : > { %v846_v55 = vpop.permute.xlu1 %845 }
 0x236   : > { %vm892_vm5 = vcmp.eq.s32.totalorder %v846_v55, 1 }
 0x237   : > { %v912_v60 = vsel %vm892_vm5, %v678_v51, 0.0  ;;  %v5188_v61 = vpop.permute.xlu0 %2099  ;;  %vm6174_vm5 = vmmov %vm6167_vm3 }
 0x238   : > { %2197 = vst.msk [vmem:[#allocation2 + $0x32] sm:$0xff] %vm6171_vm11, %v912_v60 }
 0x239   : > { %v849_v63 = vpop.permute.xlu1 %848 }
 0x23a   : > { %vm893_vm0 = vcmp.eq.s32.totalorder %v849_v63, 1 }
 0x23b   : > { %v913_v0 = vsel %vm893_vm0, %v683_v56, 0.0  ;;  %v5191_v1 = vpop.permute.xlu0 %2102  ;;  %vm6175_vm0 = vmmov %vm6167_vm3  ;;  %v713_v56 = vadd.f32 %v4815_v20, %v5160_v59  ;;  %v723_v20 = vadd.f32 %v4819_v22, %v5160_v59  ;;  %v728_v22 = vadd.f32 %v5160_v59, %v4828_v35 }
 0x23c   : > { %2198 = vst.msk [vmem:[#allocation2 + $0x3a] sm:$0xff] %vm6167_vm3, %v913_v0 }
 0x23d   : > { %v852_v5 = vpop.permute.xlu1 %851 }
 0x23e   : > { %vm894_vm12 = vcmp.eq.s32.totalorder %v852_v5, 1 }
 0x23f   : > { %v914_v7 = vsel %vm894_vm12, %v688_v3, 0.0  ;;  %v5196_v8 = vpop.permute.xlu0 %2105  ;;  %vm6176_vm12 = vmmov %vm6175_vm0 }
 0x240   : > { %2199 = vst.msk [vmem:[#allocation2 + $0x42] sm:$0xff] %vm6172_vm15, %v914_v7 }
 0x241   : > { %v855_v10 = vpop.permute.xlu1 %854 }
 0x242   : > { %vm895_vm6 = vcmp.eq.s32.totalorder %v855_v10, 1 }
 0x243   : > { %v915_v11 = vsel %vm895_vm6, %v693_v6, 0.0  ;;  %v5199_v12 = vpop.permute.xlu0 %2108  ;;  %vm6177_vm6 = vmmov %vm6175_vm0 }
 0x244   : > { %2200 = vst.msk [vmem:[#allocation2 + $0x4a] sm:$0xff] %vm6173_vm8, %v915_v11  ;;  %v733_v11 = vadd.f32 %v4826_v32, %v5160_v59  ;;  %v738_v32 = vadd.f32 %v5160_v59, %v4835_v40  ;;  %v5257_v40 = vld [vmem:[%s6094_s5] ss:$0 sm:$0xff] }
 0x245   : > { %v858_v15 = vpop.permute.xlu1 %857 }
 0x246   : > { %vm896_vm10 = vcmp.eq.s32.totalorder %v858_v15, 1 }
 0x247   : > { %v916_v17 = vsel %vm896_vm10, %v698_v13, 0.0  ;;  %v5204_v18 = vpop.permute.xlu0 %2111  ;;  %vm6178_vm10 = vmmov %vm6175_vm0 }
 0x248   : > { %2201 = vst.msk [vmem:[#allocation2 + $0x52] sm:$0xff] %vm6174_vm5, %v916_v17  ;;  %v743_v17 = vadd.f32 %v4833_v39, %v5160_v59  ;;  %v2494_v39 = vld [vmem:[%s6097_s8 + $0x10] sm:$0xff]  ;;  %v2492_v59 = vld [vmem:[%s6097_s8] sm:$0xff] }
 0x249   : > { %v861_v19 = vpop.permute.xlu1 %860  ;;  %4114 = vmatprep.subr.mxu1 %v2494_v39 }
 0x24a   : > { %vm897_vm11 = vcmp.eq.s32.totalorder %v861_v19, 1  ;;  %4115 = vmatpush3.msra.mxu1 %v2494_v39 }
 0x24b   : > { %v917_v44 = vsel %vm897_vm11, %v703_v16, 0.0  ;;  %v5207_v47 = vpop.permute.xlu0 %2114  ;;  %vm6179_vm11 = vmmov %vm6175_vm0 }
 0x24c   : > { %2202 = vst.msk [vmem:[#allocation2 + $0x5a] sm:$0xff] %vm6175_vm0, %v917_v44 }
 0x24d   : > { %v864_v51 = vpop.permute.xlu1 %863 }
 0x24e   : > { %vm898_vm3 = vcmp.eq.s32.totalorder %v864_v51, 1 }
 0x24f   : > { %v918_v52 = vsel %vm898_vm3, %v708_v43, 0.0  ;;  %v5212_v55 = vpop.permute.xlu0 %2117  ;;  %vm6180_vm3 = vmmov %vm6177_vm6 }
 0x250   : > { %2203 = vst.msk [vmem:[#allocation2 + $0x62] sm:$0xff] %vm6176_vm12, %v918_v52  ;;  %v2493_v52 = vld [vmem:[%s6097_s8 + $0x8] sm:$0xff] }
 0x251   : > { %v867_v60 = vpop.permute.xlu1 %866  ;;  %4116 = vmatprep.subr.mxu1 %v2493_v52 }
 0x252   : > { %vm899_vm15 = vcmp.eq.s32.totalorder %v867_v60, 1  ;;  %4117 = vmatpush3.msra.mxu1 %v2493_v52 }
 0x253   : > { %v919_v62 = vsel %vm899_vm15, %v713_v56, 0.0  ;;  %v5217_v63 = vpop.permute.xlu0 %2120  ;;  %vm6181_vm15 = vmmov %vm6180_vm3  ;;  %4118 = vmatprep.subr.mxu1 %v2492_v59 }
 0x254   : > { %2204 = vst.msk [vmem:[#allocation2 + $0x6a] sm:$0xff] %vm6177_vm6, %v919_v62  ;;  %4119 = vmatpush3.msra.mxu1 %v2492_v59 }
 0x255   : > { %v870_v0 = vpop.permute.xlu1 %869  ;;  %3647 = vmatprep.subr.mxu1 %v6123_v2 }
 0x256   : > { %vm900_vm8 = vcmp.eq.s32.totalorder %v870_v0, 1 }
 0x257   : > { %v920_v3 = vsel %vm900_vm8, %v718_v21, 0.0  ;;  %v5222_v4 = vpop.permute.xlu0 %2123  ;;  %vm6182_vm8 = vmmov %vm6180_vm3 }
 0x258   : > { %2205 = vst.msk [vmem:[#allocation2 + $0x72] sm:$0xff] %vm6178_vm10, %v920_v3 }
 0x259   : > { %v873_v5 = vpop.permute.xlu1 %872 }
 0x25a   : > { %vm901_vm5 = vcmp.eq.s32.totalorder %v873_v5, 1 }
 0x25b   : > { %v921_v6 = vsel %vm901_vm5, %v723_v20, 0.0  ;;  %v5227_v7 = vpop.permute.xlu0 %2129  ;;  %vm6183_vm5 = vmmov %vm6180_vm3  ;;  %v2212_v20 = vld [vmem:[#allocation2 + $0x8] sm:$0xff] }
 0x25c   : > { %2206 = vst.msk [vmem:[#allocation2 + $0x7a] sm:$0xff] %vm6179_vm11, %v921_v6  ;;  %vm2150_vm11 = vcmp.eq.s32.totalorder %v5176_v31, 1 }
 0x25d   : > { %v5230_v9 = vpop.permute.xlu1 %2126 }
 0x25f   : > { %v5232_v23 = vpop.permute.xlu0 %2135 }
 0x261   : > { %v5234_v10 = vpop.permute.xlu1 %2132 }
 0x263   : > { %v879_v13 = vpop.permute.xlu0 %878 }
 0x264   : > { %vm903_vm0 = vcmp.eq.s32.totalorder %v879_v13, 1 }
 0x265   : > { %v923_v15 = vsel %vm903_vm0, %v733_v11, 0.0  ;;  %v876_v16 = vpop.permute.xlu1 %875  ;;  %vm2149_vm0 = vcmp.eq.s32.totalorder %v5171_v14, 1 }
 0x266   : > { %2208 = vst.msk [vmem:[#allocation2 + $0x8a] sm:$0xff] %vm6180_vm3, %v923_v15  ;;  %vm902_vm12 = vcmp.eq.s32.totalorder %v876_v16, 1 }
 0x267   : > { %v922_v19 = vsel %vm902_vm12, %v728_v22, 0.0  ;;  %v885_v44 = vpop.permute.xlu0 %884  ;;  %vm2152_vm12 = vcmp.eq.s32.totalorder %v5188_v61, 1 }
 0x268   : > { %2207 = vst.msk [vmem:[#allocation2 + $0x82] sm:$0xff] %vm6181_vm15, %v922_v19  ;;  %vm905_vm6 = vcmp.eq.s32.totalorder %v885_v44, 1  ;;  %vm6184_vm15 = vmmov %vm6180_vm3 }
 0x269   : > { %v925_v43 = vsel %vm905_vm6, %v743_v17, 0.0  ;;  %v882_v51 = vpop.permute.xlu1 %881  ;;  %v2213_v17 = vld [vmem:[#allocation2 + $0x10] sm:$0xff]  ;;  %vm2151_vm6 = vcmp.eq.s32.totalorder %v5183_v48, 1 }
 0x26a   : > { %2210 = vst.msk [vmem:[#allocation2 + $0x9a] sm:$0xff] %vm6182_vm8, %v925_v43  ;;  %vm904_vm10 = vcmp.eq.s32.totalorder %v882_v51, 1  ;;  %vm6185_vm8 = vmmov %vm6180_vm3 }
 0x26b   : > { %v924_v35 = vsel %vm904_vm10, %v738_v32, 0.0  ;;  %v2214_v32 = vld [vmem:[#allocation2 + $0x18] sm:$0xff]  ;;  %vm2154_vm10 = vcmp.eq.s32.totalorder %v5196_v8, 1 }
 0x26c   : > { %2209 = vst.msk [vmem:[#allocation2 + $0x92] sm:$0xff] %vm6183_vm5, %v924_v35  ;;  %vm6186_vm5 = vmmov %vm6180_vm3 }
 0x29a   : > { %v4086_v56 = vpop.f32.mrf.mxu0 }
 0x29b   : > { %v1916_v60 = vadd.f32 %v4086_v56, %v5257_v40  ;;  %v2215_v56 = vld [vmem:[#allocation2 + $0x20] sm:$0xff] }
 0x29c   : > { %v1910_v62 = vpop.f32.mrf.mxu0 }
 0x29d   : > { %v2010_v21 = vmax.f32 %v1916_v60, 0.0  ;;  %v1911_v0 = vadd.f32 %v5257_v40, %v1910_v62 }
 0x29f   : > { %v2170_v3 = vsel %vm2150_vm11, %v2010_v21, 0.0  ;;  %v2009_v5 = vmax.f32 %v1911_v0, 0.0  ;;  %vm2153_vm11 = vcmp.eq.s32.totalorder %v5191_v1, 1 }
 0x2a0   : > { %v2232_v6 = vadd.f32 %v2212_v20, %v2170_v3  ;;  %v2216_v3 = vld [vmem:[#allocation2 + $0x28] sm:$0xff] }
 0x2a1   : > { %v2169_v11 = vsel %vm2149_vm0, %v2009_v5, 0.0  ;;  %vm6187_vm0 = vmmov %vm6180_vm3 }
 0x2a2   : > { %v5267_v13 = vmax.f32 %v2232_v6, 0.0  ;;  %v2231_v22 = vadd.f32 %v5178_v36, %v2169_v11 }
 0x2a3   : > { %v4089_v15 = vpop.f32.mrf.mxu0 }
 0x2a4   : > { %v1926_v16 = vadd.f32 %v4089_v15, %v5257_v40  ;;  %v5271_v19 = vmax.f32 %v2231_v22, 0.0  ;;  %2273 = vst.msk [vmem:[#allocation2 + $0xc] sm:$0xff] %vm6180_vm3, %v5267_v13  ;;  %2314 = vrot.lane.b32.xlu0 %v5267_v13, %s4241_s24  ;;  %vm2156_vm3 = vcmp.eq.s32.totalorder %v5204_v18, 1 }
 0x2a5   : > { %v1920_v44 = vpop.f32.mrf.mxu0 }
 0x2a6   : > { %v2012_v14 = vmax.f32 %v1926_v16, 0.0  ;;  %v1921_v31 = vadd.f32 %v5257_v40, %v1920_v44  ;;  %2272 = vst.msk [vmem:[#allocation2 + $0x4] sm:$0xff] %vm6184_vm15, %v5271_v19  ;;  %2312 = vrot.lane.b32.xlu1 %v5271_v19, %s4241_s24  ;;  %v2217_v16 = vld [vmem:[#allocation2 + $0x30] sm:$0xff]  ;;  %vm2155_vm15 = vcmp.eq.s32.totalorder %v5199_v12, 1 }
 0x2a8   : > { %v2172_v36 = vsel %vm2152_vm12, %v2012_v14, 0.0  ;;  %v2011_v43 = vmax.f32 %v1921_v31, 0.0  ;;  %2394 = vrot.lane.b32.xlu0 %v5267_v13, %s4243_s22  ;;  %vm6188_vm12 = vmmov %vm6187_vm0 }
 0x2a9   : > { %v2234_v51 = vadd.f32 %v2214_v32, %v2172_v36  ;;  %v2218_v36 = vld [vmem:[#allocation2 + $0x38] sm:$0xff] }
 0x2aa   : > { %v2171_v35 = vsel %vm2151_vm6, %v2011_v43, 0.0  ;;  %v4092_v61 = vpop.f32.mrf.mxu0  ;;  %2392 = vrot.lane.b32.xlu1 %v5271_v19, %s4243_s22  ;;  %vm6189_vm6 = vmmov %vm6187_vm0 }
 0x2ab   : > { %v5286_v39 = vmax.f32 %v2234_v51, 0.0  ;;  %v2233_v52 = vadd.f32 %v2213_v17, %v2171_v35  ;;  %v1936_v59 = vadd.f32 %v4092_v61, %v5257_v40 }
 0x2ac   : > { %v1930_v62 = vpop.f32.mrf.mxu0 }
 0x2ad   : > { %v5291_v60 = vmax.f32 %v2233_v52, 0.0  ;;  %2275 = vst.msk [vmem:[#allocation2 + $0x1c] sm:$0xff] %vm6185_vm8, %v5286_v39  ;;  %2318 = vrot.lane.b32.xlu0 %v5286_v39, %s4241_s24  ;;  %v2014_v48 = vmax.f32 %v1936_v59, 0.0  ;;  %v1931_v21 = vadd.f32 %v5257_v40, %v1930_v62  ;;  %v2219_v59 = vld [vmem:[#allocation2 + $0x40] sm:$0xff]  ;;  %vm2158_vm8 = vcmp.eq.s32.totalorder %v5212_v55, 1 }
 0x2af   : > { %2274 = vst.msk [vmem:[#allocation2 + $0x14] sm:$0xff] %vm6186_vm5, %v5291_v60  ;;  %2316 = vrot.lane.b32.xlu1 %v5291_v60, %s4241_s24  ;;  %v2174_v0 = vsel %vm2154_vm10, %v2014_v48, 0.0  ;;  %v2013_v20 = vmax.f32 %v1931_v21, 0.0  ;;  %vm6190_vm10 = vmmov %vm6187_vm0  ;;  %vm2157_vm5 = vcmp.eq.s32.totalorder %v5207_v47, 1 }
 0x2b0   : > { %v2236_v5 = vadd.f32 %v2216_v3, %v2174_v0  ;;  %v2220_v0 = vld [vmem:[#allocation2 + $0x48] sm:$0xff] }
 0x2b1   : > { %2398 = vrot.lane.b32.xlu0 %v5286_v39, %s4243_s22  ;;  %v2173_v6 = vsel %vm2153_vm11, %v2013_v20, 0.0  ;;  %vm6191_vm11 = vmmov %vm6187_vm0 }
 0x2b2   : > { %v5306_v11 = vmax.f32 %v2236_v5, 0.0  ;;  %v2235_v22 = vadd.f32 %v2215_v56, %v2173_v6  ;;  %v4095_v8 = vpop.f32.mrf.mxu0 }
 0x2b3   : > { %2396 = vrot.lane.b32.xlu1 %v5291_v60, %s4243_s22  ;;  %v1946_v15 = vadd.f32 %v4095_v8, %v5257_v40 }
 0x2b4   : > { %v5311_v17 = vmax.f32 %v2235_v22, 0.0  ;;  %v1940_v44 = vpop.f32.mrf.mxu0  ;;  %2277 = vst.msk [vmem:[#allocation2 + $0x2c] sm:$0xff] %vm6187_vm0, %v5306_v11  ;;  %vm2160_vm0 = vcmp.eq.s32.totalorder %v5222_v4, 1 }
 0x2b5   : > { %2322 = vrot.lane.b32.xlu0 %v5306_v11, %s4241_s24  ;;  %v2016_v1 = vmax.f32 %v1946_v15, 0.0  ;;  %v1941_v14 = vadd.f32 %v5257_v40, %v1940_v44  ;;  %v2221_v15 = vld [vmem:[#allocation2 + $0x50] sm:$0xff] }
 0x2b6   : > { %2276 = vst.msk [vmem:[#allocation2 + $0x24] sm:$0xff] %vm6188_vm12, %v5311_v17  ;;  %vm2159_vm12 = vcmp.eq.s32.totalorder %v5217_v63, 1 }
 0x2b7   : > { %2320 = vrot.lane.b32.xlu1 %v5311_v17, %s4241_s24  ;;  %v2176_v31 = vsel %vm2156_vm3, %v2016_v1, 0.0  ;;  %v2015_v32 = vmax.f32 %v1941_v14, 0.0  ;;  %vm6192_vm3 = vmmov %vm6189_vm6 }
 0x2b8   : > { %v2238_v43 = vadd.f32 %v2218_v36, %v2176_v31  ;;  %v2222_v31 = vld [vmem:[#allocation2 + $0x58] sm:$0xff] }
 0x2b9   : > { %2402 = vrot.lane.b32.xlu0 %v5306_v11, %s4243_s22  ;;  %v2175_v51 = vsel %vm2155_vm15, %v2015_v32, 0.0  ;;  %vm6195_vm15 = vmmov %vm6192_vm3 }
 0x2ba   : > { %v5326_v35 = vmax.f32 %v2238_v43, 0.0  ;;  %v2237_v52 = vadd.f32 %v2217_v16, %v2175_v51  ;;  %v4098_v18 = vpop.f32.mrf.mxu0 }
 0x2bb   : > { %2400 = vrot.lane.b32.xlu1 %v5311_v17, %s4243_s22  ;;  %v1956_v61 = vadd.f32 %v4098_v18, %v5257_v40 }
 0x2bc   : > { %v5331_v56 = vmax.f32 %v2237_v52, 0.0  ;;  %v1950_v62 = vpop.f32.mrf.mxu0  ;;  %2279 = vst.msk [vmem:[#allocation2 + $0x3c] sm:$0xff] %vm6189_vm6, %v5326_v35  ;;  %vm2162_vm6 = vcmp.eq.s32.totalorder %v5227_v7, 1 }
 0x2bd   : > { %2326 = vrot.lane.b32.xlu0 %v5326_v35, %s4241_s24  ;;  %v2018_v12 = vmax.f32 %v1956_v61, 0.0  ;;  %v1951_v48 = vadd.f32 %v5257_v40, %v1950_v62  ;;  %v2223_v61 = vld [vmem:[#allocation2 + $0x60] sm:$0xff] }
 0x2be   : > { %2278 = vst.msk [vmem:[#allocation2 + $0x34] sm:$0xff] %vm6190_vm10, %v5331_v56  ;;  %vm2161_vm10 = vcmp.eq.s32.totalorder %v5230_v9, 1 }
 0x2bf   : > { %2324 = vrot.lane.b32.xlu1 %v5331_v56, %s4241_s24  ;;  %v2178_v21 = vsel %vm2158_vm8, %v2018_v12, 0.0  ;;  %v2017_v3 = vmax.f32 %v1951_v48, 0.0  ;;  %vm6196_vm8 = vmmov %vm6192_vm3 }
 0x2c0   : > { %v2240_v20 = vadd.f32 %v2220_v0, %v2178_v21  ;;  %v2224_v21 = vld [vmem:[#allocation2 + $0x68] sm:$0xff] }
 0x2c1   : > { %2406 = vrot.lane.b32.xlu0 %v5326_v35, %s4243_s22  ;;  %v2177_v5 = vsel %vm2157_vm5, %v2017_v3, 0.0  ;;  %vm6199_vm5 = vmmov %vm6192_vm3 }
 0x2c2   : > { %v5346_v6 = vmax.f32 %v2240_v20, 0.0  ;;  %v2239_v22 = vadd.f32 %v2219_v59, %v2177_v5  ;;  %v4101_v55 = vpop.f32.mrf.mxu0 }
 0x2c3   : > { %2404 = vrot.lane.b32.xlu1 %v5331_v56, %s4243_s22  ;;  %v1966_v8 = vadd.f32 %v4101_v55, %v5257_v40 }
 0x2c4   : > { %v5351_v16 = vmax.f32 %v2239_v22, 0.0  ;;  %v1960_v44 = vpop.f32.mrf.mxu0  ;;  %2281 = vst.msk [vmem:[#allocation2 + $0x4c] sm:$0xff] %vm6191_vm11, %v5346_v6  ;;  %vm2164_vm11 = vcmp.eq.s32.totalorder %v5232_v23, 1 }
 0x2c5   : > { %2330 = vrot.lane.b32.xlu0 %v5346_v6, %s4241_s24  ;;  %v2020_v47 = vmax.f32 %v1966_v8, 0.0  ;;  %v1961_v1 = vadd.f32 %v5257_v40, %v1960_v44  ;;  %v2225_v8 = vld [vmem:[#allocation2 + $0x70] sm:$0xff] }
 0x2c6   : > { %2280 = vst.msk [vmem:[#allocation2 + $0x44] sm:$0xff] %vm6192_vm3, %v5351_v16 }
 0x2c7   : > { %2328 = vrot.lane.b32.xlu1 %v5351_v16, %s4241_s24  ;;  %v2180_v14 = vsel %vm2160_vm0, %v2020_v47, 0.0  ;;  %v2019_v36 = vmax.f32 %v1961_v1, 0.0  ;;  %vm6200_vm0 = vmmov %vm6192_vm3  ;;  %vm2163_vm3 = vcmp.eq.s32.totalorder %v5234_v10, 1  ;;  %v2139_v10 = vpop.permute.xlu1 %2138 }
 0x2c8   : > { %v2242_v32 = vadd.f32 %v2222_v31, %v2180_v14  ;;  %v2226_v14 = vld [vmem:[#allocation2 + $0x78] sm:$0xff] }
 0x2c9   : > { %2410 = vrot.lane.b32.xlu0 %v5346_v6, %s4243_s22  ;;  %v2179_v43 = vsel %vm2159_vm12, %v2019_v36, 0.0  ;;  %vm6203_vm12 = vmmov %vm6200_vm0 }
 0x2ca   : > { %v5366_v51 = vmax.f32 %v2242_v32, 0.0  ;;  %v2241_v52 = vadd.f32 %v2221_v15, %v2179_v43  ;;  %v4104_v4 = vpop.f32.mrf.mxu0 }
 0x2cb   : > { %2408 = vrot.lane.b32.xlu1 %v5351_v16, %s4243_s22  ;;  %v1976_v18 = vadd.f32 %v4104_v4, %v5257_v40  ;;  %v2142_v4 = vpop.permute.xlu0 %2141 }
 0x2cc   : > { %6193 = vst [vmem:[#allocation3_spill] sm:$0xff] %v5366_v51  ;;  %v5371_v59 = vmax.f32 %v2241_v52, 0.0  ;;  %v1970_v62 = vpop.f32.mrf.mxu0  ;;  %2283 = vst.msk [vmem:[#allocation2 + $0x5c] sm:$0xff] %vm6195_vm15, %v5366_v51  ;;  %vm2166_vm15 = vcmp.eq.s32.totalorder %v2142_v4, 1 }
 0x2cd   : > { %2334 = vrot.lane.b32.xlu0 %v5366_v51, %s4241_s24  ;;  %v2022_v63 = vmax.f32 %v1976_v18, 0.0  ;;  %v1971_v12 = vadd.f32 %v5257_v40, %v1970_v62 }
 0x2ce   : > { %6194 = vst [vmem:[#allocation4_spill] sm:$0xff] %v5371_v59  ;;  %2282 = vst.msk [vmem:[#allocation2 + $0x54] sm:$0xff] %vm6196_vm8, %v5371_v59  ;;  %vm2165_vm8 = vcmp.eq.s32.totalorder %v2139_v10, 1 }
 0x2cf   : > { %2332 = vrot.lane.b32.xlu1 %v5371_v59, %s4241_s24  ;;  %v2182_v48 = vsel %vm2162_vm6, %v2022_v63, 0.0  ;;  %v2021_v0 = vmax.f32 %v1971_v12, 0.0  ;;  %vm6204_vm6 = vmmov %vm6200_vm0 }
 0x2d0   : > { %v2244_v3 = vadd.f32 %v2224_v21, %v2182_v48 }
 0x2d1   : > { %2414 = vrot.lane.b32.xlu0 %v5366_v51, %s4243_s22  ;;  %v2181_v20 = vsel %vm2161_vm10, %v2021_v0, 0.0  ;;  %v2228_v0 = vld [vmem:[#allocation2 + $0x88] sm:$0xff]  ;;  %vm6207_vm10 = vmmov %vm6200_vm0  ;;  %v3128_v51 = vld [vmem:[%s6099_s10] sm:$0xff] }
 0x2d2   : > { %v5386_v5 = vmax.f32 %v2244_v3, 0.0  ;;  %v2243_v22 = vadd.f32 %v2223_v61, %v2181_v20  ;;  %v4107_v7 = vpop.f32.mrf.mxu0  ;;  %v2227_v61 = vld [vmem:[#allocation2 + $0x80] sm:$0xff] }
 0x2d3   : > { %2412 = vrot.lane.b32.xlu1 %v5371_v59, %s4243_s22  ;;  %v1986_v55 = vadd.f32 %v4107_v7, %v5257_v40 }
 0x2d4   : > { %6197 = vst [vmem:[#allocation5_spill] sm:$0xff] %v5386_v5  ;;  %v5391_v15 = vmax.f32 %v2243_v22, 0.0  ;;  %v1980_v44 = vpop.f32.mrf.mxu0  ;;  %2285 = vst.msk [vmem:[#allocation2 + $0x6c] sm:$0xff] %vm6199_vm5, %v5386_v5 }
 0x2d5   : > { %2338 = vrot.lane.b32.xlu0 %v5386_v5, %s4241_s24  ;;  %v2024_v9 = vmax.f32 %v1986_v55, 0.0  ;;  %v1981_v47 = vadd.f32 %v5257_v40, %v1980_v44  ;;  %v2148_v44 = vpop.permute.xlu0 %2147 }
 0x2d6   : > { %6198 = vst [vmem:[#allocation6_spill] sm:$0xff] %v5391_v15  ;;  %2284 = vst.msk [vmem:[#allocation2 + $0x64] sm:$0xff] %vm6200_vm0, %v5391_v15  ;;  %vm2168_vm5 = vcmp.eq.s32.totalorder %v2148_v44, 1 }
 0x2d7   : > { %2336 = vrot.lane.b32.xlu1 %v5391_v15, %s4241_s24  ;;  %v2184_v1 = vsel %vm2164_vm11, %v2024_v9, 0.0  ;;  %v2023_v31 = vmax.f32 %v1981_v47, 0.0  ;;  %v2229_v47 = vld [vmem:[#allocation2 + $0x90] sm:$0xff]  ;;  %vm6208_vm11 = vmmov %vm6200_vm0 }
 0x2d8   : > { %v2246_v36 = vadd.f32 %v2226_v14, %v2184_v1 }
 0x2d9   : > { %2418 = vrot.lane.b32.xlu0 %v5386_v5, %s4243_s22  ;;  %v2183_v32 = vsel %vm2163_vm3, %v2023_v31, 0.0  ;;  %v2145_v31 = vpop.permute.xlu1 %2144  ;;  %v3129_v5 = vld [vmem:[%s6099_s10 + $0x8] sm:$0xff] }
 0x2da   : > { %v5406_v43 = vmax.f32 %v2246_v36, 0.0  ;;  %v2245_v52 = vadd.f32 %v2225_v8, %v2183_v32  ;;  %v4110_v23 = vpop.f32.mrf.mxu0  ;;  %vm2167_vm0 = vcmp.eq.s32.totalorder %v2145_v31, 1 }
 0x2db   : > { %2416 = vrot.lane.b32.xlu1 %v5391_v15, %s4243_s22  ;;  %v1996_v18 = vadd.f32 %v4110_v23, %v5257_v40  ;;  %v2230_v23 = vld [vmem:[#allocation2 + $0x98] sm:$0xff] }
 0x2dc   : > { %6201 = vst [vmem:[#allocation7_spill] sm:$0xff] %v5406_v43  ;;  %v5411_v62 = vmax.f32 %v2245_v52, 0.0  ;;  %v1990_v63 = vpop.f32.mrf.mxu0  ;;  %2287 = vst.msk [vmem:[#allocation2 + $0x7c] sm:$0xff] %vm6203_vm12, %v5406_v43 }
 0x2dd   : > { %2342 = vrot.lane.b32.xlu0 %v5406_v43, %s4241_s24  ;;  %v2026_v12 = vmax.f32 %v1996_v18, 0.0  ;;  %v1991_v48 = vadd.f32 %v5257_v40, %v1990_v63  ;;  %vm6210_vm12 = vmmov %vm6204_vm6 }
 0x2de   : > { %6202 = vst [vmem:[#allocation8_spill] sm:$0xff] %v5411_v62  ;;  %2286 = vst.msk [vmem:[#allocation2 + $0x74] sm:$0xff] %vm6204_vm6, %v5411_v62 }
 0x2df   : > { %2340 = vrot.lane.b32.xlu1 %v5411_v62, %s4241_s24  ;;  %v2186_v21 = vsel %vm2166_vm15, %v2026_v12, 0.0  ;;  %v2025_v3 = vmax.f32 %v1991_v48, 0.0  ;;  %v5461_v48 = vld [vmem:[%s6089_s0] sm:$0xff] }
 0x2e0   : > { %v2248_v20 = vadd.f32 %v2228_v0, %v2186_v21  ;;  %vm2747_vm15 = vcmp.lt.s32.totalorder %v5461_v48, 24  ;;  %v5473_v21 = vld [vmem:[%s6089_s0 + $0x18] sm:$0xff] }
 0x2e1   : > { %2422 = vrot.lane.b32.xlu0 %v5406_v43, %s4243_s22  ;;  %v2185_v22 = vsel %vm2165_vm8, %v2025_v3, 0.0  ;;  %vm6212_vm8 = vcmp.ge.s32.totalorder %v4553_v26, 4  ;;  %v5484_v3 = vld [vmem:[%s6089_s0 + $0x10] sm:$0xff] }
 0x2e2   : > { %v5424_v7 = vmax.f32 %v2248_v20, 0.0  ;;  %v2247_v55 = vadd.f32 %v2227_v61, %v2185_v22  ;;  %v4113_v8 = vpop.f32.mrf.mxu0  ;;  %v5495_v22 = vld [vmem:[%s6089_s0 + $0x28] sm:$0xff] }
 0x2e3   : > { %2420 = vrot.lane.b32.xlu1 %v5411_v62, %s4243_s22  ;;  %v2006_v9 = vadd.f32 %v4113_v8, %v5257_v40  ;;  %v5504_v8 = vld [vmem:[%s6089_s0 + $0x20] sm:$0xff] }
 0x2e4   : > { %6205 = vst [vmem:[#allocation9_spill] sm:$0xff] %v5424_v7  ;;  %v5429_v1 = vmax.f32 %v2247_v55, 0.0  ;;  %v2000_v14 = vpop.f32.mrf.mxu0  ;;  %2289 = vst.msk [vmem:[#allocation2 + $0x8c] sm:$0xff] %vm6207_vm10, %v5424_v7 }
 0x2e5   : > { %2346 = vrot.lane.b32.xlu0 %v5424_v7, %s4241_s24  ;;  %v2028_v36 = vmax.f32 %v2006_v9, 0.0  ;;  %v2001_v32 = vadd.f32 %v5257_v40, %v2000_v14  ;;  %v5449_v40 = vld [vmem:[%s6089_s0 + $0x8] sm:$0xff]  ;;  %v5513_v9 = vld [vmem:[%s6089_s0 + $0x38] sm:$0xff]  ;;  %v5522_v14 = vld [vmem:[%s6089_s0 + $0x30] sm:$0xff] }
 0x2e6   : > { %6206 = vst [vmem:[#allocation10_spill] sm:$0xff] %v5429_v1  ;;  %2288 = vst.msk [vmem:[#allocation2 + $0x84] sm:$0xff] %vm6208_vm11, %v5429_v1  ;;  %vm2748_vm3 = vcmp.lt.s32.totalorder %v5449_v40, 24  ;;  %vm6213_vm11 = vcmp.ge.s32.totalorder %v4544_v25, 4 }
 0x2e7   : > { %2344 = vrot.lane.b32.xlu1 %v5429_v1, %s4241_s24  ;;  %v2188_v52 = vsel %vm2168_vm5, %v2028_v36, 0.0  ;;  %v2027_v4 = vmax.f32 %v2001_v32, 0.0  ;;  %vm2768_vm10 = vmand %vm6212_vm8, %vm2748_vm3  ;;  %vm2750_vm5 = vcmp.lt.s32.totalorder %v5473_v21, 24  ;;  %vm2749_vm3 = vcmp.lt.s32.totalorder %v5484_v3, 24  ;;  %v5531_v36 = vld [vmem:[%s6089_s0 + $0x48] sm:$0xff] }
 0x2e8   : > { %v2250_v18 = vadd.f32 %v2230_v23, %v2188_v52  ;;  %v2788_v0 = vsel %vm2768_vm10, 1, %v6131_v24  ;;  %vm6215_vm8 = vcmp.ge.s32.totalorder %v4571_v28, 4  ;;  %v5540_v52 = vld [vmem:[%s6089_s0 + $0x40] sm:$0xff] }
 0x2e9   : > { %2426 = vrot.lane.b32.xlu0 %v5424_v7, %s4243_s22  ;;  %v2187_v61 = vsel %vm2167_vm0, %v2027_v4, 0.0  ;;  %vm2767_vm0 = vmand %vm6213_vm11, %vm2747_vm15  ;;  %vm2752_vm15 = vcmp.lt.s32.totalorder %v5495_v22, 24  ;;  %vm6216_vm11 = vcmp.ge.s32.totalorder %v4584_v29, 4  ;;  %v5549_v4 = vld [vmem:[%s6089_s0 + $0x58] sm:$0xff] }
 0x2ea   : > { %v5442_v63 = vmax.f32 %v2250_v18, 0.0  ;;  %v2249_v10 = vadd.f32 %v2229_v47, %v2187_v61  ;;  %v2787_v20 = vsel %vm2767_vm0, 1, %v6131_v24  ;;  %vm2769_vm10 = vmand %vm6215_vm8, %vm2749_vm3  ;;  %vm2754_vm3 = vcmp.lt.s32.totalorder %v5513_v9, 24  ;;  %v5558_v61 = vld [vmem:[%s6089_s0 + $0x50] sm:$0xff] }
 0x2eb   : > { %2424 = vrot.lane.b32.xlu1 %v5429_v1, %s4243_s22  ;;  %vm2772_vm0 = vmand %vm6216_vm11, %vm2752_vm15  ;;  %v2789_v44 = vsel %vm2769_vm10, 1, %v6131_v24  ;;  %vm2753_vm15 = vcmp.lt.s32.totalorder %v5522_v14, 24  ;;  %vm6218_vm8 = vcmp.ge.s32.totalorder %v4608_v33, 4  ;;  %vm6219_vm11 = vcmp.ge.s32.totalorder %v4613_v34, 4 }
 0x2ec   : > { %6209 = vst [vmem:[#allocation11_spill] sm:$0xff] %v5442_v63  ;;  %2291 = vst.msk [vmem:[#allocation2 + $0x9c] sm:$0xff] %vm6210_vm12, %v5442_v63  ;;  %v5454_v12 = vmax.f32 %v2249_v10, 0.0  ;;  %vm6214_vm12 = vcmp.ge.s32.totalorder %v4562_v27, 4  ;;  %v2792_v47 = vsel %vm2772_vm0, 1, %v6131_v24 }
 0x2ed   : > { %2350 = vrot.lane.b32.xlu0 %v5442_v63, %s4241_s24  ;;  %vm2774_vm10 = vmand %vm6218_vm8, %vm2754_vm3  ;;  %vm2755_vm3 = vcmp.lt.s32.totalorder %v5540_v52, 24  ;;  %vm6221_vm8 = vcmp.ge.s32.totalorder %v4633_v38, 4 }
 0x2ee   : > { %6211 = vst [vmem:[#allocation12_spill] sm:$0xff] %v5454_v12  ;;  %2290 = vst.msk [vmem:[#allocation2 + $0x94] sm:$0xff] %vm6204_vm6, %v5454_v12  ;;  %v2794_v32 = vsel %vm2774_vm10, 1, %v6131_v24 }
 0x2ef   : > { %2348 = vrot.lane.b32.xlu1 %v5454_v12, %s4241_s24  ;;  %vm2770_vm6 = vmand %vm6214_vm12, %vm2750_vm5  ;;  %vm2751_vm5 = vcmp.lt.s32.totalorder %v5504_v8, 24  ;;  %vm6217_vm12 = vcmp.ge.s32.totalorder %v4593_v30, 4 }
 0x2f0   : > { %v2790_v55 = vsel %vm2770_vm6, 1, %v6131_v24  ;;  %vm2771_vm6 = vmand %vm6217_vm12, %vm2751_vm5  ;;  %vm2756_vm5 = vcmp.lt.s32.totalorder %v5531_v36, 24  ;;  %vm6220_vm12 = vcmp.ge.s32.totalorder %v4628_v37, 4 }
 0x2f1   : > { %2430 = vrot.lane.b32.xlu0 %v5442_v63, %s4243_s22  ;;  %v2791_v31 = vsel %vm2771_vm6, 1, %v6131_v24  ;;  %vm2773_vm0 = vmand %vm6219_vm11, %vm2753_vm15  ;;  %vm2758_vm15 = vcmp.lt.s32.totalorder %v5549_v4, 24  ;;  %vm6222_vm11 = vcmp.ge.s32.totalorder %v4648_v41, 4 }
 0x2f2   : > { %vm2776_vm6 = vmand %vm6220_vm12, %vm2756_vm5  ;;  %v2793_v23 = vsel %vm2773_vm0, 1, %v6131_v24  ;;  %vm2757_vm5 = vcmp.lt.s32.totalorder %v5558_v61, 24  ;;  %vm6223_vm12 = vcmp.ge.s32.totalorder %v4653_v42, 4 }
 0x2f3   : > { %2428 = vrot.lane.b32.xlu1 %v5454_v12, %s4243_s22  ;;  %vm2775_vm10 = vmand %vm6221_vm8, %vm2755_vm3  ;;  %v2796_v18 = vsel %vm2776_vm6, 1, %v6131_v24  ;;  %vm6224_vm8 = vcmp.ge.s32.totalorder %v4668_v45, 4 }
 0x2f4   : > { %vm2778_vm0 = vmand %vm6222_vm11, %vm2758_vm15  ;;  %v2795_v10 = vsel %vm2775_vm10, 1, %v6131_v24  ;;  %vm6225_vm11 = vcmp.ge.s32.totalorder %v4673_v46, 4 }
 0x2f5   : > { %2811 = vperm.xlu0 %4202, %v2788_v0   ;;  %v5567_v0 = vld [vmem:[%s6089_s0 + $0x68] sm:$0xff]  ;;  %vm2777_vm6 = vmand %vm6223_vm12, %vm2757_vm5  ;;  %vm6226_vm12 = vcmp.ge.s32.totalorder %v4688_v49, 4 }
 0x2f6   : > { %vm2760_vm3 = vcmp.lt.s32.totalorder %v5567_v0, 24 }
 0x2f7   : > { %2808 = vperm.xlu1 %4203, %v2787_v20   ;;  %v2798_v20 = vsel %vm2778_vm0, 1, %v6131_v24  ;;  %vm2780_vm10 = vmand %vm6224_vm8, %vm2760_vm3  ;;  %vm6227_vm8 = vcmp.ge.s32.totalorder %v4693_v50, 4 }
 0x2f9   : > { %2817 = vperm.xlu0 %4202, %v2790_v55   ;;  %v5576_v55 = vld [vmem:[%s6089_s0 + $0x60] sm:$0xff] }
 0x2fa   : > { %vm2759_vm15 = vcmp.lt.s32.totalorder %v5576_v55, 24 }
 0x2fb   : > { %2814 = vperm.xlu1 %4203, %v2789_v44   ;;  %v2797_v44 = vsel %vm2777_vm6, 1, %v6131_v24  ;;  %vm2779_vm0 = vmand %vm6225_vm11, %vm2759_vm15 }
 0x2fd   : > { %2823 = vperm.xlu0 %4202, %v2792_v47   ;;  %v5585_v47 = vld [vmem:[%s6089_s0 + $0x78] sm:$0xff] }
 0x2fe   : > { %vm2762_vm5 = vcmp.lt.s32.totalorder %v5585_v47, 24 }
 0x2ff   : > { %2820 = vperm.xlu1 %4203, %v2791_v31   ;;  %v2800_v31 = vsel %vm2780_vm10, 1, %v6131_v24  ;;  %vm2782_vm6 = vmand %vm6226_vm12, %vm2762_vm5 }
 0x301   : > { %2829 = vperm.xlu0 %4202, %v2794_v32   ;;  %v5594_v32 = vld [vmem:[%s6089_s0 + $0x70] sm:$0xff] }
 0x302   : > { %vm2761_vm3 = vcmp.lt.s32.totalorder %v5594_v32, 24 }
 0x303   : > { %2826 = vperm.xlu1 %4203, %v2793_v23   ;;  %v2799_v23 = vsel %vm2779_vm0, 1, %v6131_v24  ;;  %vm2781_vm10 = vmand %vm6227_vm8, %vm2761_vm3 }
 0x305   : > { %2835 = vperm.xlu0 %4202, %v2796_v18   ;;  %v5603_v18 = vld [vmem:[%s6089_s0 + $0x88] sm:$0xff] }
 0x306   : > { %vm2764_vm15 = vcmp.lt.s32.totalorder %v5603_v18, 24 }
 0x307   : > { %2832 = vperm.xlu1 %4203, %v2795_v10   ;;  %v2802_v10 = vsel %vm2782_vm6, 1, %v6131_v24  ;;  %vm2784_vm11 = vmand %vm763_vm13, %vm2764_vm15  ;;  %vm6228_vm15 = vcmp.ge.s32.totalorder %v4733_v58, 4 }
 0x308   : > { %v2804_v2 = vsel %vm2784_vm11, 1, %v6131_v24 }
 0x309   : > { %2841 = vperm.xlu0 %4202, %v2798_v20   ;;  %v5612_v20 = vld [vmem:[%s6089_s0 + $0x80] sm:$0xff] }
 0x30a   : > { %vm2763_vm5 = vcmp.lt.s32.totalorder %v5612_v20, 24 }
 0x30b   : > { %2838 = vperm.xlu1 %4203, %v2797_v44   ;;  %v2801_v44 = vsel %vm2781_vm10, 1, %v6131_v24  ;;  %vm2783_vm3 = vmand %vm762_vm14, %vm2763_vm5  ;;  %vm6230_vm10 = vcmask 191488  }
 0x30c   : > { %v2803_v12 = vsel %vm2783_vm3, 1, %v6131_v24 }
 0x30d   : > { %2847 = vperm.xlu0 %4202, %v2800_v31   ;;  %v5621_v31 = vld [vmem:[%s6089_s0 + $0x98] sm:$0xff] }
 0x30e   : > { %vm2766_vm0 = vcmp.lt.s32.totalorder %v5621_v31, 24 }
 0x30f   : > { %2844 = vperm.xlu1 %4203, %v2799_v23   ;;  %v5630_v23 = vld [vmem:[%s6089_s0 + $0x90] sm:$0xff]  ;;  %vm2786_vm6 = vmand %vm765_vm4, %vm2766_vm0  ;;  %vm6231_vm0 = vcmask 64512  }
 0x310   : > { %vm2765_vm12 = vcmp.lt.s32.totalorder %v5630_v23, 24  ;;  %vm6232_vm3 = vmmov %vm6231_vm0 }
 0x311   : > { %2853 = vperm.xlu0 %4202, %v2802_v10   ;;  %vm2785_vm8 = vmand %vm6228_vm15, %vm2765_vm12  ;;  %v2806_v10 = vsel %vm2786_vm6, 1, %v6131_v24 }
 0x312   : > { %v2805_v63 = vsel %vm2785_vm8, 1, %v6131_v24  ;;  %vm6233_vm15 = vmmov %vm6231_vm0 }
 0x313   : > { %2850 = vperm.xlu1 %4203, %v2801_v44   ;;  %vm6234_vm8 = vmmov %vm6231_vm0 }
 0x315   : > { %2859 = vperm.xlu0 %4202, %v2804_v2  }
 0x316   : > { %v2315_v7 = vpop.permute.xlu0 %2314 }
 0x317   : > { %2856 = vperm.xlu1 %4203, %v2803_v12   ;;  %2373 = vst.msk [vmem:[#allocation2 + $0xa] sm:$0xff] %vm1651_vm2, %v2315_v7 }
 0x318   : > { %v2313_v1 = vpop.permute.xlu1 %2312 }
 0x319   : > { %2865 = vperm.xlu0 %4202, %v2806_v10   ;;  %2372 = vst.msk [vmem:[#allocation2 + $0x2] sm:$0xff] %vm1651_vm2, %v2313_v1  ;;  %v6229_v1 = vmov 0.0  }
 0x31a   : > { %v2395_v44 = vpop.permute.xlu0 %2394 }
 0x31b   : > { %2862 = vperm.xlu1 %4203, %v2805_v63   ;;  %2453 = vst.msk [vmem:[#allocation2 + $0x8] sm:$0xff] %vm1732_vm7, %v2395_v44 }
 0x31c   : > { %v2393_v2 = vpop.permute.xlu1 %2392 }
 0x31d   : > { %2452 = vst.msk [vmem:[#allocation2] sm:$0xff] %vm1732_vm7, %v2393_v2 }
 0x31f   : > { %v2319_v43 = vpop.permute.xlu0 %2318 }
 0x320   : > { %2375 = vst.msk [vmem:[#allocation2 + $0x1a] sm:$0xff] %vm1651_vm2, %v2319_v43 }
 0x321   : > { %v2317_v62 = vpop.permute.xlu1 %2316 }
 0x322   : > { %2374 = vst.msk [vmem:[#allocation2 + $0x12] sm:$0xff] %vm1651_vm2, %v2317_v62  ;;  %v2473_v63 = vld [vmem:[#allocation2 + $0x8] sm:$0xff] }
 0x323   : > { %v2399_v7 = vpop.permute.xlu0 %2398 }
 0x324   : > { %2455 = vst.msk [vmem:[#allocation2 + $0x18] sm:$0xff] %vm1732_vm7, %v2399_v7  ;;  %v2472_v10 = vld [vmem:[#allocation2] sm:$0xff] }
 0x325   : > { %v2397_v12 = vpop.permute.xlu1 %2396  ;;  %4120 = vmatprep.mubr.msk.f32.mxu1 %vm6138_vm9, %v2472_v10  ;;  %2907 = vst.msk [vmem:[#allocation2] sm:$0xf] %vm6230_vm10, %v6229_v1 }
 0x326   : > { %2454 = vst.msk [vmem:[#allocation2 + $0x10] sm:$0xff] %vm1732_vm7, %v2397_v12  ;;  %4121 = vmatmul.mubr.msk.f32.vlgmr.msra.gmra.mxu1 %vm6138_vm9, %v2473_v63 }
 0x327   : > { %v2323_v44 = vpop.permute.xlu0 %2322 }
 0x328   : > { %2377 = vst.msk [vmem:[#allocation2 + $0x2a] sm:$0xff] %vm1651_vm2, %v2323_v44 }
 0x329   : > { %v2321_v43 = vpop.permute.xlu1 %2320 }
 0x32a   : > { %2376 = vst.msk [vmem:[#allocation2 + $0x22] sm:$0xff] %vm1651_vm2, %v2321_v43 }
 0x32b   : > { %v2403_v62 = vpop.permute.xlu0 %2402  ;;  %v2475_v12 = vld [vmem:[#allocation2 + $0x18] sm:$0xff] }
 0x32c   : > { %2457 = vst.msk [vmem:[#allocation2 + $0x28] sm:$0xff] %vm1732_vm7, %v2403_v62 }
 0x32d   : > { %v2401_v2 = vpop.permute.xlu1 %2400  ;;  %v2474_v7 = vld [vmem:[#allocation2 + $0x10] sm:$0xff] }
 0x32e   : > { %2456 = vst.msk [vmem:[#allocation2 + $0x20] sm:$0xff] %vm1732_vm7, %v2401_v2  ;;  %4123 = vmatprep.mubr.msk.f32.mxu1 %vm6138_vm9, %v2474_v7 }
 0x32f   : > { %v2327_v10 = vpop.permute.xlu0 %2326  ;;  %4124 = vmatmul.mubr.msk.f32.gmra.mxu1 %vm6138_vm9, %v2475_v12 }
 0x330   : > { %2379 = vst.msk [vmem:[#allocation2 + $0x3a] sm:$0xff] %vm1651_vm2, %v2327_v10 }
 0x331   : > { %v2325_v63 = vpop.permute.xlu1 %2324 }
 0x332   : > { %2378 = vst.msk [vmem:[#allocation2 + $0x32] sm:$0xff] %vm1651_vm2, %v2325_v63 }
 0x333   : > { %v2407_v44 = vpop.permute.xlu0 %2406  ;;  %v2477_v2 = vld [vmem:[#allocation2 + $0x28] sm:$0xff] }
 0x334   : > { %2459 = vst.msk [vmem:[#allocation2 + $0x38] sm:$0xff] %vm1732_vm7, %v2407_v44 }
 0x335   : > { %v2405_v43 = vpop.permute.xlu1 %2404  ;;  %v2476_v62 = vld [vmem:[#allocation2 + $0x20] sm:$0xff] }
 0x336   : > { %2458 = vst.msk [vmem:[#allocation2 + $0x30] sm:$0xff] %vm1732_vm7, %v2405_v43  ;;  %4126 = vmatprep.mubr.msk.f32.mxu1 %vm6138_vm9, %v2476_v62 }
 0x337   : > { %v2331_v7 = vpop.permute.xlu0 %2330  ;;  %4127 = vmatmul.mubr.msk.f32.gmra.mxu1 %vm6138_vm9, %v2477_v2 }
 0x338   : > { %2381 = vst.msk [vmem:[#allocation2 + $0x4a] sm:$0xff] %vm1651_vm2, %v2331_v7 }
 0x339   : > { %v2329_v12 = vpop.permute.xlu1 %2328 }
 0x33a   : > { %2380 = vst.msk [vmem:[#allocation2 + $0x42] sm:$0xff] %vm1651_vm2, %v2329_v12 }
 0x33b   : > { %v2411_v10 = vpop.permute.xlu0 %2410  ;;  %v2479_v43 = vld [vmem:[#allocation2 + $0x38] sm:$0xff] }
 0x33c   : > { %2461 = vst.msk [vmem:[#allocation2 + $0x48] sm:$0xff] %vm1732_vm7, %v2411_v10 }
 0x33d   : > { %v2409_v63 = vpop.permute.xlu1 %2408  ;;  %v2478_v44 = vld [vmem:[#allocation2 + $0x30] sm:$0xff] }
 0x33e   : > { %2460 = vst.msk [vmem:[#allocation2 + $0x40] sm:$0xff] %vm1732_vm7, %v2409_v63  ;;  %4129 = vmatprep.mubr.msk.f32.mxu1 %vm6138_vm9, %v2478_v44 }
 0x33f   : > { %v2335_v62 = vpop.permute.xlu0 %2334  ;;  %4130 = vmatmul.mubr.msk.f32.gmra.mxu1 %vm6138_vm9, %v2479_v43 }
 0x340   : > { %2383 = vst.msk [vmem:[#allocation2 + $0x5a] sm:$0xff] %vm1651_vm2, %v2335_v62 }
 0x341   : > { %v2333_v2 = vpop.permute.xlu1 %2332 }
 0x342   : > { %2382 = vst.msk [vmem:[#allocation2 + $0x52] sm:$0xff] %vm1651_vm2, %v2333_v2 }
 0x343   : > { %v2415_v7 = vpop.permute.xlu0 %2414  ;;  %v2481_v63 = vld [vmem:[#allocation2 + $0x48] sm:$0xff] }
 0x344   : > { %2463 = vst.msk [vmem:[#allocation2 + $0x58] sm:$0xff] %vm1732_vm7, %v2415_v7 }
 0x345   : > { %v2413_v12 = vpop.permute.xlu1 %2412  ;;  %v2480_v10 = vld [vmem:[#allocation2 + $0x40] sm:$0xff] }
 0x346   : > { %2462 = vst.msk [vmem:[#allocation2 + $0x50] sm:$0xff] %vm1732_vm7, %v2413_v12  ;;  %4132 = vmatprep.mubr.msk.f32.mxu1 %vm6138_vm9, %v2480_v10 }
 0x347   : > { %v2339_v44 = vpop.permute.xlu0 %2338  ;;  %4133 = vmatmul.mubr.msk.f32.gmra.mxu1 %vm6138_vm9, %v2481_v63 }
 0x348   : > { %2385 = vst.msk [vmem:[#allocation2 + $0x6a] sm:$0xff] %vm1651_vm2, %v2339_v44 }
 0x349   : > { %v2337_v43 = vpop.permute.xlu1 %2336 }
 0x34a   : > { %2384 = vst.msk [vmem:[#allocation2 + $0x62] sm:$0xff] %vm1651_vm2, %v2337_v43 }
 0x34b   : > { %v2419_v62 = vpop.permute.xlu0 %2418  ;;  %v2483_v12 = vld [vmem:[#allocation2 + $0x58] sm:$0xff] }
 0x34c   : > { %2465 = vst.msk [vmem:[#allocation2 + $0x68] sm:$0xff] %vm1732_vm7, %v2419_v62 }
 0x34d   : > { %v2417_v2 = vpop.permute.xlu1 %2416  ;;  %v2482_v7 = vld [vmem:[#allocation2 + $0x50] sm:$0xff] }
 0x34e   : > { %2464 = vst.msk [vmem:[#allocation2 + $0x60] sm:$0xff] %vm1732_vm7, %v2417_v2  ;;  %4135 = vmatprep.mubr.msk.f32.mxu1 %vm6138_vm9, %v2482_v7 }
 0x34f   : > { %v2343_v10 = vpop.permute.xlu0 %2342  ;;  %4136 = vmatmul.mubr.msk.f32.gmra.mxu1 %vm6138_vm9, %v2483_v12 }
 0x350   : > { %2387 = vst.msk [vmem:[#allocation2 + $0x7a] sm:$0xff] %vm1651_vm2, %v2343_v10 }
 0x351   : > { %v2341_v63 = vpop.permute.xlu1 %2340 }
 0x352   : > { %2386 = vst.msk [vmem:[#allocation2 + $0x72] sm:$0xff] %vm1651_vm2, %v2341_v63 }
 0x353   : > { %v2423_v44 = vpop.permute.xlu0 %2422  ;;  %v2485_v2 = vld [vmem:[#allocation2 + $0x68] sm:$0xff] }
 0x354   : > { %2467 = vst.msk [vmem:[#allocation2 + $0x78] sm:$0xff] %vm1732_vm7, %v2423_v44 }
 0x355   : > { %v2421_v43 = vpop.permute.xlu1 %2420  ;;  %v2484_v62 = vld [vmem:[#allocation2 + $0x60] sm:$0xff] }
 0x356   : > { %2466 = vst.msk [vmem:[#allocation2 + $0x70] sm:$0xff] %vm1732_vm7, %v2421_v43  ;;  %4138 = vmatprep.mubr.msk.f32.mxu1 %vm6138_vm9, %v2484_v62 }
 0x357   : > { %v2347_v7 = vpop.permute.xlu0 %2346  ;;  %4139 = vmatmul.mubr.msk.f32.gmra.mxu1 %vm6138_vm9, %v2485_v2 }
 0x358   : > { %2389 = vst.msk [vmem:[#allocation2 + $0x8a] sm:$0xff] %vm1651_vm2, %v2347_v7 }
 0x359   : > { %v2345_v12 = vpop.permute.xlu1 %2344 }
 0x35a   : > { %2388 = vst.msk [vmem:[#allocation2 + $0x82] sm:$0xff] %vm1651_vm2, %v2345_v12 }
 0x35b   : > { %v2427_v10 = vpop.permute.xlu0 %2426  ;;  %v2487_v43 = vld [vmem:[#allocation2 + $0x78] sm:$0xff] }
 0x35c   : > { %2469 = vst.msk [vmem:[#allocation2 + $0x88] sm:$0xff] %vm1732_vm7, %v2427_v10 }
 0x35d   : > { %v2425_v63 = vpop.permute.xlu1 %2424  ;;  %v2486_v44 = vld [vmem:[#allocation2 + $0x70] sm:$0xff] }
 0x35e   : > { %2468 = vst.msk [vmem:[#allocation2 + $0x80] sm:$0xff] %vm1732_vm7, %v2425_v63  ;;  %4141 = vmatprep.mubr.msk.f32.mxu1 %vm6138_vm9, %v2486_v44 }
 0x35f   : > { %v2351_v62 = vpop.permute.xlu0 %2350  ;;  %4142 = vmatmul.mubr.msk.f32.gmra.mxu1 %vm6138_vm9, %v2487_v43 }
 0x360   : > { %2391 = vst.msk [vmem:[#allocation2 + $0x9a] sm:$0xff] %vm1651_vm2, %v2351_v62  ;;  %v3130_v62 = vld [vmem:[%s6099_s10 + $0x10] sm:$0xff] }
 0x361   : > { %v2349_v2 = vpop.permute.xlu1 %2348  ;;  %4150 = vmatprep.subr.mxu0 %v3130_v62 }
 0x362   : > { %2390 = vst.msk [vmem:[#allocation2 + $0x92] sm:$0xff] %vm1651_vm2, %v2349_v2  ;;  %4151 = vmatpush3.msra.mxu0 %v3130_v62  ;;  %v5708_v2 = vld [vmem:[%s6098_s9] ss:$0 sm:$0xff] }
 0x363   : > { %v2431_v7 = vpop.permute.xlu0 %2430  ;;  %v2489_v63 = vld [vmem:[#allocation2 + $0x88] sm:$0xff]  ;;  %4152 = vmatprep.subr.mxu0 %v3129_v5 }
 0x364   : > { %2471 = vst.msk [vmem:[#allocation2 + $0x98] sm:$0xff] %vm1732_vm7, %v2431_v7  ;;  %4153 = vmatpush3.msra.mxu0 %v3129_v5 }
 0x365   : > { %v2429_v12 = vpop.permute.xlu1 %2428  ;;  %v2488_v10 = vld [vmem:[#allocation2 + $0x80] sm:$0xff]  ;;  %4154 = vmatprep.subr.mxu0 %v3128_v51 }
 0x366   : > { %2470 = vst.msk [vmem:[#allocation2 + $0x90] sm:$0xff] %vm1732_vm7, %v2429_v12  ;;  %4144 = vmatprep.mubr.msk.f32.mxu1 %vm6138_vm9, %v2488_v10  ;;  %4155 = vmatpush3.msra.mxu0 %v3128_v51 }
 0x367   : > { %4145 = vmatmul.mubr.msk.f32.gmra.mxu1 %vm6138_vm9, %v2489_v63 }
 0x36b   : > { %v2491_v43 = vld [vmem:[#allocation2 + $0x98] sm:$0xff] }
 0x36d   : > { %v2490_v44 = vld [vmem:[#allocation2 + $0x90] sm:$0xff] }
 0x36e   : > { %4147 = vmatprep.mubr.msk.f32.mxu1 %vm6138_vm9, %v2490_v44 }
 0x36f   : > { %4148 = vmatmul.mubr.msk.f32.gmra.mxu1 %vm6138_vm9, %v2491_v43 }
 0x370   : > { %v2812_v12 = vpop.permute.xlu0 %2811 }
 0x371   : > { %vm2868_vm5 = vcmp.eq.s32.totalorder %v2812_v12, 1 }
 0x372   : > { %v2809_v44 = vpop.permute.xlu1 %2808 }
 0x373   : > { %vm2867_vm11 = vcmp.eq.s32.totalorder %v2809_v44, 1 }
 0x3e6   : > { %v4122_v7 = vpop.f32.mrf.mxu1 }
 0x3e7   : > { %v2634_v10 = vadd.f32 %v4122_v7, %v5708_v2 }
 0x3e8   : > { %v2628_v63 = vpop.f32.mrf.mxu1 }
 0x3e9   : > { %v2728_v24 = vmax.f32 %v2634_v10, 0.0  ;;  %v2629_v43 = vadd.f32 %v5708_v2, %v2628_v63  ;;  %v2815_v63 = vpop.permute.xlu1 %2814 }
 0x3ea   : > { %vm2869_vm6 = vcmp.eq.s32.totalorder %v2815_v63, 1 }
 0x3eb   : > { %v2888_v62 = vsel %vm2868_vm5, %v2728_v24, 0.0  ;;  %v2727_v15 = vmax.f32 %v2629_v43, 0.0  ;;  %v2818_v24 = vpop.permute.xlu0 %2817 }
 0x3ec   : > { %2909 = vst.msk [vmem:[#allocation2 + $0xc] sm:$0xff] %vm6231_vm0, %v2888_v62  ;;  %2950 = vrot.lane.b32.xlu0 %v2888_v62, %s4241_s24  ;;  %vm2870_vm12 = vcmp.eq.s32.totalorder %v2818_v24, 1 }
 0x3ed   : > { %v2887_v7 = vsel %vm2867_vm11, %v2727_v15, 0.0  ;;  %vm6235_vm11 = vmmov %vm6231_vm0 }
 0x3ee   : > { %2908 = vst.msk [vmem:[#allocation2 + $0x4] sm:$0xff] %vm6232_vm3, %v2887_v7  ;;  %2948 = vrot.lane.b32.xlu1 %v2887_v7, %s4241_s24 }
 0x3ef   : > { %v4125_v10 = vpop.f32.mrf.mxu1 }
 0x3f0   : > { %v2644_v5 = vadd.f32 %v4125_v10, %v5708_v2  ;;  %3030 = vrot.lane.b32.xlu0 %v2888_v62, %s4243_s22  ;;  %v2824_v62 = vpop.permute.xlu0 %2823 }
 0x3f1   : > { %v2638_v12 = vpop.f32.mrf.mxu1  ;;  %vm2872_vm10 = vcmp.eq.s32.totalorder %v2824_v62, 1 }
 0x3f2   : > { %v2730_v44 = vmax.f32 %v2644_v5, 0.0  ;;  %v2639_v43 = vadd.f32 %v5708_v2, %v2638_v12  ;;  %3028 = vrot.lane.b32.xlu1 %v2887_v7, %s4243_s22  ;;  %v2821_v7 = vpop.permute.xlu1 %2820 }
 0x3f3   : > { %vm2871_vm5 = vcmp.eq.s32.totalorder %v2821_v7, 1 }
 0x3f4   : > { %v2890_v15 = vsel %vm2870_vm12, %v2730_v44, 0.0  ;;  %v2729_v51 = vmax.f32 %v2639_v43, 0.0 }
 0x3f5   : > { %2911 = vst.msk [vmem:[#allocation2 + $0x1c] sm:$0xff] %vm6233_vm15, %v2890_v15  ;;  %2954 = vrot.lane.b32.xlu0 %v2890_v15, %s4241_s24  ;;  %vm6237_vm15 = vmmov %vm6231_vm0 }
 0x3f6   : > { %v2889_v59 = vsel %vm2869_vm6, %v2729_v51, 0.0  ;;  %vm6236_vm6 = vmmov %vm6231_vm0 }
 0x3f7   : > { %2910 = vst.msk [vmem:[#allocation2 + $0x14] sm:$0xff] %vm6234_vm8, %v2889_v59  ;;  %v4128_v10 = vpop.f32.mrf.mxu1  ;;  %2952 = vrot.lane.b32.xlu1 %v2889_v59, %s4241_s24 }
 0x3f8   : > { %v2654_v5 = vadd.f32 %v4128_v10, %v5708_v2 }
 0x3f9   : > { %3034 = vrot.lane.b32.xlu0 %v2890_v15, %s4243_s22  ;;  %v2648_v24 = vpop.f32.mrf.mxu1  ;;  %v2830_v15 = vpop.permute.xlu0 %2829 }
 0x3fa   : > { %v2732_v12 = vmax.f32 %v2654_v5, 0.0  ;;  %v2649_v63 = vadd.f32 %v5708_v2, %v2648_v24  ;;  %vm2874_vm3 = vcmp.eq.s32.totalorder %v2830_v15, 1 }
 0x3fb   : > { %3032 = vrot.lane.b32.xlu1 %v2889_v59, %s4243_s22  ;;  %v2827_v59 = vpop.permute.xlu1 %2826 }
 0x3fc   : > { %v2892_v44 = vsel %vm2872_vm10, %v2732_v12, 0.0  ;;  %v2731_v43 = vmax.f32 %v2649_v63, 0.0  ;;  %vm2873_vm12 = vcmp.eq.s32.totalorder %v2827_v59, 1 }
 0x3fd   : > { %2913 = vst.msk [vmem:[#allocation2 + $0x2c] sm:$0xff] %vm6235_vm11, %v2892_v44  ;;  %2958 = vrot.lane.b32.xlu0 %v2892_v44, %s4241_s24  ;;  %vm6239_vm11 = vmmov %vm6231_vm0 }
 0x3fe   : > { %v2891_v51 = vsel %vm2871_vm5, %v2731_v43, 0.0  ;;  %vm6238_vm5 = vmmov %vm6231_vm0 }
 0x3ff   : > { %2912 = vst.msk [vmem:[#allocation2 + $0x24] sm:$0xff] %vm6231_vm0, %v2891_v51  ;;  %v4131_v10 = vpop.f32.mrf.mxu1  ;;  %2956 = vrot.lane.b32.xlu1 %v2891_v51, %s4241_s24 }
 0x400   : > { %v2664_v5 = vadd.f32 %v4131_v10, %v5708_v2 }
 0x401   : > { %3038 = vrot.lane.b32.xlu0 %v2892_v44, %s4243_s22  ;;  %v2658_v62 = vpop.f32.mrf.mxu1  ;;  %v2836_v44 = vpop.permute.xlu0 %2835 }
 0x402   : > { %v2734_v24 = vmax.f32 %v2664_v5, 0.0  ;;  %v2659_v7 = vadd.f32 %v5708_v2, %v2658_v62  ;;  %vm2876_vm8 = vcmp.eq.s32.totalorder %v2836_v44, 1 }
 0x403   : > { %3036 = vrot.lane.b32.xlu1 %v2891_v51, %s4243_s22  ;;  %v2833_v51 = vpop.permute.xlu1 %2832 }
 0x404   : > { %v2894_v12 = vsel %vm2874_vm3, %v2734_v24, 0.0  ;;  %v2733_v63 = vmax.f32 %v2659_v7, 0.0  ;;  %vm2875_vm10 = vcmp.eq.s32.totalorder %v2833_v51, 1 }
 0x405   : > { %2915 = vst.msk [vmem:[#allocation2 + $0x3c] sm:$0xff] %vm6236_vm6, %v2894_v12  ;;  %2962 = vrot.lane.b32.xlu0 %v2894_v12, %s4241_s24  ;;  %vm6241_vm6 = vmmov %vm6238_vm5 }
 0x406   : > { %v2893_v43 = vsel %vm2873_vm12, %v2733_v63, 0.0  ;;  %vm6240_vm12 = vmmov %vm6238_vm5 }
 0x407   : > { %2914 = vst.msk [vmem:[#allocation2 + $0x34] sm:$0xff] %vm6237_vm15, %v2893_v43  ;;  %v4134_v10 = vpop.f32.mrf.mxu1  ;;  %2960 = vrot.lane.b32.xlu1 %v2893_v43, %s4241_s24 }
 0x408   : > { %v2674_v5 = vadd.f32 %v4134_v10, %v5708_v2 }
 0x409   : > { %3042 = vrot.lane.b32.xlu0 %v2894_v12, %s4243_s22  ;;  %v2668_v15 = vpop.f32.mrf.mxu1  ;;  %v2842_v12 = vpop.permute.xlu0 %2841 }
 0x40a   : > { %v2736_v62 = vmax.f32 %v2674_v5, 0.0  ;;  %v2669_v59 = vadd.f32 %v5708_v2, %v2668_v15  ;;  %vm2878_vm0 = vcmp.eq.s32.totalorder %v2842_v12, 1 }
 0x40b   : > { %3040 = vrot.lane.b32.xlu1 %v2893_v43, %s4243_s22  ;;  %v2839_v43 = vpop.permute.xlu1 %2838 }
 0x40c   : > { %v2896_v24 = vsel %vm2876_vm8, %v2736_v62, 0.0  ;;  %v2735_v7 = vmax.f32 %v2669_v59, 0.0  ;;  %vm2877_vm3 = vcmp.eq.s32.totalorder %v2839_v43, 1 }
 0x40d   : > { %2917 = vst.msk [vmem:[#allocation2 + $0x4c] sm:$0xff] %vm6238_vm5, %v2896_v24  ;;  %2966 = vrot.lane.b32.xlu0 %v2896_v24, %s4241_s24 }
 0x40e   : > { %v2895_v63 = vsel %vm2875_vm10, %v2735_v7, 0.0  ;;  %vm6242_vm10 = vmmov %vm6238_vm5 }
 0x40f   : > { %2916 = vst.msk [vmem:[#allocation2 + $0x44] sm:$0xff] %vm6239_vm11, %v2895_v63  ;;  %v4137_v10 = vpop.f32.mrf.mxu1  ;;  %2964 = vrot.lane.b32.xlu1 %v2895_v63, %s4241_s24 }
 0x410   : > { %v2684_v5 = vadd.f32 %v4137_v10, %v5708_v2 }
 0x411   : > { %3046 = vrot.lane.b32.xlu0 %v2896_v24, %s4243_s22  ;;  %v2678_v44 = vpop.f32.mrf.mxu1  ;;  %v2848_v24 = vpop.permute.xlu0 %2847 }
 0x412   : > { %v2738_v15 = vmax.f32 %v2684_v5, 0.0  ;;  %v2679_v51 = vadd.f32 %v5708_v2, %v2678_v44  ;;  %vm2880_vm15 = vcmp.eq.s32.totalorder %v2848_v24, 1 }
 0x413   : > { %3044 = vrot.lane.b32.xlu1 %v2895_v63, %s4243_s22  ;;  %v2845_v63 = vpop.permute.xlu1 %2844 }
 0x414   : > { %v2898_v62 = vsel %vm2878_vm0, %v2738_v15, 0.0  ;;  %v2737_v59 = vmax.f32 %v2679_v51, 0.0  ;;  %vm2879_vm8 = vcmp.eq.s32.totalorder %v2845_v63, 1 }
 0x415   : > { %2919 = vst.msk [vmem:[#allocation2 + $0x5c] sm:$0xff] %vm6240_vm12, %v2898_v62  ;;  %2970 = vrot.lane.b32.xlu0 %v2898_v62, %s4241_s24 }
 0x416   : > { %v2897_v7 = vsel %vm2877_vm3, %v2737_v59, 0.0  ;;  %vm6243_vm3 = vmmov %vm6238_vm5 }
 0x417   : > { %2918 = vst.msk [vmem:[#allocation2 + $0x54] sm:$0xff] %vm6241_vm6, %v2897_v7  ;;  %v4140_v10 = vpop.f32.mrf.mxu1  ;;  %2968 = vrot.lane.b32.xlu1 %v2897_v7, %s4241_s24  ;;  %vm6244_vm12 = vmmov %vm6243_vm3 }
 0x418   : > { %v2694_v5 = vadd.f32 %v4140_v10, %v5708_v2 }
 0x419   : > { %3050 = vrot.lane.b32.xlu0 %v2898_v62, %s4243_s22  ;;  %v2688_v12 = vpop.f32.mrf.mxu1  ;;  %v2854_v62 = vpop.permute.xlu0 %2853 }
 0x41a   : > { %v2740_v44 = vmax.f32 %v2694_v5, 0.0  ;;  %v2689_v43 = vadd.f32 %v5708_v2, %v2688_v12  ;;  %vm2882_vm11 = vcmp.eq.s32.totalorder %v2854_v62, 1 }
 0x41b   : > { %3048 = vrot.lane.b32.xlu1 %v2897_v7, %s4243_s22  ;;  %v2851_v7 = vpop.permute.xlu1 %2850 }
 0x41c   : > { %v2900_v15 = vsel %vm2880_vm15, %v2740_v44, 0.0  ;;  %v2739_v51 = vmax.f32 %v2689_v43, 0.0  ;;  %vm2881_vm0 = vcmp.eq.s32.totalorder %v2851_v7, 1 }
 0x41d   : > { %2921 = vst.msk [vmem:[#allocation2 + $0x6c] sm:$0xff] %vm6242_vm10, %v2900_v15  ;;  %2974 = vrot.lane.b32.xlu0 %v2900_v15, %s4241_s24  ;;  %vm6246_vm10 = vmmov %vm6243_vm3 }
 0x41e   : > { %v2899_v59 = vsel %vm2879_vm8, %v2739_v51, 0.0  ;;  %vm6245_vm8 = vmmov %vm6243_vm3 }
 0x41f   : > { %2920 = vst.msk [vmem:[#allocation2 + $0x64] sm:$0xff] %vm6238_vm5, %v2899_v59  ;;  %v4143_v10 = vpop.f32.mrf.mxu1  ;;  %2972 = vrot.lane.b32.xlu1 %v2899_v59, %s4241_s24 }
 0x420   : > { %v2704_v5 = vadd.f32 %v4143_v10, %v5708_v2 }
 0x421   : > { %3054 = vrot.lane.b32.xlu0 %v2900_v15, %s4243_s22  ;;  %v2698_v24 = vpop.f32.mrf.mxu1  ;;  %v2860_v15 = vpop.permute.xlu0 %2859 }
 0x422   : > { %v2742_v12 = vmax.f32 %v2704_v5, 0.0  ;;  %v2699_v63 = vadd.f32 %v5708_v2, %v2698_v24  ;;  %vm2884_vm6 = vcmp.eq.s32.totalorder %v2860_v15, 1 }
 0x423   : > { %3052 = vrot.lane.b32.xlu1 %v2899_v59, %s4243_s22  ;;  %v2857_v59 = vpop.permute.xlu1 %2856 }
 0x424   : > { %v2902_v44 = vsel %vm2882_vm11, %v2742_v12, 0.0  ;;  %v2741_v43 = vmax.f32 %v2699_v63, 0.0  ;;  %vm2883_vm15 = vcmp.eq.s32.totalorder %v2857_v59, 1  ;;  %vm3397_vm11 = vcmp.lt.s32.totalorder %v5594_v32, 28 }
 0x425   : > { %2923 = vst.msk [vmem:[#allocation2 + $0x7c] sm:$0xff] %vm6243_vm3, %v2902_v44  ;;  %2978 = vrot.lane.b32.xlu0 %v2902_v44, %s4241_s24  ;;  %v6250_v32 = vmov 0  }
 0x426   : > { %v2901_v51 = vsel %vm2881_vm0, %v2741_v43, 0.0 }
 0x427   : > { %2922 = vst.msk [vmem:[#allocation2 + $0x74] sm:$0xff] %vm6244_vm12, %v2901_v51  ;;  %v4146_v10 = vpop.f32.mrf.mxu1  ;;  %2976 = vrot.lane.b32.xlu1 %v2901_v51, %s4241_s24  ;;  %vm3398_vm12 = vcmp.lt.s32.totalorder %v5585_v47, 28 }
 0x428   : > { %v2714_v5 = vadd.f32 %v4146_v10, %v5708_v2 }
 0x429   : > { %3058 = vrot.lane.b32.xlu0 %v2902_v44, %s4243_s22  ;;  %v2708_v62 = vpop.f32.mrf.mxu1  ;;  %v2866_v44 = vpop.permute.xlu0 %2865 }
 0x42a   : > { %v2744_v24 = vmax.f32 %v2714_v5, 0.0  ;;  %v2709_v7 = vadd.f32 %v5708_v2, %v2708_v62  ;;  %vm2886_vm5 = vcmp.eq.s32.totalorder %v2866_v44, 1 }
 0x42b   : > { %3056 = vrot.lane.b32.xlu1 %v2901_v51, %s4243_s22  ;;  %v2863_v51 = vpop.permute.xlu1 %2862 }
 0x42c   : > { %v2904_v12 = vsel %vm2884_vm6, %v2744_v24, 0.0  ;;  %v2743_v63 = vmax.f32 %v2709_v7, 0.0  ;;  %vm2885_vm0 = vcmp.eq.s32.totalorder %v2863_v51, 1  ;;  %vm6247_vm6 = vmmov %vm6243_vm3 }
 0x42d   : > { %2925 = vst.msk [vmem:[#allocation2 + $0x8c] sm:$0xff] %vm6245_vm8, %v2904_v12  ;;  %2982 = vrot.lane.b32.xlu0 %v2904_v12, %s4241_s24 }
 0x42e   : > { %v2903_v43 = vsel %vm2883_vm15, %v2743_v63, 0.0  ;;  %vm6248_vm15 = vcmp.ge.s32.totalorder %v4693_v50, 4 }
 0x42f   : > { %2924 = vst.msk [vmem:[#allocation2 + $0x84] sm:$0xff] %vm6246_vm10, %v2903_v43  ;;  %v4149_v10 = vpop.f32.mrf.mxu1  ;;  %2980 = vrot.lane.b32.xlu1 %v2903_v43, %s4241_s24  ;;  %vm3417_vm8 = vmand %vm6248_vm15, %vm3397_vm11  ;;  %vm3395_vm10 = vcmp.lt.s32.totalorder %v5576_v55, 28  ;;  %vm3393_vm11 = vcmp.lt.s32.totalorder %v5558_v61, 28  ;;  %vm6252_vm15 = vcmp.ge.s32.totalorder %v4668_v45, 4 }
 0x430   : > { %v2724_v5 = vadd.f32 %v4149_v10, %v5708_v2 }
 0x431   : > { %3062 = vrot.lane.b32.xlu0 %v2904_v12, %s4243_s22  ;;  %v2718_v15 = vpop.f32.mrf.mxu1 }
 0x432   : > { %v2746_v62 = vmax.f32 %v2724_v5, 0.0  ;;  %v2719_v59 = vadd.f32 %v5708_v2, %v2718_v15  ;;  %v3437_v2 = vsel %vm3417_vm8, 1, %v6250_v32  ;;  %vm6253_vm8 = vcmp.ge.s32.totalorder %v4653_v42, 4 }
 0x433   : > { %3060 = vrot.lane.b32.xlu1 %v2903_v43, %s4243_s22 }
 0x434   : > { %v2906_v24 = vsel %vm2886_vm5, %v2746_v62, 0.0  ;;  %v2745_v7 = vmax.f32 %v2719_v59, 0.0  ;;  %vm6249_vm5 = vcmp.ge.s32.totalorder %v4688_v49, 4 }
 0x435   : > { %2927 = vst.msk [vmem:[#allocation2 + $0x9c] sm:$0xff] %vm6243_vm3, %v2906_v24  ;;  %2986 = vrot.lane.b32.xlu0 %v2906_v24, %s4241_s24  ;;  %vm3418_vm1 = vmand %vm6249_vm5, %vm3398_vm12  ;;  %vm6251_vm3 = vcmp.ge.s32.totalorder %v4673_v46, 4  ;;  %vm3394_vm12 = vcmp.lt.s32.totalorder %v5549_v4, 28 }
 0x436   : > { %v2905_v63 = vsel %vm2885_vm0, %v2745_v7, 0.0  ;;  %vm3396_vm0 = vcmp.lt.s32.totalorder %v5567_v0, 28  ;;  %v3438_v47 = vsel %vm3418_vm1, 1, %v6250_v32  ;;  %vm3413_vm5 = vmand %vm6253_vm8, %vm3393_vm11  ;;  %vm6254_vm1 = vcmp.ge.s32.totalorder %v4648_v41, 4 }
 0x437   : > { %2926 = vst.msk [vmem:[#allocation2 + $0x94] sm:$0xff] %vm6247_vm6, %v2905_v63  ;;  %2984 = vrot.lane.b32.xlu1 %v2905_v63, %s4241_s24  ;;  %vm3415_vm6 = vmand %vm6251_vm3, %vm3395_vm10  ;;  %vm3391_vm10 = vcmp.lt.s32.totalorder %v5540_v52, 28  ;;  %v3433_v46 = vsel %vm3413_vm5, 1, %v6250_v32  ;;  %vm3389_vm11 = vcmp.lt.s32.totalorder %v5522_v14, 28  ;;  %vm6257_vm5 = vcmp.ge.s32.totalorder %v4613_v34, 4  ;;  %s3899_s24 = sshll.u32 %s6319_s30, 4 }
 0x438   : > { %vm3416_vm9 = vmand %vm6252_vm15, %vm3396_vm0  ;;  %v3435_v49 = vsel %vm3415_vm6, 1, %v6250_v32  ;;  %vm3392_vm0 = vcmp.lt.s32.totalorder %v5531_v36, 28  ;;  %vm6255_vm6 = vcmp.ge.s32.totalorder %v4633_v38, 4  ;;  %s467_s25 = scalar_lea.vmem %s6103_s14, %s3899_s24 }
 0x439   : > { %3066 = vrot.lane.b32.xlu0 %v2906_v24, %s4243_s22  ;;  %v3436_v50 = vsel %vm3416_vm9, 1, %v6250_v32  ;;  %vm3414_vm3 = vmand %vm6254_vm1, %vm3394_vm12  ;;  %vm6256_vm9 = vcmp.ge.s32.totalorder %v4628_v37, 4  ;;  %vm3390_vm12 = vcmp.lt.s32.totalorder %v5513_v9, 28 }
 0x43a   : > { %vm3411_vm15 = vmand %vm6255_vm6, %vm3391_vm10  ;;  %v3434_v45 = vsel %vm3414_vm3, 1, %v6250_v32  ;;  %vm3387_vm10 = vcmp.lt.s32.totalorder %v5504_v8, 28  ;;  %vm6258_vm3 = vcmp.ge.s32.totalorder %v4608_v33, 4 }
 0x43b   : > { %3064 = vrot.lane.b32.xlu1 %v2905_v63, %s4243_s22  ;;  %vm3412_vm8 = vmand %vm6256_vm9, %vm3392_vm0  ;;  %v3431_v42 = vsel %vm3411_vm15, 1, %v6250_v32  ;;  %vm3388_vm0 = vcmp.lt.s32.totalorder %v5495_v22, 28  ;;  %vm6259_vm15 = vcmp.ge.s32.totalorder %v4593_v30, 4 }
 0x43c   : > { %vm3409_vm1 = vmand %vm6257_vm5, %vm3389_vm11  ;;  %v3432_v41 = vsel %vm3412_vm8, 1, %v6250_v32  ;;  %vm3385_vm11 = vcmp.lt.s32.totalorder %v5484_v3, 28  ;;  %vm6260_vm8 = vcmp.ge.s32.totalorder %v4584_v29, 4 }
 0x43d   : > { %3486 = vperm.xlu0 %4202, %v3437_v2   ;;  %vm3410_vm6 = vmand %vm6258_vm3, %vm3390_vm12  ;;  %v3429_v38 = vsel %vm3409_vm1, 1, %v6250_v32  ;;  %vm3386_vm12 = vcmp.lt.s32.totalorder %v5473_v21, 28  ;;  %vm6261_vm1 = vcmp.ge.s32.totalorder %v4571_v28, 4 }
 0x43e   : > { %vm3407_vm9 = vmand %vm6259_vm15, %vm3387_vm10  ;;  %v3430_v37 = vsel %vm3410_vm6, 1, %v6250_v32  ;;  %vm3383_vm10 = vcmp.lt.s32.totalorder %v5461_v48, 28  ;;  %vm6262_vm6 = vcmp.ge.s32.totalorder %v4562_v27, 4 }
 0x43f   : > { %3489 = vperm.xlu1 %4203, %v3438_v47   ;;  %vm3408_vm5 = vmand %vm6260_vm8, %vm3388_vm0  ;;  %v3427_v34 = vsel %vm3407_vm9, 1, %v6250_v32  ;;  %vm3384_vm0 = vcmp.lt.s32.totalorder %v5449_v40, 28  ;;  %vm6263_vm9 = vcmp.ge.s32.totalorder %v4544_v25, 4 }
 0x440   : > { %vm3405_vm3 = vmand %vm6261_vm1, %vm3385_vm11  ;;  %v3428_v33 = vsel %vm3408_vm5, 1, %v6250_v32  ;;  %vm3401_vm11 = vcmp.lt.s32.totalorder %v5630_v23, 28  ;;  %vm6264_vm5 = vcmp.ge.s32.totalorder %v4553_v26, 4 }
 0x441   : > { %3480 = vperm.xlu0 %4202, %v3435_v49   ;;  %vm3406_vm15 = vmand %vm6262_vm6, %vm3386_vm12  ;;  %v3425_v30 = vsel %vm3405_vm3, 1, %v6250_v32  ;;  %vm3402_vm12 = vcmp.lt.s32.totalorder %v5621_v31, 28  ;;  %vm6265_vm3 = vcmp.ge.s32.totalorder %v4733_v58, 4 }
 0x442   : > { %vm3403_vm8 = vmand %vm6263_vm9, %vm3383_vm10  ;;  %v3426_v29 = vsel %vm3406_vm15, 1, %v6250_v32  ;;  %vm3399_vm10 = vcmp.lt.s32.totalorder %v5612_v20, 28 }
 0x443   : > { %3483 = vperm.xlu1 %4203, %v3436_v50   ;;  %vm3404_vm1 = vmand %vm6264_vm5, %vm3384_vm0  ;;  %v3423_v28 = vsel %vm3403_vm8, 1, %v6250_v32  ;;  %vm3400_vm0 = vcmp.lt.s32.totalorder %v5603_v18, 28 }
 0x444   : > { %vm3421_vm6 = vmand %vm6265_vm3, %vm3401_vm11  ;;  %v3424_v27 = vsel %vm3404_vm1, 1, %v6250_v32 }
 0x445   : > { %3474 = vperm.xlu0 %4202, %v3433_v46   ;;  %vm3422_vm15 = vmand %vm765_vm4, %vm3402_vm12  ;;  %v3441_v25 = vsel %vm3421_vm6, 1, %v6250_v32  ;;  %vm6268_vm4 = vcmask 64512  }
 0x446   : > { %vm3419_vm9 = vmand %vm762_vm14, %vm3399_vm10  ;;  %v3442_v26 = vsel %vm3422_vm15, 1, %v6250_v32  ;;  %vm6266_vm14 = vcmask 195584  }
 0x447   : > { %3477 = vperm.xlu1 %4203, %v3434_v45   ;;  %vm3420_vm8 = vmand %vm763_vm13, %vm3400_vm0  ;;  %v3439_v58 = vsel %vm3419_vm9, 1, %v6250_v32  ;;  %vm6267_vm13 = vcmask 60416  }
 0x448   : > { %v3440_v57 = vsel %vm3420_vm8, 1, %v6250_v32  ;;  %vm6269_vm11 = vmmov %vm6266_vm14 }
 0x449   : > { %3468 = vperm.xlu0 %4202, %v3431_v42   ;;  %vm6270_vm5 = vmmov %vm6269_vm11 }
 0x44a   : > { %vm6271_vm1 = vmmov %vm6268_vm4 }
 0x44b   : > { %3471 = vperm.xlu1 %4203, %v3432_v41   ;;  %vm6272_vm12 = vmmov %vm6271_vm1  ;;  %v6294_v41 = vld [vmem:[#allocation6_spill] sm:$0xff] }
 0x44c   : > { %vm6273_vm3 = vmmov %vm6270_vm5 }
 0x44d   : > { %3462 = vperm.xlu0 %4202, %v3429_v38   ;;  %vm6274_vm6 = vmmov %vm6273_vm3 }
 0x44e   : > { %vm6275_vm10 = vmmov %vm6271_vm1 }
 0x44f   : > { %3465 = vperm.xlu1 %4203, %v3430_v37   ;;  %vm6276_vm15 = vmmov %vm6271_vm1 }
 0x450   : > { %vm6277_vm0 = vmmov %vm6273_vm3 }
 0x451   : > { %3456 = vperm.xlu0 %4202, %v3427_v34   ;;  %vm6278_vm9 = vmmov %vm6277_vm0 }
 0x452   : > { %vm6279_vm8 = vmmov %vm6271_vm1 }
 0x453   : > { %3459 = vperm.xlu1 %4203, %v3428_v33  }
 0x455   : > { %3450 = vperm.xlu0 %4202, %v3425_v30  }
 0x457   : > { %3453 = vperm.xlu1 %4203, %v3426_v29  }
 0x459   : > { %3444 = vperm.xlu0 %4202, %v3423_v28   ;;  %v6298_v28 = vld [vmem:[#allocation5_spill] sm:$0xff] }
 0x45b   : > { %3447 = vperm.xlu1 %4203, %v3424_v27   ;;  %v6300_v27 = vld [vmem:[#allocation8_spill] sm:$0xff] }
 0x45d   : > { %3498 = vperm.xlu0 %4202, %v3441_v25  }
 0x45e   : > { %v2951_v40 = vpop.permute.xlu0 %2950 }
 0x45f   : > { %3501 = vperm.xlu1 %4203, %v3442_v26   ;;  %3009 = vst.msk [vmem:[#allocation2 + $0xa] sm:$0xff] %vm1651_vm2, %v2951_v40 }
 0x460   : > { %v2949_v48 = vpop.permute.xlu1 %2948 }
 0x461   : > { %3492 = vperm.xlu0 %4202, %v3439_v58   ;;  %3008 = vst.msk [vmem:[#allocation2 + $0x2] sm:$0xff] %vm1651_vm2, %v2949_v48 }
 0x462   : > { %v3031_v21 = vpop.permute.xlu0 %3030 }
 0x463   : > { %3495 = vperm.xlu1 %4203, %v3440_v57   ;;  %3089 = vst.msk [vmem:[#allocation2 + $0x8] sm:$0xff] %vm1732_vm7, %v3031_v21  ;;  %v6306_v21 = vld [vmem:[#allocation10_spill] sm:$0xff] }
 0x464   : > { %v3029_v3 = vpop.permute.xlu1 %3028 }
 0x465   : > { %3637 = vperm.xlu0 %4202, %v3629_v54   ;;  %3088 = vst.msk [vmem:[#allocation2] sm:$0xff] %vm1732_vm7, %v3029_v3  ;;  %v6304_v54 = vld [vmem:[#allocation7_spill] sm:$0xff] }
 0x466   : > { %v6309_v3 = vld [vmem:[#allocation11_spill] sm:$0xff] }
 0x467   : > { %v2955_v22 = vpop.permute.xlu0 %2954  ;;  %3632 = vperm.xlu1 %4203, %v3628_v53  }
 0x468   : > { %3011 = vst.msk [vmem:[#allocation2 + $0x1a] sm:$0xff] %vm1651_vm2, %v2955_v22 }
 0x469   : > { %v2953_v8 = vpop.permute.xlu1 %2952 }
 0x46a   : > { %3010 = vst.msk [vmem:[#allocation2 + $0x12] sm:$0xff] %vm1651_vm2, %v2953_v8  ;;  %v3109_v52 = vld [vmem:[#allocation2 + $0x8] sm:$0xff]  ;;  %v6312_v8 = vld [vmem:[#allocation9_spill] sm:$0xff] }
 0x46b   : > { %v3035_v9 = vpop.permute.xlu0 %3034 }
 0x46c   : > { %3091 = vst.msk [vmem:[#allocation2 + $0x18] sm:$0xff] %vm1732_vm7, %v3035_v9  ;;  %v3108_v36 = vld [vmem:[#allocation2] sm:$0xff]  ;;  %v6314_v9 = vld [vmem:[#allocation12_spill] sm:$0xff] }
 0x46d   : > { %v3033_v14 = vpop.permute.xlu1 %3032  ;;  %4156 = vmatprep.mubr.msk.f32.mxu0 %vm6266_vm14, %v3108_v36  ;;  %3543 = vst.msk [vmem:[#allocation2] sm:$0xf] %vm6267_vm13, %v6229_v1  ;;  %vm6280_vm14 = vmmov %vm6271_vm1 }
 0x46e   : > { %3090 = vst.msk [vmem:[#allocation2 + $0x10] sm:$0xff] %vm1732_vm7, %v3033_v14  ;;  %4157 = vmatmul.mubr.msk.f32.vlgmr.msra.gmra.mxu0 %vm6269_vm11, %v3109_v52  ;;  %vm6281_vm13 = vmmov %vm6277_vm0  ;;  %v3625_v14 = vld [vmem:[%s6101_s12 + $0x8] sm:$0xff] }
 0x46f   : > { %3544 = vst.msk [vmem:[#allocation2 + $0x4] sm:$0xff] %vm6268_vm4, %v5271_v19  ;;  %v2959_v4 = vpop.permute.xlu0 %2958  ;;  %vm6282_vm4 = vmmov %vm6277_vm0 }
 0x470   : > { %3013 = vst.msk [vmem:[#allocation2 + $0x2a] sm:$0xff] %vm1651_vm2, %v2959_v4  ;;  %vm6283_vm11 = vmmov %vm6271_vm1 }
 0x471   : > { %v2957_v61 = vpop.permute.xlu1 %2956 }
 0x472   : > { %3012 = vst.msk [vmem:[#allocation2 + $0x22] sm:$0xff] %vm1651_vm2, %v2957_v61 }
 0x473   : > { %v3039_v0 = vpop.permute.xlu0 %3038  ;;  %v3111_v20 = vld [vmem:[#allocation2 + $0x18] sm:$0xff] }
 0x474   : > { %3093 = vst.msk [vmem:[#allocation2 + $0x28] sm:$0xff] %vm1732_vm7, %v3039_v0 }
 0x475   : > { %v3037_v55 = vpop.permute.xlu1 %3036  ;;  %v3110_v18 = vld [vmem:[#allocation2 + $0x10] sm:$0xff] }
 0x476   : > { %3092 = vst.msk [vmem:[#allocation2 + $0x20] sm:$0xff] %vm1732_vm7, %v3037_v55  ;;  %4159 = vmatprep.mubr.msk.f32.mxu0 %vm6270_vm5, %v3110_v18  ;;  %vm6284_vm5 = vmmov %vm6271_vm1 }
 0x477   : > { %3545 = vst.msk [vmem:[#allocation2 + $0xc] sm:$0xff] %vm6271_vm1, %v5267_v13  ;;  %v2963_v19 = vpop.permute.xlu0 %2962  ;;  %4160 = vmatmul.mubr.msk.f32.gmra.mxu0 %vm6273_vm3, %v3111_v20  ;;  %vm6285_vm1 = vmmov %vm6277_vm0 }
 0x478   : > { %3546 = vst.msk [vmem:[#allocation2 + $0x14] sm:$0xff] %vm6272_vm12, %v5291_v60  ;;  %vm6286_vm12 = vmmov %vm6277_vm0 }
 0x479   : > { %3015 = vst.msk [vmem:[#allocation2 + $0x3a] sm:$0xff] %vm1651_vm2, %v2963_v19  ;;  %v2961_v31 = vpop.permute.xlu1 %2960  ;;  %vm6287_vm3 = vmmov %vm6284_vm5 }
 0x47a   : > { %3014 = vst.msk [vmem:[#allocation2 + $0x32] sm:$0xff] %vm1651_vm2, %v2961_v31 }
 0x47b   : > { %v3043_v23 = vpop.permute.xlu0 %3042  ;;  %v3113_v10 = vld [vmem:[#allocation2 + $0x28] sm:$0xff] }
 0x47c   : > { %3095 = vst.msk [vmem:[#allocation2 + $0x38] sm:$0xff] %vm1732_vm7, %v3043_v23 }
 0x47d   : > { %v3041_v12 = vpop.permute.xlu1 %3040  ;;  %v3112_v43 = vld [vmem:[#allocation2 + $0x20] sm:$0xff] }
 0x47e   : > { %3094 = vst.msk [vmem:[#allocation2 + $0x30] sm:$0xff] %vm1732_vm7, %v3041_v12  ;;  %4162 = vmatprep.mubr.msk.f32.mxu0 %vm6274_vm6, %v3112_v43  ;;  %vm6289_vm6 = vmmov %vm6287_vm3 }
 0x47f   : > { %3547 = vst.msk [vmem:[#allocation2 + $0x1c] sm:$0xff] %vm6275_vm10, %v5286_v39  ;;  %v2967_v13 = vpop.permute.xlu0 %2966  ;;  %4163 = vmatmul.mubr.msk.f32.gmra.mxu0 %vm6277_vm0, %v3113_v10  ;;  %vm6290_vm10 = vmmov %vm6277_vm0 }
 0x480   : > { %3548 = vst.msk [vmem:[#allocation2 + $0x24] sm:$0xff] %vm6276_vm15, %v5311_v17  ;;  %vm6291_vm15 = vmmov %vm6277_vm0 }
 0x481   : > { %3017 = vst.msk [vmem:[#allocation2 + $0x4a] sm:$0xff] %vm1651_vm2, %v2967_v13  ;;  %v2965_v60 = vpop.permute.xlu1 %2964  ;;  %vm6293_vm0 = vmmov %vm6287_vm3 }
 0x482   : > { %3016 = vst.msk [vmem:[#allocation2 + $0x42] sm:$0xff] %vm1651_vm2, %v2965_v60 }
 0x483   : > { %v3047_v44 = vpop.permute.xlu0 %3046  ;;  %v3115_v51 = vld [vmem:[#allocation2 + $0x38] sm:$0xff] }
 0x484   : > { %3097 = vst.msk [vmem:[#allocation2 + $0x48] sm:$0xff] %vm1732_vm7, %v3047_v44 }
 0x485   : > { %v3045_v5 = vpop.permute.xlu1 %3044  ;;  %v3114_v15 = vld [vmem:[#allocation2 + $0x30] sm:$0xff] }
 0x486   : > { %3096 = vst.msk [vmem:[#allocation2 + $0x40] sm:$0xff] %vm1732_vm7, %v3045_v5  ;;  %4165 = vmatprep.mubr.msk.f32.mxu0 %vm6278_vm9, %v3114_v15  ;;  %vm6295_vm9 = vmmov %vm6293_vm0 }
 0x487   : > { %3549 = vst.msk [vmem:[#allocation2 + $0x2c] sm:$0xff] %vm6279_vm8, %v5306_v11  ;;  %v2971_v39 = vpop.permute.xlu0 %2970  ;;  %4166 = vmatmul.mubr.msk.f32.gmra.mxu0 %vm6281_vm13, %v3115_v51  ;;  %vm6296_vm8 = vmmov %vm6285_vm1  ;;  %v6003_v51 = vld [vmem:[%s6100_s11] ss:$0 sm:$0xff] }
 0x488   : > { %3550 = vst.msk [vmem:[#allocation2 + $0x34] sm:$0xff] %vm6280_vm14, %v5331_v56  ;;  %vm6297_vm14 = vmmov %vm6285_vm1 }
 0x489   : > { %3019 = vst.msk [vmem:[#allocation2 + $0x5a] sm:$0xff] %vm1651_vm2, %v2971_v39  ;;  %v2969_v17 = vpop.permute.xlu1 %2968  ;;  %vm6299_vm13 = vmmov %vm6293_vm0 }
 0x48a   : > { %3018 = vst.msk [vmem:[#allocation2 + $0x52] sm:$0xff] %vm1651_vm2, %v2969_v17 }
 0x48b   : > { %v3051_v62 = vpop.permute.xlu0 %3050  ;;  %v3117_v7 = vld [vmem:[#allocation2 + $0x48] sm:$0xff] }
 0x48c   : > { %3099 = vst.msk [vmem:[#allocation2 + $0x58] sm:$0xff] %vm1732_vm7, %v3051_v62 }
 0x48d   : > { %v3049_v59 = vpop.permute.xlu1 %3048  ;;  %v3116_v24 = vld [vmem:[#allocation2 + $0x40] sm:$0xff] }
 0x48e   : > { %3098 = vst.msk [vmem:[#allocation2 + $0x50] sm:$0xff] %vm1732_vm7, %v3049_v59  ;;  %4168 = vmatprep.mubr.msk.f32.mxu0 %vm6282_vm4, %v3116_v24  ;;  %vm6301_vm4 = vmmov %vm6293_vm0 }
 0x48f   : > { %3551 = vst.msk [vmem:[#allocation2 + $0x3c] sm:$0xff] %vm6283_vm11, %v5326_v35  ;;  %v2975_v11 = vpop.permute.xlu0 %2974  ;;  %4169 = vmatmul.mubr.msk.f32.gmra.mxu0 %vm6285_vm1, %v3117_v7  ;;  %v6288_v35 = vld [vmem:[#allocation4_spill] sm:$0xff]  ;;  %vm6302_vm11 = vmmov %vm6285_vm1 }
 0x490   : > { %3552 = vst.msk [vmem:[#allocation2 + $0x44] sm:$0xff] %vm6284_vm5, %v5351_v16  ;;  %vm6303_vm5 = vmmov %vm6285_vm1 }
 0x491   : > { %3021 = vst.msk [vmem:[#allocation2 + $0x6a] sm:$0xff] %vm1651_vm2, %v2975_v11  ;;  %v2973_v56 = vpop.permute.xlu1 %2972  ;;  %vm6305_vm1 = vmmov %vm6293_vm0 }
 0x492   : > { %3020 = vst.msk [vmem:[#allocation2 + $0x62] sm:$0xff] %vm1651_vm2, %v2973_v56 }
 0x493   : > { %v3055_v63 = vpop.permute.xlu0 %3054  ;;  %v3119_v47 = vld [vmem:[#allocation2 + $0x58] sm:$0xff] }
 0x494   : > { %3101 = vst.msk [vmem:[#allocation2 + $0x68] sm:$0xff] %vm1732_vm7, %v3055_v63 }
 0x495   : > { %v3053_v32 = vpop.permute.xlu1 %3052  ;;  %v3118_v2 = vld [vmem:[#allocation2 + $0x50] sm:$0xff] }
 0x496   : > { %3100 = vst.msk [vmem:[#allocation2 + $0x60] sm:$0xff] %vm1732_vm7, %v3053_v32  ;;  %4171 = vmatprep.mubr.msk.f32.mxu0 %vm6286_vm12, %v3118_v2  ;;  %vm6307_vm12 = vmmov %vm6293_vm0 }
 0x497   : > { %3553 = vst.msk [vmem:[#allocation2 + $0x4c] sm:$0xff] %vm6287_vm3, %v5346_v6  ;;  %v2979_v16 = vpop.permute.xlu0 %2978  ;;  %4172 = vmatmul.mubr.msk.f32.gmra.mxu0 %vm6290_vm10, %v3119_v47  ;;  %v6292_v6 = vld [vmem:[#allocation3_spill] sm:$0xff]  ;;  %vm6308_vm3 = vmmov %vm6303_vm5 }
 0x498   : > { %3554 = vst.msk [vmem:[#allocation2 + $0x54] sm:$0xff] %vm6289_vm6, %v6288_v35  ;;  %vm6311_vm6 = vmmov %vm6308_vm3 }
 0x499   : > { %3023 = vst.msk [vmem:[#allocation2 + $0x7a] sm:$0xff] %vm1651_vm2, %v2979_v16  ;;  %v2977_v49 = vpop.permute.xlu1 %2976  ;;  %vm6313_vm10 = vmmov %vm6293_vm0 }
 0x49a   : > { %3022 = vst.msk [vmem:[#allocation2 + $0x72] sm:$0xff] %vm1651_vm2, %v2977_v49 }
 0x49b   : > { %v3059_v50 = vpop.permute.xlu0 %3058  ;;  %v3121_v42 = vld [vmem:[#allocation2 + $0x68] sm:$0xff] }
 0x49c   : > { %3103 = vst.msk [vmem:[#allocation2 + $0x78] sm:$0xff] %vm1732_vm7, %v3059_v50 }
 0x49d   : > { %v3057_v46 = vpop.permute.xlu1 %3056  ;;  %v3120_v45 = vld [vmem:[#allocation2 + $0x60] sm:$0xff] }
 0x49e   : > { %3102 = vst.msk [vmem:[#allocation2 + $0x70] sm:$0xff] %vm1732_vm7, %v3057_v46  ;;  %4174 = vmatprep.mubr.msk.f32.mxu0 %vm6291_vm15, %v3120_v45  ;;  %vm6316_vm15 = vmmov %vm6308_vm3 }
 0x49f   : > { %3555 = vst.msk [vmem:[#allocation2 + $0x5c] sm:$0xff] %vm6293_vm0, %v6292_v6  ;;  %v2983_v38 = vpop.permute.xlu0 %2982  ;;  %4175 = vmatmul.mubr.msk.f32.gmra.mxu0 %vm6296_vm8, %v3121_v42 }
 0x4a0   : > { %3556 = vst.msk [vmem:[#allocation2 + $0x64] sm:$0xff] %vm6295_vm9, %v6294_v41 }
 0x4a1   : > { %3025 = vst.msk [vmem:[#allocation2 + $0x8a] sm:$0xff] %vm1651_vm2, %v2983_v38  ;;  %v2981_v37 = vpop.permute.xlu1 %2980 }
 0x4a2   : > { %3024 = vst.msk [vmem:[#allocation2 + $0x82] sm:$0xff] %vm1651_vm2, %v2981_v37 }
 0x4a3   : > { %v3063_v34 = vpop.permute.xlu0 %3062  ;;  %v3123_v29 = vld [vmem:[#allocation2 + $0x78] sm:$0xff] }
 0x4a4   : > { %3105 = vst.msk [vmem:[#allocation2 + $0x88] sm:$0xff] %vm1732_vm7, %v3063_v34 }
 0x4a5   : > { %v3061_v33 = vpop.permute.xlu1 %3060  ;;  %v3122_v30 = vld [vmem:[#allocation2 + $0x70] sm:$0xff] }
 0x4a6   : > { %3104 = vst.msk [vmem:[#allocation2 + $0x80] sm:$0xff] %vm1732_vm7, %v3061_v33  ;;  %4177 = vmatprep.mubr.msk.f32.mxu0 %vm6297_vm14, %v3122_v30 }
 0x4a7   : > { %3557 = vst.msk [vmem:[#allocation2 + $0x6c] sm:$0xff] %vm6299_vm13, %v6298_v28  ;;  %v2987_v25 = vpop.permute.xlu0 %2986  ;;  %4178 = vmatmul.mubr.msk.f32.gmra.mxu0 %vm6302_vm11, %v3123_v29 }
 0x4a8   : > { %3558 = vst.msk [vmem:[#allocation2 + $0x74] sm:$0xff] %vm6301_vm4, %v6300_v27 }
 0x4a9   : > { %3027 = vst.msk [vmem:[#allocation2 + $0x9a] sm:$0xff] %vm1651_vm2, %v2987_v25  ;;  %v2985_v26 = vpop.permute.xlu1 %2984 }
 0x4aa   : > { %3026 = vst.msk [vmem:[#allocation2 + $0x92] sm:$0xff] %vm1651_vm2, %v2985_v26  ;;  %vm6310_vm2 = vmmov %vm6293_vm0 }
 0x4ab   : > { %v3067_v58 = vpop.permute.xlu0 %3066  ;;  %v3125_v48 = vld [vmem:[#allocation2 + $0x88] sm:$0xff] }
 0x4ac   : > { %3107 = vst.msk [vmem:[#allocation2 + $0x98] sm:$0xff] %vm1732_vm7, %v3067_v58 }
 0x4ad   : > { %v3065_v40 = vpop.permute.xlu1 %3064  ;;  %v3124_v57 = vld [vmem:[#allocation2 + $0x80] sm:$0xff] }
 0x4ae   : > { %3106 = vst.msk [vmem:[#allocation2 + $0x90] sm:$0xff] %vm1732_vm7, %v3065_v40  ;;  %4180 = vmatprep.mubr.msk.f32.mxu0 %vm6303_vm5, %v3124_v57  ;;  %vm6315_vm7 = vmmov %vm6293_vm0  ;;  %vm3640_vm0 = vcmask 261120   ;;  %v3577_v30 = vld [vmem:[#allocation2 + $0x68] sm:$0xff] }
 0x4af   : > { %3559 = vst.msk [vmem:[#allocation2 + $0x7c] sm:$0xff] %vm6305_vm1, %v6304_v54  ;;  %4181 = vmatmul.mubr.msk.f32.gmra.mxu0 %vm6308_vm3, %v3125_v48  ;;  %3895 = vmatprep.mubr.msk.f32.mxu1 %vm3640_vm0, %v3625_v14  ;;  %v3578_v27 = vld [vmem:[#allocation2 + $0x70] sm:$0xff]  ;;  %v3575_v14 = vld [vmem:[#allocation2 + $0x58] sm:$0xff] }
 0x4b0   : > { %3560 = vst.msk [vmem:[#allocation2 + $0x84] sm:$0xff] %vm6307_vm12, %v6306_v21  ;;  %v3576_v21 = vld [vmem:[#allocation2 + $0x60] sm:$0xff] }
 0x4b3   : > { %v3127_v53 = vld [vmem:[#allocation2 + $0x98] sm:$0xff] }
 0x4b4   : > { %3563 = vst.msk [vmem:[#allocation2 + $0x9c] sm:$0xff] %vm6310_vm2, %v6309_v3 }
 0x4b5   : > { %v3126_v22 = vld [vmem:[#allocation2 + $0x90] sm:$0xff] }
 0x4b6   : > { %4183 = vmatprep.mubr.msk.f32.mxu0 %vm6311_vm6, %v3126_v22  ;;  %3561 = vst.msk [vmem:[#allocation2 + $0x8c] sm:$0xff] %vm6313_vm10, %v6312_v8  ;;  %v3579_v41 = vld [vmem:[#allocation2 + $0x78] sm:$0xff] }
 0x4b7   : > { %3562 = vst.msk [vmem:[#allocation2 + $0x94] sm:$0xff] %vm6315_vm7, %v6314_v9  ;;  %4184 = vmatmul.mubr.msk.f32.gmra.mxu0 %vm6316_vm15, %v3127_v53 }
 0x4b8   : > { %v3487_v23 = vpop.permute.xlu0 %3486 }
 0x4b9   : > { %vm3517_vm14 = vcmp.eq.s32.totalorder %v3487_v23, 1 }
 0x4ba   : > { %v3490_v19 = vpop.permute.xlu1 %3489 }
 0x4bb   : > { %vm3518_vm9 = vcmp.eq.s32.totalorder %v3490_v19, 1 }
 0x4bc   : > { %v3481_v13 = vpop.permute.xlu0 %3480 }
 0x4bd   : > { %vm3515_vm13 = vcmp.eq.s32.totalorder %v3481_v13, 1 }
 0x4be   : > { %v3484_v43 = vpop.permute.xlu1 %3483 }
 0x4bf   : > { %vm3516_vm8 = vcmp.eq.s32.totalorder %v3484_v43, 1 }
 0x4c0   : > { %v3475_v15 = vpop.permute.xlu0 %3474 }
 0x4c1   : > { %vm3513_vm11 = vcmp.eq.s32.totalorder %v3475_v15, 1 }
 0x4c2   : > { %v3478_v44 = vpop.permute.xlu1 %3477 }
 0x4c3   : > { %vm3514_vm4 = vcmp.eq.s32.totalorder %v3478_v44, 1 }
 0x4c4   : > { %v6006_v59 = vpop.permute.xlu0 %3468 }
 0x4c5   : > { %vm3511_vm1 = vcmp.eq.s32.totalorder %v6006_v59, 1 }
 0x4c6   : > { %v3472_v17 = vpop.permute.xlu1 %3471 }
 0x4c7   : > { %vm3512_vm5 = vcmp.eq.s32.totalorder %v3472_v17, 1 }
 0x4c8   : > { %v6016_v46 = vpop.permute.xlu0 %3462 }
 0x4c9   : > { %vm3509_vm3 = vcmp.eq.s32.totalorder %v6016_v46, 1 }
 0x4ca   : > { %v6011_v2 = vpop.permute.xlu1 %3465 }
 0x4cb   : > { %vm3510_vm12 = vcmp.eq.s32.totalorder %v6011_v2, 1 }
 0x4cc   : > { %v6022_v22 = vpop.permute.xlu0 %3456 }
 0x4cd   : > { %vm3507_vm6 = vcmp.eq.s32.totalorder %v6022_v22, 1 }
 0x4ce   : > { %v6019_v40 = vpop.permute.xlu1 %3459 }
 0x4cf   : > { %vm3508_vm2 = vcmp.eq.s32.totalorder %v6019_v40, 1 }
 0x4d0   : > { %v3451_v59 = vpop.permute.xlu0 %3450 }
 0x4d1   : > { %vm3505_vm7 = vcmp.eq.s32.totalorder %v3451_v59, 1 }
 0x4d2   : > { %v3454_v44 = vpop.permute.xlu1 %3453 }
 0x4d3   : > { %vm3506_vm10 = vcmp.eq.s32.totalorder %v3454_v44, 1 }
 0x4d6   : > { %v3448_v46 = vpop.permute.xlu1 %3447 }
 0x4d7   : > { %vm3504_vm15 = vcmp.eq.s32.totalorder %v3448_v46, 1 }
 0x52e   : > { %v5988_v36 = vpop.f32.mrf.mxu0 }
 0x530   : > { %v5990_v52 = vpop.f32.mrf.mxu0 }
 0x537   : > { %v5992_v4 = vpop.f32.mrf.mxu0 }
 0x539   : > { %v5994_v61 = vpop.f32.mrf.mxu0 }
 0x53a   : > { %v3275_v2 = vadd.f32 %v6003_v51, %v5994_v61 }
 0x53f   : > { %v5996_v0 = vpop.f32.mrf.mxu0 }
 0x541   : > { %v5998_v55 = vpop.f32.mrf.mxu0 }
 0x547   : > { %v4167_v18 = vpop.f32.mrf.mxu0 }
 0x548   : > { %v3300_v57 = vadd.f32 %v4167_v18, %v6003_v51  ;;  %v3290_v18 = vadd.f32 %v5996_v0, %v6003_v51 }
 0x549   : > { %v3294_v20 = vpop.f32.mrf.mxu0 }
 0x54a   : > { %v3295_v8 = vadd.f32 %v6003_v51, %v3294_v20 }
 0x54c   : > { %v3369_v15 = vmax.f32 %v3295_v8, 0.0 }
 0x54f   : > { %v4170_v31 = vpop.f32.mrf.mxu0 }
 0x550   : > { %v3310_v50 = vadd.f32 %v4170_v31, %v6003_v51 }
 0x551   : > { %v3304_v12 = vpop.f32.mrf.mxu0 }
 0x552   : > { %v3305_v34 = vadd.f32 %v6003_v51, %v3304_v12  ;;  %v3372_v48 = vmax.f32 %v3310_v50, 0.0  ;;  %v3370_v12 = vmax.f32 %v3300_v57, 0.0 }
 0x554   : > { %v3371_v9 = vmax.f32 %v3305_v34, 0.0  ;;  %v3532_v43 = vsel %vm3512_vm5, %v3372_v48, 0.0  ;;  %v3265_v34 = vadd.f32 %v6003_v51, %v5990_v52  ;;  %v3502_v48 = vpop.permute.xlu1 %3501  ;;  %vm3723_vm5 = vcmask 63488  }
 0x556   : > { %v3531_v17 = vsel %vm3511_vm1, %v3371_v9, 0.0 }
 0x557   : > { %v4173_v10 = vpop.f32.mrf.mxu0 }
 0x558   : > { %v3320_v11 = vadd.f32 %v4173_v10, %v6003_v51  ;;  %v3574_v10 = vld [vmem:[#allocation2 + $0x50] sm:$0xff] }
 0x559   : > { %v3314_v60 = vpop.f32.mrf.mxu0 }
 0x55a   : > { %v3315_v47 = vadd.f32 %v6003_v51, %v3314_v60  ;;  %v3374_v45 = vmax.f32 %v3320_v11, 0.0  ;;  %v3530_v11 = vsel %vm3510_vm12, %v3370_v12, 0.0 }
 0x55c   : > { %v3373_v33 = vmax.f32 %v3315_v47, 0.0  ;;  %v3534_v54 = vsel %vm3514_vm4, %v3374_v45, 0.0  ;;  %v3270_v45 = vadd.f32 %v5988_v36, %v6003_v51 }
 0x55d   : > { %v3595_v31 = vadd.f32 %v3575_v14, %v3534_v54  ;;  %v3363_v54 = vmax.f32 %v3265_v34, 0.0 }
 0x55e   : > { %v3533_v19 = vsel %vm3513_vm11, %v3373_v33, 0.0  ;;  %v3365_v33 = vmax.f32 %v3275_v2, 0.0  ;;  %vm6317_vm11 = vcmask 64512  }
 0x55f   : > { %v4176_v5 = vpop.f32.mrf.mxu0  ;;  %v3594_v20 = vadd.f32 %v3574_v10, %v3533_v19  ;;  %v3566_v19 = vld [vmem:[#allocation2 + $0x10] sm:$0xff] }
 0x560   : > { %v3330_v62 = vadd.f32 %v4176_v5, %v6003_v51  ;;  %v3285_v5 = vadd.f32 %v6003_v51, %v5998_v55 }
 0x561   : > { %v3324_v39 = vpop.f32.mrf.mxu0 }
 0x562   : > { %v3325_v24 = vadd.f32 %v6003_v51, %v3324_v39  ;;  %v3376_v56 = vmax.f32 %v3330_v62, 0.0  ;;  %v3573_v39 = vld [vmem:[#allocation2 + $0x48] sm:$0xff]  ;;  %v3615_v62 = vmax.f32 %v3595_v31, 0.0  ;;  %v3367_v47 = vmax.f32 %v3285_v5, 0.0 }
 0x563   : > { %v3593_v0 = vadd.f32 %v3573_v39, %v3532_v43  ;;  %v3565_v43 = vld [vmem:[#allocation2 + $0x8] sm:$0xff] }
 0x564   : > { %v3375_v35 = vmax.f32 %v3325_v24, 0.0  ;;  %v3536_v42 = vsel %vm3516_vm8, %v3376_v56, 0.0  ;;  %v3280_v24 = vadd.f32 %v5992_v4, %v6003_v51  ;;  %v3572_v56 = vld [vmem:[#allocation2 + $0x40] sm:$0xff]  ;;  %vm3522_vm8 = vcmp.eq.s32.totalorder %v3502_v48, 1 }
 0x565   : > { %v3597_v25 = vadd.f32 %v3577_v30, %v3536_v42  ;;  %v3592_v55 = vadd.f32 %v3572_v56, %v3531_v17  ;;  %v3569_v30 = vld [vmem:[#allocation2 + $0x28] sm:$0xff] }
 0x566   : > { %v3535_v29 = vsel %vm3515_vm13, %v3375_v35, 0.0  ;;  %v3571_v35 = vld [vmem:[#allocation2 + $0x38] sm:$0xff]  ;;  %v3366_v42 = vmax.f32 %v3280_v24, 0.0 }
 0x567   : > { %v4179_v7 = vpop.f32.mrf.mxu0  ;;  %v3596_v53 = vadd.f32 %v3576_v21, %v3535_v29  ;;  %v3617_v23 = vmax.f32 %v3597_v25, 0.0  ;;  %v3591_v4 = vadd.f32 %v3571_v35, %v3530_v11  ;;  %v3527_v29 = vsel %vm3507_vm6, %v3367_v47, 0.0  ;;  %v3567_v21 = vld [vmem:[#allocation2 + $0x18] sm:$0xff]  ;;  %v3581_v47 = vld [vmem:[#allocation2 + $0x88] sm:$0xff] }
 0x568   : > { %v3340_v63 = vadd.f32 %v4179_v7, %v6003_v51  ;;  %v3368_v7 = vmax.f32 %v3290_v18, 0.0  ;;  %v3364_v25 = vmax.f32 %v3270_v45, 0.0 }
 0x569   : > { %v3334_v32 = vpop.f32.mrf.mxu0  ;;  %v3616_v13 = vmax.f32 %v3596_v53, 0.0  ;;  %v3525_v53 = vsel %vm3505_vm7, %v3365_v33, 0.0 }
 0x56a   : > { %v3378_v16 = vmax.f32 %v3340_v63, 0.0  ;;  %v3335_v49 = vadd.f32 %v6003_v51, %v3334_v32  ;;  %v3614_v63 = vmax.f32 %v3594_v20, 0.0  ;;  %v3524_v14 = vsel %vm3504_vm15, %v3364_v25, 0.0 }
 0x56b   : > { %v3586_v18 = vadd.f32 %v3566_v19, %v3525_v53  ;;  %v3585_v44 = vadd.f32 %v3565_v43, %v3524_v14 }
 0x56c   : > { %v3538_v6 = vsel %vm3518_vm9, %v3378_v16, 0.0  ;;  %v3377_v38 = vmax.f32 %v3335_v49, 0.0  ;;  %v3529_v16 = vsel %vm3509_vm3, %v3369_v15, 0.0  ;;  %v3613_v49 = vmax.f32 %v3593_v0, 0.0  ;;  %v3564_v15 = vld [vmem:[#allocation2] sm:$0xff] }
 0x56d   : > { %v3599_v37 = vadd.f32 %v3579_v41, %v3538_v6  ;;  %v3528_v6 = vsel %vm3508_vm2, %v3368_v7, 0.0  ;;  %v3570_v41 = vld [vmem:[#allocation2 + $0x30] sm:$0xff]  ;;  %v3605_v11 = vmax.f32 %v3585_v44, 0.0 }
 0x56e   : > { %v3537_v28 = vsel %vm3517_vm14, %v3377_v38, 0.0  ;;  %v3590_v61 = vadd.f32 %v3570_v41, %v3529_v16  ;;  %v3612_v38 = vmax.f32 %v3592_v55, 0.0  ;;  %v3589_v36 = vadd.f32 %v3569_v30, %v3528_v6  ;;  %v3624_v6 = vld [vmem:[%s6101_s12] sm:$0xff]  ;;  %v3627_v41 = vld [vmem:[%s6101_s12 + $0x18] sm:$0x7f] }
 0x56f   : > { %v3619_v26 = vmax.f32 %v3599_v37, 0.0  ;;  %v3598_v58 = vadd.f32 %v3578_v27, %v3537_v28  ;;  %v6030_v60 = vpop.f32.mrf.mxu0  ;;  %v3445_v37 = vpop.permute.xlu0 %3444  ;;  %v3611_v28 = vmax.f32 %v3591_v4, 0.0 }
 0x570   : > { %v3610_v52 = vmax.f32 %v3590_v61, 0.0  ;;  %v3609_v8 = vmax.f32 %v3589_v36, 0.0  ;;  %v3350_v31 = vadd.f32 %v6030_v60, %v6003_v51  ;;  %vm3503_vm9 = vcmp.eq.s32.totalorder %v3445_v37, 1  ;;  %v3496_v60 = vpop.permute.xlu1 %3495  ;;  %v3626_v61 = vld [vmem:[%s6101_s12 + $0x10] sm:$0x7f] }
 0x571   : > { %v3618_v3 = vmax.f32 %v3598_v58, 0.0  ;;  %3648 = vmatpush1.msra.mxu1 %v3619_v26  ;;  %v6040_v32 = vpop.f32.mrf.mxu0  ;;  %v3526_v26 = vsel %vm3506_vm10, %v3366_v42, 0.0  ;;  %v3568_v58 = vld [vmem:[#allocation2 + $0x20] sm:$0xff]  ;;  %v3523_v10 = vsel %vm3503_vm9, %v3363_v54, 0.0  ;;  %vm3520_vm13 = vcmp.eq.s32.totalorder %v3496_v60, 1 }
 0x572   : > { %3649 = vmatprep.subr.mxu1 %v6229_v1  ;;  %v3588_v57 = vadd.f32 %v3568_v58, %v3527_v29  ;;  %v3587_v22 = vadd.f32 %v3567_v21, %v3526_v26  ;;  %v3345_v20 = vadd.f32 %v6003_v51, %v6040_v32  ;;  %v3380_v39 = vmax.f32 %v3350_v31, 0.0 }
 0x573   : > { %3650 = vmatpush1.msra.mxu1 %v3618_v3  ;;  %v3499_v9 = vpop.permute.xlu0 %3498  ;;  %v3584_v0 = vadd.f32 %v3564_v15, %v3523_v10 }
 0x574   : > { %3651 = vmatprep.subr.mxu1 %v6229_v1  ;;  %v3608_v12 = vmax.f32 %v3588_v57, 0.0  ;;  %v3607_v5 = vmax.f32 %v3587_v22, 0.0  ;;  %vm3521_vm14 = vcmp.eq.s32.totalorder %v3499_v9, 1  ;;  %v3379_v24 = vmax.f32 %v3345_v20, 0.0 }
 0x575   : > { %3652 = vmatpush1.msra.mxu1 %v3617_v23  ;;  %v3540_v55 = vsel %vm3520_vm13, %v3380_v39, 0.0  ;;  %v3604_v32 = vmax.f32 %v3584_v0, 0.0 }
 0x576   : > { %3653 = vmatprep.subr.mxu1 %v6229_v1  ;;  %v3601_v16 = vadd.f32 %v3581_v47, %v3540_v55 }
 0x577   : > { %3654 = vmatpush1.msra.mxu1 %v3616_v13  ;;  %v4185_v50 = vpop.f32.mrf.mxu0  ;;  %v3493_v59 = vpop.permute.xlu0 %3492 }
 0x578   : > { %3655 = vmatprep.subr.mxu1 %v6229_v1  ;;  %v3360_v40 = vadd.f32 %v4185_v50, %v6003_v51  ;;  %vm3519_vm4 = vcmp.eq.s32.totalorder %v3493_v59, 1  ;;  %v3621_v45 = vmax.f32 %v3601_v16, 0.0 }
 0x579   : > { %3656 = vmatpush1.msra.mxu1 %v3615_v62  ;;  %v3354_v27 = vpop.f32.mrf.mxu0  ;;  %v3606_v62 = vmax.f32 %v3586_v18, 0.0  ;;  %v3539_v35 = vsel %vm3519_vm4, %v3379_v24, 0.0 }
 0x57a   : > { %3657 = vmatprep.subr.mxu1 %v6229_v1  ;;  %v3355_v3 = vadd.f32 %v6003_v51, %v3354_v27  ;;  %v3382_v23 = vmax.f32 %v3360_v40, 0.0  ;;  %v3583_v51 = vld [vmem:[#allocation2 + $0x98] sm:$0xff] }
 0x57b   : > { %3658 = vmatpush1.msra.mxu1 %v3614_v63  ;;  %v3582_v63 = vld [vmem:[#allocation2 + $0x90] sm:$0xff]  ;;  %v3638_v33 = vpop.permute.xlu0 %3637 }
 0x57c   : > { %3659 = vmatprep.subr.mxu1 %v6229_v1  ;;  %v3381_v13 = vmax.f32 %v3355_v3, 0.0  ;;  %v3542_v17 = vsel %vm3522_vm8, %v3382_v23, 0.0 }
 0x57d   : > { %3660 = vmatpush1.msra.mxu1 %v3613_v49  ;;  %v3603_v56 = vadd.f32 %v3583_v51, %v3542_v17  ;;  %v3580_v49 = vld [vmem:[#allocation2 + $0x80] sm:$0xff] }
 0x57e   : > { %3661 = vmatprep.subr.mxu1 %v6229_v1  ;;  %v3541_v7 = vsel %vm3521_vm14, %v3381_v13, 0.0  ;;  %v3600_v50 = vadd.f32 %v3580_v49, %v3539_v35 }
 0x57f   : > { %3662 = vmatpush1.msra.mxu1 %v3612_v38  ;;  %v3602_v2 = vadd.f32 %v3582_v63, %v3541_v7  ;;  %v3623_v4 = vmax.f32 %v3603_v56, 0.0  ;;  %v3633_v38 = vpop.permute.xlu1 %3632 }
 0x580   : > { %3663 = vmatprep.subr.mxu1 %v6229_v1  ;;  %v3620_v42 = vmax.f32 %v3600_v50, 0.0 }
 0x581   : > { %3664 = vmatpush1.msra.mxu1 %v3611_v28  ;;  %v3622_v46 = vmax.f32 %v3602_v2, 0.0 }
 0x582   : > { %3665 = vmatprep.subr.mxu1 %v6229_v1 }
 0x583   : > { %3666 = vmatpush1.msra.mxu1 %v3610_v52 }
 0x584   : > { %3667 = vmatprep.subr.mxu1 %v6229_v1 }
 0x585   : > { %3668 = vmatpush1.msra.mxu1 %v3609_v8 }
 0x586   : > { %3669 = vmatprep.subr.mxu1 %v6229_v1 }
 0x587   : > { %3670 = vmatpush1.msra.mxu1 %v3608_v12 }
 0x588   : > { %3671 = vmatprep.subr.mxu1 %v6229_v1 }
 0x589   : > { %3672 = vmatpush1.msra.mxu1 %v3607_v5 }
 0x58a   : > { %3673 = vmatprep.subr.mxu1 %v6229_v1 }
 0x58b   : > { %3674 = vmatpush1.msra.mxu1 %v3606_v62 }
 0x58c   : > { %3675 = vmatprep.subr.mxu1 %v6229_v1 }
 0x58d   : > { %3676 = vmatpush1.msra.mxu1 %v3605_v11 }
 0x58e   : > { %3677 = vmatprep.subr.mxu1 %v6229_v1 }
 0x58f   : > { %3678 = vmatpush1.msra.mxu1 %v3604_v32 }
 0x590   : > { %3703 = vmatprep.subr.mxu1 %v6229_v1 }
 0x591   : > { %3704 = vmatpush2.msra.mxu1 %v3623_v4 }
 0x592   : > { %3705 = vmatprep.subr.mxu1 %v6229_v1 }
 0x593   : > { %3706 = vmatpush2.msra.mxu1 %v3622_v46 }
 0x594   : > { %3707 = vmatprep.subr.mxu1 %v6229_v1 }
 0x595   : > { %3708 = vmatpush2.msra.mxu1 %v3621_v45 }
 0x596   : > { %3709 = vmatprep.subr.mxu1 %v6229_v1 }
 0x597   : > { %3710 = vmatpush2.msra.mxu1 %v3620_v42 }
 0x598   : > { %3712 = vmatmul.mubr.f32.vlgmr.msra.gmra.mxu1 %v3624_v6 }
 0x599   : > { %3896 = vmatprep.mubr.msk.f32.mxu1 %vm3640_vm0, %v3627_v41 }
 0x59c   : > { %3717 = vmatmul.mubr.f32.gmra.mxu1 %v3626_v61 }
 0x658   : > { %v3713_v1 = vpop.f32.mrf.mxu1 }
 0x659   : > { %v3714_v37 = vadd.f32 %v3713_v1, %v3633_v38 }
 0x65a   : > { %v3715_v34 = vpop.f32.mrf.mxu1 }
 0x65b   : > { %3722 = vst.msk [vmem:[%s467_s25] sm:$0xff] %vm6317_vm11, %v3714_v37 }
 0x65c   : > { %v3718_v30 = vpop.f32.mrf.mxu1 }
 0x65d   : > { %v3719_v29 = vadd.f32 %v3718_v30, %v3638_v33 }
 0x65e   : > { %v3720_v36 = vpop.f32.mrf.mxu1 }
 0x65f   : > { %3724 = vst.msk [vmem:[%s467_s25 + $0x8] sm:$0x7f] %vm3723_vm5, %v3719_v29 }
 0x660 PF: > { %s24_s29 = sadd.s32 1, %s4237_s29  }
 0x661   : > { %p21_p4 = scmp.ge.s32.totalorder %s24_s29, 4  }
 0x663   :  { %23 = sbr.rel (!%p21_p4) target bundleno = 1 (0x1), region = 106 }

</bundles_post_ra>
